<compile_context>
chip_gen: v6e
topology: v6e:2x2x1
jax: 0.10.0
libtpu: 0.0.40
codegen_flags: <defaults>
</compile_context>

<pallas_src>
import math
import functools

import jax
import jax.numpy as jnp
import numpy as np
from jax.experimental import pallas as pl
from jax.experimental.pallas import tpu as pltpu


# ----------------------------------------------------------------------------
# Pallas kernel: one grid step == `bb` batch elements, full DiT block fused.
# ----------------------------------------------------------------------------
def block_kernel(x_ref, mod_ref,
                 ln1_w_ref, ln1_b_ref, wqkv_ref, bqkv_ref, wproj_ref, projb_ref,
                 ln2_w_ref, ln2_b_ref, fc1_w_ref, fc1_b_ref, fc2_w_ref, fc2_b_ref,
                 o_ref, *, n_heads):
    x = x_ref[...].astype(jnp.float32)          # (bb, T, C)
    mod = mod_ref[...].astype(jnp.float32)      # (bb, 6, C)
    bb, T, C = x.shape
    H = n_heads
    hs = C // H
    cdt = jnp.bfloat16                          # MXU operand dtype

    shift_msa = mod[:, 0:1, :]                  # (bb, 1, C)
    scale_msa = mod[:, 1:2, :]
    gate_msa = mod[:, 2:3, :]
    shift_mlp = mod[:, 3:4, :]
    scale_mlp = mod[:, 4:5, :]
    gate_mlp = mod[:, 5:6, :]

    def layernorm(z, w, b):
        mu = jnp.mean(z, axis=-1, keepdims=True)
        var = jnp.maximum(jnp.mean(z * z, axis=-1, keepdims=True) - mu * mu, 0.0)
        return (z - mu) * jax.lax.rsqrt(var + 1e-5) * w + b

    # ---------------- attention branch ----------------
    h_att = layernorm(x, ln1_w_ref[...], ln1_b_ref[...])
    h_att = h_att * (1.0 + scale_msa) + shift_msa            # (bb, T, C)
    h_att_t = jnp.swapaxes(h_att, 1, 2).astype(cdt)          # (bb, C, T)

    wqkv = wqkv_ref[...]        # (3C, C) bf16, rows head-major: [h | (q,k,v) | d]
    bqkv = bqkv_ref[...]        # (3C, 1) f32
    wproj = wproj_ref[...]      # (H, hs, C) bf16
    inv_sqrt_d = 1.0 / math.sqrt(hs)

    attn_rows = []
    for b in range(bb):         # static, small (attention cannot mix batch rows)
        # All-head QKV projection as one MXU matmul: (3C, C) @ (C, T) -> (3C, T)
        qkv = jnp.dot(wqkv, h_att_t[b], preferred_element_type=jnp.float32) + bqkv
        qkv = qkv.reshape(H, 3 * hs, T)                      # heads -> leading batch dim
        # fold the softmax scale into q (smaller than the (H,T,T) score matrix)
        q = jnp.swapaxes(qkv[:, 0 * hs:1 * hs, :], 1, 2) * inv_sqrt_d   # (H, T, hs)
        k = qkv[:, 1 * hs:2 * hs, :]                         # (H, hs, T)
        v = qkv[:, 2 * hs:3 * hs, :]                         # (H, hs, T)

        # head-batched score matmul + softmax (stats in f32)
        s = jnp.einsum("hid,hdj->hij", q.astype(cdt), k.astype(cdt),
                       preferred_element_type=jnp.float32)              # (H, T, T)
        s = s - jnp.max(s, axis=-1, keepdims=True)
        p = jnp.exp(s)
        p = p * pl.reciprocal(jnp.sum(p, axis=-1, keepdims=True), approx=True)

        o = jnp.einsum("hij,hej->hie", p.astype(cdt), v.astype(cdt),
                       preferred_element_type=jnp.float32)               # (H, T, hs)
        # output projection, head-batched then summed over heads (no concatenate)
        ph = jnp.einsum("hte,hec->htc", o.astype(cdt), wproj,
                        preferred_element_type=jnp.float32)              # (H, T, C)
        attn_rows.append(jnp.sum(ph, axis=0))                            # (T, C)

    attn = jnp.stack(attn_rows, axis=0) + projb_ref[...]                 # (bb, T, C)
    x = x + gate_msa * attn

    # ---------------- MLP branch (all bb*T rows fused -> large MXU M dim) -----
    h_mlp = layernorm(x, ln2_w_ref[...], ln2_b_ref[...])
    h_mlp = h_mlp * (1.0 + scale_mlp) + shift_mlp
    h_flat = h_mlp.reshape(bb * T, C).astype(cdt)
    h1 = jnp.dot(h_flat, fc1_w_ref[...],
                 preferred_element_type=jnp.float32) + fc1_b_ref[...]
    h1 = jax.nn.gelu(h1, approximate=True)                   # GELU(tanh) as in module
    y = jnp.dot(h1.astype(cdt), fc2_w_ref[...],
                preferred_element_type=jnp.float32) + fc2_b_ref[...]
    x = x + gate_mlp * y.reshape(bb, T, C)

    o_ref[...] = x.astype(o_ref.dtype)


# ----------------------------------------------------------------------------
# Wrapper helpers
# ----------------------------------------------------------------------------
def _batch_per_step(B, T, target_rows=128, max_rows=2048):
    """Smallest divisor of B such that bb*T >= target_rows, bounded by max_rows."""
    divisors = [d for d in range(1, B + 1) if B % d == 0]
    bounded = [d for d in divisors if d * T <= max_rows]
    pool = bounded if bounded else divisors[:1]
    for d in pool:
        if d * T >= target_rows:
            return d
    return pool[-1]


def _repack_attn_weights(params, H, C):
    """Head-major repack of qkv / proj weights; matmul weights cast to bf16."""
    hs = C // H
    qkv_w = params["qkv_w"]                    # (C, 3C)
    qkv_b = params["qkv_b"].reshape(-1)        # (3C,)

    def head_major(W):                         # (C, C) -> (H, hs, C): [h,d,c] = W[c, h*hs+d]
        return jnp.transpose(W.reshape(C, H, hs), (1, 2, 0))

    wq, wk, wv = (head_major(qkv_w[:, i * C:(i + 1) * C]) for i in range(3))
    wqkv_t = jnp.stack([wq, wk, wv], axis=1).reshape(3 * C, C).astype(jnp.bfloat16)

    bq, bk, bv = (qkv_b[i * C:(i + 1) * C].reshape(H, hs) for i in range(3))
    bqkv_t = jnp.stack([bq, bk, bv], axis=1).reshape(3 * C, 1).astype(jnp.float32)

    wproj_h = params["proj_w"].reshape(H, hs, C).astype(jnp.bfloat16)
    return wqkv_t, bqkv_t, wproj_h


def _weight_spec(shape, single_buffer):
    nd = len(shape)
    idx = lambda i, _nd=nd: (0,) * _nd          # constant index map (weights)
    if single_buffer:
        # single-buffer resident weights to halve their VMEM footprint
        return pl.BlockSpec(shape, idx, pipeline_mode=pl.Buffered(1))
    return pl.BlockSpec(shape, idx)


def _make_dit_block(single_buffer_weights):
    @functools.partial(jax.jit, static_argnums=(3,))
    def fn(x, c, params, n_heads):
        B, T, C = x.shape
        H = n_heads

        # hoisted adaLN modulation: one well-shaped XLA matmul for the batch
        cs = c * jax.nn.sigmoid(c)                               # SiLU
        mod = cs @ params["mod_w"] + params["mod_b"]             # (B, 6C), f32
        mod_r = mod.reshape(B, 6, C)

        # TODO(synk): in a real model, repack/cast weights once at load time
        # instead of per forward call (cheap under jit, but avoidable).
        wqkv_t, bqkv_t, wproj_h = _repack_attn_weights(params, H, C)
        weights = [
            params["ln1_w"].astype(jnp.float32), params["ln1_b"].astype(jnp.float32),
            wqkv_t, bqkv_t, wproj_h, params["proj_b"].astype(jnp.float32),
            params["ln2_w"].astype(jnp.float32), params["ln2_b"].astype(jnp.float32),
            params["fc1_w"].astype(jnp.bfloat16), params["fc1_b"].astype(jnp.float32),
            params["fc2_w"].astype(jnp.bfloat16), params["fc2_b"].astype(jnp.float32),
        ]

        bb = _batch_per_step(B, T)
        kernel = functools.partial(block_kernel, n_heads=H)

        return pl.pallas_call(
            kernel,
            out_shape=jax.ShapeDtypeStruct((B, T, C), x.dtype),
            grid=(B // bb,),
            in_specs=[pl.BlockSpec((bb, T, C), lambda i: (i, 0, 0)),
                      pl.BlockSpec((bb, 6, C), lambda i: (i, 0, 0))]
                     + [_weight_spec(w.shape, single_buffer_weights) for w in weights],
            out_specs=pl.BlockSpec((bb, T, C), lambda i: (i, 0, 0)),
            compiler_params=pltpu.CompilerParams(
                dimension_semantics=("parallel",),
                vmem_limit_bytes=64 * 1024 * 1024),  # fits v7x; generous on v5e/v6e
        )(x, mod_r, *weights)

    return fn


_dit_block_buffered = _make_dit_block(True)
_dit_block_plain = _make_dit_block(False)


def dit_block(x, c, params, n_heads):
    try:
        return _dit_block_buffered(x, c, params, n_heads)
    except Exception:
        # fall back to default (double-buffered) weight specs if Buffered(1)
        # single-buffering is unsupported by the installed Pallas version.
        return _dit_block_plain(x, c, params, n_heads)


# ----------------------------------------------------------------------------
# Pure-JAX reference (mirrors the PyTorch module, dropout = 0, full f32)
# ----------------------------------------------------------------------------
def dit_block_ref(x, c, params, n_heads):
    B, T, C = x.shape
    hs = C // n_heads

    def layernorm(z, w, b):
        mu = jnp.mean(z, axis=-1, keepdims=True)
        var = jnp.mean((z - mu) ** 2, axis=-1, keepdims=True)
        return (z - mu) * jax.lax.rsqrt(var + 1e-5) * w + b

    cs = c * jax.nn.sigmoid(c)
    mod = cs @ params["mod_w"] + params["mod_b"]
    sm, scm, gm, sp, scp, gp = jnp.split(mod, 6, axis=1)

    h = layernorm(x, params["ln1_w"], params["ln1_b"])
    h = h * (1.0 + scm[:, None, :]) + sm[:, None, :]
    qkv = h @ params["qkv_w"] + params["qkv_b"]
    q, k, v = jnp.split(qkv, 3, axis=-1)
    q = q.reshape(B, T, n_heads, hs).transpose(0, 2, 1, 3)
    k = k.reshape(B, T, n_heads, hs).transpose(0, 2, 1, 3)
    v = v.reshape(B, T, n_heads, hs).transpose(0, 2, 1, 3)
    w = jnp.einsum("bhqd,bhkd->bhqk", q, k) / math.sqrt(hs)
    w = jax.nn.softmax(w, axis=-1)
    o = jnp.einsum("bhqk,bhkd->bhqd", w, v)
    o = o.transpose(0, 2, 1, 3).reshape(B, T, C)
    o = o @ params["proj_w"] + params["proj_b"]
    x = x + gm[:, None, :] * o

    h = layernorm(x, params["ln2_w"], params["ln2_b"])
    h = h * (1.0 + scp[:, None, :]) + sp[:, None, :]
    h = jax.nn.gelu(h @ params["fc1_w"] + params["fc1_b"], approximate=True)
    y = h @ params["fc2_w"] + params["fc2_b"]
    return x + gp[:, None, :] * y


# ----------------------------------------------------------------------------
# Deterministic parameter init + run
# ----------------------------------------------------------------------------
def init_params(key, n_embed, mlp_ratio):
    C = n_embed
    ks = jax.random.split(key, 8)
    scale = 0.05
    return {
        "ln1_w": jnp.ones((1, C), jnp.float32),
        "ln1_b": jnp.zeros((1, C), jnp.float32),
        "mod_w": scale * jax.random.normal(ks[0], (C, 6 * C), jnp.float32),
        "mod_b": scale * jax.random.normal(ks[1], (1, 6 * C), jnp.float32),
        "qkv_w": scale * jax.random.normal(ks[2], (C, 3 * C), jnp.float32),
        "qkv_b": scale * jax.random.normal(ks[3], (1, 3 * C), jnp.float32),
        "proj_w": scale * jax.random.normal(ks[4], (C, C), jnp.float32),
        "proj_b": scale * jax.random.normal(ks[5], (1, C), jnp.float32),
        "ln2_w": jnp.ones((1, C), jnp.float32),
        "ln2_b": jnp.zeros((1, C), jnp.float32),
        "fc1_w": scale * jax.random.normal(ks[6], (C, mlp_ratio * C), jnp.float32),
        "fc1_b": jnp.zeros((1, mlp_ratio * C), jnp.float32),
        "fc2_w": scale * jax.random.normal(ks[7], (mlp_ratio * C, C), jnp.float32),
        "fc2_b": jnp.zeros((1, C), jnp.float32),
    }


if __name__ == "__main__":
    # small config: B=2, T=8, n_embed=32, n_heads=4, mlp_ratio=4, dropout=0
    B, T, C, H, MLP = 2, 8, 32, 4, 4
    key = jax.random.PRNGKey(0)
    kx, kc, kp = jax.random.split(key, 3)
    x = jax.random.normal(kx, (B, T, C), jnp.float32)
    c = jax.random.normal(kc, (B, C), jnp.float32)
    params = init_params(kp, C, MLP)

    out = jax.block_until_ready(dit_block(x, c, params, H))
    ref = jax.block_until_ready(dit_block_ref(x, c, params, H))

    # bf16 matmul operands with f32 accumulation -> relaxed tolerance vs f32 ref
    np.testing.assert_allclose(np.asarray(out), np.asarray(ref),
                               rtol=2e-2, atol=2e-2)
    print("KERNEL_OK")
</pallas_src>

<mosaic_0001>
module attributes {stable_mosaic.version = 11 : i64} {
  func.func @block_kernel(%arg0: i32, %arg1: memref<2x8x32xf32, #tpu.memory_space<vmem>>, %arg2: memref<2x6x32xf32, #tpu.memory_space<vmem>>, %arg3: memref<1x32xf32, #tpu.memory_space<vmem>>, %arg4: memref<1x32xf32, #tpu.memory_space<vmem>>, %arg5: memref<96x32xbf16, #tpu.memory_space<vmem>>, %arg6: memref<96x1xf32, #tpu.memory_space<vmem>>, %arg7: memref<4x8x32xbf16, #tpu.memory_space<vmem>>, %arg8: memref<1x32xf32, #tpu.memory_space<vmem>>, %arg9: memref<1x32xf32, #tpu.memory_space<vmem>>, %arg10: memref<1x32xf32, #tpu.memory_space<vmem>>, %arg11: memref<32x128xbf16, #tpu.memory_space<vmem>>, %arg12: memref<1x128xf32, #tpu.memory_space<vmem>>, %arg13: memref<128x32xbf16, #tpu.memory_space<vmem>>, %arg14: memref<1x32xf32, #tpu.memory_space<vmem>>, %arg15: memref<2x8x32xf32, #tpu.memory_space<vmem>>) attributes {dimension_semantics = [#tpu.dimension_semantics<parallel>], iteration_bounds = array<i64: 1>, scalar_prefetch = 0 : i64, scratch_operands = 0 : i64, tpu.core_type = #tpu.core_type<tc>, window_params = [{transform_indices = @transform_0, window_bounds = array<i64: 2, 8, 32>}, {transform_indices = @transform_1, window_bounds = array<i64: 2, 6, 32>}, {pipeline_mode = #tpu.pipeline_mode<synchronous>, transform_indices = @transform_2, window_bounds = array<i64: 1, 32>}, {pipeline_mode = #tpu.pipeline_mode<synchronous>, transform_indices = @transform_3, window_bounds = array<i64: 1, 32>}, {pipeline_mode = #tpu.pipeline_mode<synchronous>, transform_indices = @transform_4, window_bounds = array<i64: 96, 32>}, {pipeline_mode = #tpu.pipeline_mode<synchronous>, transform_indices = @transform_5, window_bounds = array<i64: 96, 1>}, {pipeline_mode = #tpu.pipeline_mode<synchronous>, transform_indices = @transform_6, window_bounds = array<i64: 4, 8, 32>}, {pipeline_mode = #tpu.pipeline_mode<synchronous>, transform_indices = @transform_7, window_bounds = array<i64: 1, 32>}, {pipeline_mode = #tpu.pipeline_mode<synchronous>, transform_indices = @transform_8, window_bounds = array<i64: 1, 32>}, {pipeline_mode = #tpu.pipeline_mode<synchronous>, transform_indices = @transform_9, window_bounds = array<i64: 1, 32>}, {pipeline_mode = #tpu.pipeline_mode<synchronous>, transform_indices = @transform_10, window_bounds = array<i64: 32, 128>}, {pipeline_mode = #tpu.pipeline_mode<synchronous>, transform_indices = @transform_11, window_bounds = array<i64: 1, 128>}, {pipeline_mode = #tpu.pipeline_mode<synchronous>, transform_indices = @transform_12, window_bounds = array<i64: 128, 32>}, {pipeline_mode = #tpu.pipeline_mode<synchronous>, transform_indices = @transform_13, window_bounds = array<i64: 1, 32>}, {transform_indices = @transform_14, window_bounds = array<i64: 2, 8, 32>}]} {
    %c0 = arith.constant 0 : index
    %c0_0 = arith.constant 0 : index
    %c0_1 = arith.constant 0 : index
    %0 = vector.load %arg1[%c0, %c0_0, %c0_1] : memref<2x8x32xf32, #tpu.memory_space<vmem>>, vector<2x8x32xf32>
    %c0_2 = arith.constant 0 : index
    %c0_3 = arith.constant 0 : index
    %c0_4 = arith.constant 0 : index
    %1 = vector.load %arg2[%c0_2, %c0_3, %c0_4] : memref<2x6x32xf32, #tpu.memory_space<vmem>>, vector<2x6x32xf32>
    %2 = vector.extract_strided_slice %1 {offsets = [0, 0, 0], sizes = [2, 1, 32], strides = [1, 1, 1]} : vector<2x6x32xf32> to vector<2x1x32xf32>
    %3 = vector.extract_strided_slice %1 {offsets = [0, 1, 0], sizes = [2, 1, 32], strides = [1, 1, 1]} : vector<2x6x32xf32> to vector<2x1x32xf32>
    %4 = vector.extract_strided_slice %1 {offsets = [0, 2, 0], sizes = [2, 1, 32], strides = [1, 1, 1]} : vector<2x6x32xf32> to vector<2x1x32xf32>
    %5 = vector.extract_strided_slice %1 {offsets = [0, 3, 0], sizes = [2, 1, 32], strides = [1, 1, 1]} : vector<2x6x32xf32> to vector<2x1x32xf32>
    %6 = vector.extract_strided_slice %1 {offsets = [0, 4, 0], sizes = [2, 1, 32], strides = [1, 1, 1]} : vector<2x6x32xf32> to vector<2x1x32xf32>
    %7 = vector.extract_strided_slice %1 {offsets = [0, 5, 0], sizes = [2, 1, 32], strides = [1, 1, 1]} : vector<2x6x32xf32> to vector<2x1x32xf32>
    %c0_5 = arith.constant 0 : index
    %c0_6 = arith.constant 0 : index
    %8 = vector.load %arg3[%c0_5, %c0_6] : memref<1x32xf32, #tpu.memory_space<vmem>>, vector<1x32xf32>
    %c0_7 = arith.constant 0 : index
    %c0_8 = arith.constant 0 : index
    %9 = vector.load %arg4[%c0_7, %c0_8] : memref<1x32xf32, #tpu.memory_space<vmem>>, vector<1x32xf32>
    %cst = arith.constant dense<0.000000e+00> : vector<2x8xf32>
    %10 = vector.multi_reduction <add>, %0, %cst [2] : vector<2x8x32xf32> to vector<2x8xf32>
    %11 = vector.shape_cast %10 : vector<2x8xf32> to vector<2x8x1xf32>
    %cst_9 = arith.constant 3.200000e+01 : f32
    %12 = vector.broadcast %cst_9 : f32 to vector<2x8x1xf32>
    %13 = arith.divf %11, %12 : vector<2x8x1xf32>
    %14 = arith.mulf %0, %0 : vector<2x8x32xf32>
    %cst_10 = arith.constant dense<0.000000e+00> : vector<2x8xf32>
    %15 = vector.multi_reduction <add>, %14, %cst_10 [2] : vector<2x8x32xf32> to vector<2x8xf32>
    %16 = vector.shape_cast %15 : vector<2x8xf32> to vector<2x8x1xf32>
    %cst_11 = arith.constant 3.200000e+01 : f32
    %17 = vector.broadcast %cst_11 : f32 to vector<2x8x1xf32>
    %18 = arith.divf %16, %17 : vector<2x8x1xf32>
    %19 = arith.mulf %13, %13 : vector<2x8x1xf32>
    %20 = arith.subf %18, %19 : vector<2x8x1xf32>
    %cst_12 = arith.constant 0.000000e+00 : f32
    %21 = vector.broadcast %cst_12 : f32 to vector<2x8x1xf32>
    %22 = arith.maximumf %20, %21 : vector<2x8x1xf32>
    %23 = vector.broadcast %13 : vector<2x8x1xf32> to vector<2x8x32xf32>
    %24 = arith.subf %0, %23 : vector<2x8x32xf32>
    %cst_13 = arith.constant 9.99999974E-6 : f32
    %25 = vector.broadcast %cst_13 : f32 to vector<2x8x1xf32>
    %26 = arith.addf %22, %25 : vector<2x8x1xf32>
    %27 = math.rsqrt %26 : vector<2x8x1xf32>
    %28 = vector.broadcast %27 : vector<2x8x1xf32> to vector<2x8x32xf32>
    %29 = arith.mulf %24, %28 : vector<2x8x32xf32>
    %30 = vector.shape_cast %8 : vector<1x32xf32> to vector<1x1x32xf32>
    %31 = vector.broadcast %30 : vector<1x1x32xf32> to vector<2x8x32xf32>
    %32 = arith.mulf %29, %31 : vector<2x8x32xf32>
    %33 = vector.shape_cast %9 : vector<1x32xf32> to vector<1x1x32xf32>
    %34 = vector.broadcast %33 : vector<1x1x32xf32> to vector<2x8x32xf32>
    %35 = arith.addf %32, %34 : vector<2x8x32xf32>
    %cst_14 = arith.constant 1.000000e+00 : f32
    %36 = vector.broadcast %cst_14 : f32 to vector<2x1x32xf32>
    %37 = arith.addf %36, %3 : vector<2x1x32xf32>
    %38 = vector.broadcast %37 : vector<2x1x32xf32> to vector<2x8x32xf32>
    %39 = arith.mulf %35, %38 : vector<2x8x32xf32>
    %40 = vector.broadcast %2 : vector<2x1x32xf32> to vector<2x8x32xf32>
    %41 = arith.addf %39, %40 : vector<2x8x32xf32>
    %42 = tpu.transpose %41, [0, 2, 1] : vector<2x8x32xf32> -> vector<2x32x8xf32>
    %43 = arith.truncf %42 : vector<2x32x8xf32> to vector<2x32x8xbf16>
    %c0_15 = arith.constant 0 : index
    %c0_16 = arith.constant 0 : index
    %44 = vector.load %arg5[%c0_15, %c0_16] : memref<96x32xbf16, #tpu.memory_space<vmem>>, vector<96x32xbf16>
    %c0_17 = arith.constant 0 : index
    %c0_18 = arith.constant 0 : index
    %45 = vector.load %arg6[%c0_17, %c0_18] : memref<96x1xf32, #tpu.memory_space<vmem>>, vector<96x1xf32>
    %c0_19 = arith.constant 0 : index
    %c0_20 = arith.constant 0 : index
    %c0_21 = arith.constant 0 : index
    %46 = vector.load %arg7[%c0_19, %c0_20, %c0_21] : memref<4x8x32xbf16, #tpu.memory_space<vmem>>, vector<4x8x32xbf16>
    %47 = vector.extract_strided_slice %43 {offsets = [0, 0, 0], sizes = [1, 32, 8], strides = [1, 1, 1]} : vector<2x32x8xbf16> to vector<1x32x8xbf16>
    %48 = vector.shape_cast %47 : vector<1x32x8xbf16> to vector<32x8xbf16>
    %cst_22 = arith.constant dense<0.000000e+00> : vector<96x8xf32>
    %49 = tpu.matmul %44, %48, %cst_22 {dimension_numbers = #tpu.dot_dimension_numbers<[1], [0], [0], [1], [0, 0, 1, 1], [], []>} : vector<96x32xbf16>, vector<32x8xbf16>, vector<96x8xf32> -> vector<96x8xf32>
    %50 = vector.broadcast %45 : vector<96x1xf32> to vector<96x8xf32>
    %51 = arith.addf %49, %50 : vector<96x8xf32>
    %52 = vector.shape_cast %51 : vector<96x8xf32> to vector<4x24x8xf32>
    %53 = vector.extract_strided_slice %52 {offsets = [0, 0, 0], sizes = [4, 8, 8], strides = [1, 1, 1]} : vector<4x24x8xf32> to vector<4x8x8xf32>
    %54 = tpu.transpose %53, [0, 2, 1] : vector<4x8x8xf32> -> vector<4x8x8xf32>
    %cst_23 = arith.constant 0.353553385 : f32
    %55 = vector.broadcast %cst_23 : f32 to vector<4x8x8xf32>
    %56 = arith.mulf %54, %55 : vector<4x8x8xf32>
    %57 = vector.extract_strided_slice %52 {offsets = [0, 8, 0], sizes = [4, 8, 8], strides = [1, 1, 1]} : vector<4x24x8xf32> to vector<4x8x8xf32>
    %58 = vector.extract_strided_slice %52 {offsets = [0, 16, 0], sizes = [4, 8, 8], strides = [1, 1, 1]} : vector<4x24x8xf32> to vector<4x8x8xf32>
    %59 = arith.truncf %56 : vector<4x8x8xf32> to vector<4x8x8xbf16>
    %60 = arith.truncf %57 : vector<4x8x8xf32> to vector<4x8x8xbf16>
    "tpu.trace_start"() <{level = 10 : i32, message = "hid,hdj->hij"}> : () -> ()
    %cst_24 = arith.constant dense<0.000000e+00> : vector<4x8x8xf32>
    %61 = tpu.matmul %59, %60, %cst_24 {dimension_numbers = #tpu.dot_dimension_numbers<[2], [1], [1], [2], [0, 0, 0, 1, 1, 2], [0], [0]>} : vector<4x8x8xbf16>, vector<4x8x8xbf16>, vector<4x8x8xf32> -> vector<4x8x8xf32>
    "tpu.trace_stop"() : () -> ()
    %cst_25 = arith.constant dense<0xFF800000> : vector<4x8xf32>
    %62 = vector.multi_reduction <maximumf>, %61, %cst_25 [2] : vector<4x8x8xf32> to vector<4x8xf32>
    %63 = vector.shape_cast %62 : vector<4x8xf32> to vector<4x8x1xf32>
    %64 = vector.broadcast %63 : vector<4x8x1xf32> to vector<4x8x8xf32>
    %65 = arith.subf %61, %64 : vector<4x8x8xf32>
    %66 = math.exp %65 : vector<4x8x8xf32>
    %cst_26 = arith.constant dense<0.000000e+00> : vector<4x8xf32>
    %67 = vector.multi_reduction <add>, %66, %cst_26 [2] : vector<4x8x8xf32> to vector<4x8xf32>
    %68 = vector.shape_cast %67 : vector<4x8xf32> to vector<4x8x1xf32>
    %69 = tpu.reciprocal %68 {approx = true} : vector<4x8x1xf32> -> vector<4x8x1xf32>
    %70 = vector.broadcast %69 : vector<4x8x1xf32> to vector<4x8x8xf32>
    %71 = arith.mulf %66, %70 : vector<4x8x8xf32>
    %72 = arith.truncf %71 : vector<4x8x8xf32> to vector<4x8x8xbf16>
    %73 = arith.truncf %58 : vector<4x8x8xf32> to vector<4x8x8xbf16>
    "tpu.trace_start"() <{level = 10 : i32, message = "hij,hej->hie"}> : () -> ()
    %cst_27 = arith.constant dense<0.000000e+00> : vector<4x8x8xf32>
    %74 = tpu.matmul %72, %73, %cst_27 {dimension_numbers = #tpu.dot_dimension_numbers<[2], [2], [1], [1], [0, 0, 0, 1, 1, 1], [0], [0]>} : vector<4x8x8xbf16>, vector<4x8x8xbf16>, vector<4x8x8xf32> -> vector<4x8x8xf32>
    "tpu.trace_stop"() : () -> ()
    %75 = arith.truncf %74 : vector<4x8x8xf32> to vector<4x8x8xbf16>
    "tpu.trace_start"() <{level = 10 : i32, message = "hte,hec->htc"}> : () -> ()
    %cst_28 = arith.constant dense<0.000000e+00> : vector<4x8x32xf32>
    %76 = tpu.matmul %75, %46, %cst_28 {dimension_numbers = #tpu.dot_dimension_numbers<[2], [1], [1], [2], [0, 0, 0, 1, 1, 2], [0], [0]>} : vector<4x8x8xbf16>, vector<4x8x32xbf16>, vector<4x8x32xf32> -> vector<4x8x32xf32>
    "tpu.trace_stop"() : () -> ()
    %cst_29 = arith.constant dense<0.000000e+00> : vector<8x32xf32>
    %77 = vector.multi_reduction <add>, %76, %cst_29 [0] : vector<4x8x32xf32> to vector<8x32xf32>
    %78 = vector.extract_strided_slice %43 {offsets = [1, 0, 0], sizes = [1, 32, 8], strides = [1, 1, 1]} : vector<2x32x8xbf16> to vector<1x32x8xbf16>
    %79 = vector.shape_cast %78 : vector<1x32x8xbf16> to vector<32x8xbf16>
    %cst_30 = arith.constant dense<0.000000e+00> : vector<96x8xf32>
    %80 = tpu.matmul %44, %79, %cst_30 {dimension_numbers = #tpu.dot_dimension_numbers<[1], [0], [0], [1], [0, 0, 1, 1], [], []>} : vector<96x32xbf16>, vector<32x8xbf16>, vector<96x8xf32> -> vector<96x8xf32>
    %81 = vector.broadcast %45 : vector<96x1xf32> to vector<96x8xf32>
    %82 = arith.addf %80, %81 : vector<96x8xf32>
    %83 = vector.shape_cast %82 : vector<96x8xf32> to vector<4x24x8xf32>
    %84 = vector.extract_strided_slice %83 {offsets = [0, 0, 0], sizes = [4, 8, 8], strides = [1, 1, 1]} : vector<4x24x8xf32> to vector<4x8x8xf32>
    %85 = tpu.transpose %84, [0, 2, 1] : vector<4x8x8xf32> -> vector<4x8x8xf32>
    %cst_31 = arith.constant 0.353553385 : f32
    %86 = vector.broadcast %cst_31 : f32 to vector<4x8x8xf32>
    %87 = arith.mulf %85, %86 : vector<4x8x8xf32>
    %88 = vector.extract_strided_slice %83 {offsets = [0, 8, 0], sizes = [4, 8, 8], strides = [1, 1, 1]} : vector<4x24x8xf32> to vector<4x8x8xf32>
    %89 = vector.extract_strided_slice %83 {offsets = [0, 16, 0], sizes = [4, 8, 8], strides = [1, 1, 1]} : vector<4x24x8xf32> to vector<4x8x8xf32>
    %90 = arith.truncf %87 : vector<4x8x8xf32> to vector<4x8x8xbf16>
    %91 = arith.truncf %88 : vector<4x8x8xf32> to vector<4x8x8xbf16>
    "tpu.trace_start"() <{level = 10 : i32, message = "hid,hdj->hij"}> : () -> ()
    %cst_32 = arith.constant dense<0.000000e+00> : vector<4x8x8xf32>
    %92 = tpu.matmul %90, %91, %cst_32 {dimension_numbers = #tpu.dot_dimension_numbers<[2], [1], [1], [2], [0, 0, 0, 1, 1, 2], [0], [0]>} : vector<4x8x8xbf16>, vector<4x8x8xbf16>, vector<4x8x8xf32> -> vector<4x8x8xf32>
    "tpu.trace_stop"() : () -> ()
    %cst_33 = arith.constant dense<0xFF800000> : vector<4x8xf32>
    %93 = vector.multi_reduction <maximumf>, %92, %cst_33 [2] : vector<4x8x8xf32> to vector<4x8xf32>
    %94 = vector.shape_cast %93 : vector<4x8xf32> to vector<4x8x1xf32>
    %95 = vector.broadcast %94 : vector<4x8x1xf32> to vector<4x8x8xf32>
    %96 = arith.subf %92, %95 : vector<4x8x8xf32>
    %97 = math.exp %96 : vector<4x8x8xf32>
    %cst_34 = arith.constant dense<0.000000e+00> : vector<4x8xf32>
    %98 = vector.multi_reduction <add>, %97, %cst_34 [2] : vector<4x8x8xf32> to vector<4x8xf32>
    %99 = vector.shape_cast %98 : vector<4x8xf32> to vector<4x8x1xf32>
    %100 = tpu.reciprocal %99 {approx = true} : vector<4x8x1xf32> -> vector<4x8x1xf32>
    %101 = vector.broadcast %100 : vector<4x8x1xf32> to vector<4x8x8xf32>
    %102 = arith.mulf %97, %101 : vector<4x8x8xf32>
    %103 = arith.truncf %102 : vector<4x8x8xf32> to vector<4x8x8xbf16>
    %104 = arith.truncf %89 : vector<4x8x8xf32> to vector<4x8x8xbf16>
    "tpu.trace_start"() <{level = 10 : i32, message = "hij,hej->hie"}> : () -> ()
    %cst_35 = arith.constant dense<0.000000e+00> : vector<4x8x8xf32>
    %105 = tpu.matmul %103, %104, %cst_35 {dimension_numbers = #tpu.dot_dimension_numbers<[2], [2], [1], [1], [0, 0, 0, 1, 1, 1], [0], [0]>} : vector<4x8x8xbf16>, vector<4x8x8xbf16>, vector<4x8x8xf32> -> vector<4x8x8xf32>
    "tpu.trace_stop"() : () -> ()
    %106 = arith.truncf %105 : vector<4x8x8xf32> to vector<4x8x8xbf16>
    "tpu.trace_start"() <{level = 10 : i32, message = "hte,hec->htc"}> : () -> ()
    %cst_36 = arith.constant dense<0.000000e+00> : vector<4x8x32xf32>
    %107 = tpu.matmul %106, %46, %cst_36 {dimension_numbers = #tpu.dot_dimension_numbers<[2], [1], [1], [2], [0, 0, 0, 1, 1, 2], [0], [0]>} : vector<4x8x8xbf16>, vector<4x8x32xbf16>, vector<4x8x32xf32> -> vector<4x8x32xf32>
    "tpu.trace_stop"() : () -> ()
    %cst_37 = arith.constant dense<0.000000e+00> : vector<8x32xf32>
    %108 = vector.multi_reduction <add>, %107, %cst_37 [0] : vector<4x8x32xf32> to vector<8x32xf32>
    %109 = vector.shape_cast %77 : vector<8x32xf32> to vector<1x8x32xf32>
    %110 = vector.shape_cast %108 : vector<8x32xf32> to vector<1x8x32xf32>
    %111 = tpu.concatenate %109, %110 in 0 : vector<1x8x32xf32>, vector<1x8x32xf32> -> vector<2x8x32xf32>
    %c0_38 = arith.constant 0 : index
    %c0_39 = arith.constant 0 : index
    %112 = vector.load %arg8[%c0_38, %c0_39] : memref<1x32xf32, #tpu.memory_space<vmem>>, vector<1x32xf32>
    %113 = vector.shape_cast %112 : vector<1x32xf32> to vector<1x1x32xf32>
    %114 = vector.broadcast %113 : vector<1x1x32xf32> to vector<2x8x32xf32>
    %115 = arith.addf %111, %114 : vector<2x8x32xf32>
    %116 = vector.broadcast %4 : vector<2x1x32xf32> to vector<2x8x32xf32>
    %117 = arith.mulf %116, %115 : vector<2x8x32xf32>
    %118 = arith.addf %0, %117 : vector<2x8x32xf32>
    %c0_40 = arith.constant 0 : index
    %c0_41 = arith.constant 0 : index
    %119 = vector.load %arg9[%c0_40, %c0_41] : memref<1x32xf32, #tpu.memory_space<vmem>>, vector<1x32xf32>
    %c0_42 = arith.constant 0 : index
    %c0_43 = arith.constant 0 : index
    %120 = vector.load %arg10[%c0_42, %c0_43] : memref<1x32xf32, #tpu.memory_space<vmem>>, vector<1x32xf32>
    %cst_44 = arith.constant dense<0.000000e+00> : vector<2x8xf32>
    %121 = vector.multi_reduction <add>, %118, %cst_44 [2] : vector<2x8x32xf32> to vector<2x8xf32>
    %122 = vector.shape_cast %121 : vector<2x8xf32> to vector<2x8x1xf32>
    %cst_45 = arith.constant 3.200000e+01 : f32
    %123 = vector.broadcast %cst_45 : f32 to vector<2x8x1xf32>
    %124 = arith.divf %122, %123 : vector<2x8x1xf32>
    %125 = arith.mulf %118, %118 : vector<2x8x32xf32>
    %cst_46 = arith.constant dense<0.000000e+00> : vector<2x8xf32>
    %126 = vector.multi_reduction <add>, %125, %cst_46 [2] : vector<2x8x32xf32> to vector<2x8xf32>
    %127 = vector.shape_cast %126 : vector<2x8xf32> to vector<2x8x1xf32>
    %cst_47 = arith.constant 3.200000e+01 : f32
    %128 = vector.broadcast %cst_47 : f32 to vector<2x8x1xf32>
    %129 = arith.divf %127, %128 : vector<2x8x1xf32>
    %130 = arith.mulf %124, %124 : vector<2x8x1xf32>
    %131 = arith.subf %129, %130 : vector<2x8x1xf32>
    %cst_48 = arith.constant 0.000000e+00 : f32
    %132 = vector.broadcast %cst_48 : f32 to vector<2x8x1xf32>
    %133 = arith.maximumf %131, %132 : vector<2x8x1xf32>
    %134 = vector.broadcast %124 : vector<2x8x1xf32> to vector<2x8x32xf32>
    %135 = arith.subf %118, %134 : vector<2x8x32xf32>
    %cst_49 = arith.constant 9.99999974E-6 : f32
    %136 = vector.broadcast %cst_49 : f32 to vector<2x8x1xf32>
    %137 = arith.addf %133, %136 : vector<2x8x1xf32>
    %138 = math.rsqrt %137 : vector<2x8x1xf32>
    %139 = vector.broadcast %138 : vector<2x8x1xf32> to vector<2x8x32xf32>
    %140 = arith.mulf %135, %139 : vector<2x8x32xf32>
    %141 = vector.shape_cast %119 : vector<1x32xf32> to vector<1x1x32xf32>
    %142 = vector.broadcast %141 : vector<1x1x32xf32> to vector<2x8x32xf32>
    %143 = arith.mulf %140, %142 : vector<2x8x32xf32>
    %144 = vector.shape_cast %120 : vector<1x32xf32> to vector<1x1x32xf32>
    %145 = vector.broadcast %144 : vector<1x1x32xf32> to vector<2x8x32xf32>
    %146 = arith.addf %143, %145 : vector<2x8x32xf32>
    %cst_50 = arith.constant 1.000000e+00 : f32
    %147 = vector.broadcast %cst_50 : f32 to vector<2x1x32xf32>
    %148 = arith.addf %147, %6 : vector<2x1x32xf32>
    %149 = vector.broadcast %148 : vector<2x1x32xf32> to vector<2x8x32xf32>
    %150 = arith.mulf %146, %149 : vector<2x8x32xf32>
    %151 = vector.broadcast %5 : vector<2x1x32xf32> to vector<2x8x32xf32>
    %152 = arith.addf %150, %151 : vector<2x8x32xf32>
    %153 = vector.shape_cast %152 : vector<2x8x32xf32> to vector<16x32xf32>
    %154 = arith.truncf %153 : vector<16x32xf32> to vector<16x32xbf16>
    %c0_51 = arith.constant 0 : index
    %c0_52 = arith.constant 0 : index
    %155 = vector.load %arg11[%c0_51, %c0_52] : memref<32x128xbf16, #tpu.memory_space<vmem>>, vector<32x128xbf16>
    %cst_53 = arith.constant dense<0.000000e+00> : vector<16x128xf32>
    %156 = tpu.matmul %154, %155, %cst_53 {dimension_numbers = #tpu.dot_dimension_numbers<[1], [0], [0], [1], [0, 0, 1, 1], [], []>} : vector<16x32xbf16>, vector<32x128xbf16>, vector<16x128xf32> -> vector<16x128xf32>
    %c0_54 = arith.constant 0 : index
    %c0_55 = arith.constant 0 : index
    %157 = vector.load %arg12[%c0_54, %c0_55] : memref<1x128xf32, #tpu.memory_space<vmem>>, vector<1x128xf32>
    %158 = vector.broadcast %157 : vector<1x128xf32> to vector<16x128xf32>
    %159 = arith.addf %156, %158 : vector<16x128xf32>
    %160 = arith.mulf %159, %159 : vector<16x128xf32>
    %161 = arith.mulf %159, %160 : vector<16x128xf32>
    %cst_56 = arith.constant 4.471500e-02 : f32
    %162 = vector.broadcast %cst_56 : f32 to vector<16x128xf32>
    %163 = arith.mulf %162, %161 : vector<16x128xf32>
    %164 = arith.addf %159, %163 : vector<16x128xf32>
    %cst_57 = arith.constant 0.797884583 : f32
    %165 = vector.broadcast %cst_57 : f32 to vector<16x128xf32>
    %166 = arith.mulf %165, %164 : vector<16x128xf32>
    %167 = math.tanh %166 : vector<16x128xf32>
    %cst_58 = arith.constant 1.000000e+00 : f32
    %168 = vector.broadcast %cst_58 : f32 to vector<16x128xf32>
    %169 = arith.addf %168, %167 : vector<16x128xf32>
    %cst_59 = arith.constant 5.000000e-01 : f32
    %170 = vector.broadcast %cst_59 : f32 to vector<16x128xf32>
    %171 = arith.mulf %170, %169 : vector<16x128xf32>
    %172 = arith.mulf %159, %171 : vector<16x128xf32>
    %173 = arith.truncf %172 : vector<16x128xf32> to vector<16x128xbf16>
    %c0_60 = arith.constant 0 : index
    %c0_61 = arith.constant 0 : index
    %174 = vector.load %arg13[%c0_60, %c0_61] : memref<128x32xbf16, #tpu.memory_space<vmem>>, vector<128x32xbf16>
    %cst_62 = arith.constant dense<0.000000e+00> : vector<16x32xf32>
    %175 = tpu.matmul %173, %174, %cst_62 {dimension_numbers = #tpu.dot_dimension_numbers<[1], [0], [0], [1], [0, 0, 1, 1], [], []>} : vector<16x128xbf16>, vector<128x32xbf16>, vector<16x32xf32> -> vector<16x32xf32>
    %c0_63 = arith.constant 0 : index
    %c0_64 = arith.constant 0 : index
    %176 = vector.load %arg14[%c0_63, %c0_64] : memref<1x32xf32, #tpu.memory_space<vmem>>, vector<1x32xf32>
    %177 = vector.broadcast %176 : vector<1x32xf32> to vector<16x32xf32>
    %178 = arith.addf %175, %177 : vector<16x32xf32>
    %179 = vector.shape_cast %178 : vector<16x32xf32> to vector<2x8x32xf32>
    %180 = vector.broadcast %7 : vector<2x1x32xf32> to vector<2x8x32xf32>
    %181 = arith.mulf %180, %179 : vector<2x8x32xf32>
    %182 = arith.addf %118, %181 : vector<2x8x32xf32>
    %c0_65 = arith.constant 0 : index
    %c0_66 = arith.constant 0 : index
    %c0_67 = arith.constant 0 : index
    %183 = vector.load %arg15[%c0_65, %c0_66, %c0_67] : memref<2x8x32xf32, #tpu.memory_space<vmem>>, vector<2x8x32xf32>
    tpu.vector_store %arg15[%c0_65, %c0_66, %c0_67], %182 {strides = array<i32>} : memref<2x8x32xf32, #tpu.memory_space<vmem>>, vector<2x8x32xf32>,
    return
  }
  func.func @transform_0(%arg0: i32) -> (i32, i32, i32) {
    %c0_i32 = arith.constant 0 : i32
    %c0_i32_0 = arith.constant 0 : i32
    %c0_i32_1 = arith.constant 0 : i32
    return %arg0, %c0_i32, %c0_i32_0 : i32, i32, i32
  }
  func.func @transform_1(%arg0: i32) -> (i32, i32, i32) {
    %c0_i32 = arith.constant 0 : i32
    %c0_i32_0 = arith.constant 0 : i32
    %c0_i32_1 = arith.constant 0 : i32
    return %arg0, %c0_i32, %c0_i32_0 : i32, i32, i32
  }
  func.func @transform_2(%arg0: i32) -> (i32, i32) {
    %c0_i32 = arith.constant 0 : i32
    %c0_i32_0 = arith.constant 0 : i32
    %c0_i32_1 = arith.constant 0 : i32
    return %c0_i32, %c0_i32_0 : i32, i32
  }
  func.func @transform_3(%arg0: i32) -> (i32, i32) {
    %c0_i32 = arith.constant 0 : i32
    %c0_i32_0 = arith.constant 0 : i32
    %c0_i32_1 = arith.constant 0 : i32
    return %c0_i32, %c0_i32_0 : i32, i32
  }
  func.func @transform_4(%arg0: i32) -> (i32, i32) {
    %c0_i32 = arith.constant 0 : i32
    %c0_i32_0 = arith.constant 0 : i32
    %c0_i32_1 = arith.constant 0 : i32
    return %c0_i32, %c0_i32_0 : i32, i32
  }
  func.func @transform_5(%arg0: i32) -> (i32, i32) {
    %c0_i32 = arith.constant 0 : i32
    %c0_i32_0 = arith.constant 0 : i32
    %c0_i32_1 = arith.constant 0 : i32
    return %c0_i32, %c0_i32_0 : i32, i32
  }
  func.func @transform_6(%arg0: i32) -> (i32, i32, i32) {
    %c0_i32 = arith.constant 0 : i32
    %c0_i32_0 = arith.constant 0 : i32
    %c0_i32_1 = arith.constant 0 : i32
    %c0_i32_2 = arith.constant 0 : i32
    return %c0_i32, %c0_i32_0, %c0_i32_1 : i32, i32, i32
  }
  func.func @transform_7(%arg0: i32) -> (i32, i32) {
    %c0_i32 = arith.constant 0 : i32
    %c0_i32_0 = arith.constant 0 : i32
    %c0_i32_1 = arith.constant 0 : i32
    return %c0_i32, %c0_i32_0 : i32, i32
  }
  func.func @transform_8(%arg0: i32) -> (i32, i32) {
    %c0_i32 = arith.constant 0 : i32
    %c0_i32_0 = arith.constant 0 : i32
    %c0_i32_1 = arith.constant 0 : i32
    return %c0_i32, %c0_i32_0 : i32, i32
  }
  func.func @transform_9(%arg0: i32) -> (i32, i32) {
    %c0_i32 = arith.constant 0 : i32
    %c0_i32_0 = arith.constant 0 : i32
    %c0_i32_1 = arith.constant 0 : i32
    return %c0_i32, %c0_i32_0 : i32, i32
  }
  func.func @transform_10(%arg0: i32) -> (i32, i32) {
    %c0_i32 = arith.constant 0 : i32
    %c0_i32_0 = arith.constant 0 : i32
    %c0_i32_1 = arith.constant 0 : i32
    return %c0_i32, %c0_i32_0 : i32, i32
  }
  func.func @transform_11(%arg0: i32) -> (i32, i32) {
    %c0_i32 = arith.constant 0 : i32
    %c0_i32_0 = arith.constant 0 : i32
    %c0_i32_1 = arith.constant 0 : i32
    return %c0_i32, %c0_i32_0 : i32, i32
  }
  func.func @transform_12(%arg0: i32) -> (i32, i32) {
    %c0_i32 = arith.constant 0 : i32
    %c0_i32_0 = arith.constant 0 : i32
    %c0_i32_1 = arith.constant 0 : i32
    return %c0_i32, %c0_i32_0 : i32, i32
  }
  func.func @transform_13(%arg0: i32) -> (i32, i32) {
    %c0_i32 = arith.constant 0 : i32
    %c0_i32_0 = arith.constant 0 : i32
    %c0_i32_1 = arith.constant 0 : i32
    return %c0_i32, %c0_i32_0 : i32, i32
  }
  func.func @transform_14(%arg0: i32) -> (i32, i32, i32) {
    %c0_i32 = arith.constant 0 : i32
    %c0_i32_0 = arith.constant 0 : i32
    %c0_i32_1 = arith.constant 0 : i32
    return %arg0, %c0_i32, %c0_i32_0 : i32, i32, i32
  }
}

module attributes {stable_mosaic.version = 11 : i64} {
  func.func @block_kernel(%arg0: i32, %arg1: memref<2x8x32xf32, #tpu.memory_space<vmem>>, %arg2: memref<2x6x32xf32, #tpu.memory_space<vmem>>, %arg3: memref<1x32xf32, #tpu.memory_space<vmem>>, %arg4: memref<1x32xf32, #tpu.memory_space<vmem>>, %arg5: memref<96x32xbf16, #tpu.memory_space<vmem>>, %arg6: memref<96x1xf32, #tpu.memory_space<vmem>>, %arg7: memref<4x8x32xbf16, #tpu.memory_space<vmem>>, %arg8: memref<1x32xf32, #tpu.memory_space<vmem>>, %arg9: memref<1x32xf32, #tpu.memory_space<vmem>>, %arg10: memref<1x32xf32, #tpu.memory_space<vmem>>, %arg11: memref<32x128xbf16, #tpu.memory_space<vmem>>, %arg12: memref<1x128xf32, #tpu.memory_space<vmem>>, %arg13: memref<128x32xbf16, #tpu.memory_space<vmem>>, %arg14: memref<1x32xf32, #tpu.memory_space<vmem>>, %arg15: memref<2x8x32xf32, #tpu.memory_space<vmem>>) attributes {dimension_semantics = [#tpu.dimension_semantics<parallel>], iteration_bounds = array<i64: 1>, scalar_prefetch = 0 : i64, scratch_operands = 0 : i64, tpu.core_type = #tpu.core_type<tc>, window_params = [{transform_indices = @transform_0, window_bounds = array<i64: 2, 8, 32>}, {transform_indices = @transform_1, window_bounds = array<i64: 2, 6, 32>}, {pipeline_mode = #tpu.pipeline_mode<synchronous>, transform_indices = @transform_2, window_bounds = array<i64: 1, 32>}, {pipeline_mode = #tpu.pipeline_mode<synchronous>, transform_indices = @transform_3, window_bounds = array<i64: 1, 32>}, {pipeline_mode = #tpu.pipeline_mode<synchronous>, transform_indices = @transform_4, window_bounds = array<i64: 96, 32>}, {pipeline_mode = #tpu.pipeline_mode<synchronous>, transform_indices = @transform_5, window_bounds = array<i64: 96, 1>}, {pipeline_mode = #tpu.pipeline_mode<synchronous>, transform_indices = @transform_6, window_bounds = array<i64: 4, 8, 32>}, {pipeline_mode = #tpu.pipeline_mode<synchronous>, transform_indices = @transform_7, window_bounds = array<i64: 1, 32>}, {pipeline_mode = #tpu.pipeline_mode<synchronous>, transform_indices = @transform_8, window_bounds = array<i64: 1, 32>}, {pipeline_mode = #tpu.pipeline_mode<synchronous>, transform_indices = @transform_9, window_bounds = array<i64: 1, 32>}, {pipeline_mode = #tpu.pipeline_mode<synchronous>, transform_indices = @transform_10, window_bounds = array<i64: 32, 128>}, {pipeline_mode = #tpu.pipeline_mode<synchronous>, transform_indices = @transform_11, window_bounds = array<i64: 1, 128>}, {pipeline_mode = #tpu.pipeline_mode<synchronous>, transform_indices = @transform_12, window_bounds = array<i64: 128, 32>}, {pipeline_mode = #tpu.pipeline_mode<synchronous>, transform_indices = @transform_13, window_bounds = array<i64: 1, 32>}, {transform_indices = @transform_14, window_bounds = array<i64: 2, 8, 32>}]} {
    %c0 = arith.constant 0 : index
    %c0_0 = arith.constant 0 : index
    %c0_1 = arith.constant 0 : index
    %0 = vector.load %arg1[%c0, %c0_0, %c0_1] : memref<2x8x32xf32, #tpu.memory_space<vmem>>, vector<2x8x32xf32>
    %c0_2 = arith.constant 0 : index
    %c0_3 = arith.constant 0 : index
    %c0_4 = arith.constant 0 : index
    %1 = vector.load %arg2[%c0_2, %c0_3, %c0_4] : memref<2x6x32xf32, #tpu.memory_space<vmem>>, vector<2x6x32xf32>
    %2 = vector.extract_strided_slice %1 {offsets = [0, 0, 0], sizes = [2, 1, 32], strides = [1, 1, 1]} : vector<2x6x32xf32> to vector<2x1x32xf32>
    %3 = vector.extract_strided_slice %1 {offsets = [0, 1, 0], sizes = [2, 1, 32], strides = [1, 1, 1]} : vector<2x6x32xf32> to vector<2x1x32xf32>
    %4 = vector.extract_strided_slice %1 {offsets = [0, 2, 0], sizes = [2, 1, 32], strides = [1, 1, 1]} : vector<2x6x32xf32> to vector<2x1x32xf32>
    %5 = vector.extract_strided_slice %1 {offsets = [0, 3, 0], sizes = [2, 1, 32], strides = [1, 1, 1]} : vector<2x6x32xf32> to vector<2x1x32xf32>
    %6 = vector.extract_strided_slice %1 {offsets = [0, 4, 0], sizes = [2, 1, 32], strides = [1, 1, 1]} : vector<2x6x32xf32> to vector<2x1x32xf32>
    %7 = vector.extract_strided_slice %1 {offsets = [0, 5, 0], sizes = [2, 1, 32], strides = [1, 1, 1]} : vector<2x6x32xf32> to vector<2x1x32xf32>
    %c0_5 = arith.constant 0 : index
    %c0_6 = arith.constant 0 : index
    %8 = vector.load %arg3[%c0_5, %c0_6] : memref<1x32xf32, #tpu.memory_space<vmem>>, vector<1x32xf32>
    %c0_7 = arith.constant 0 : index
    %c0_8 = arith.constant 0 : index
    %9 = vector.load %arg4[%c0_7, %c0_8] : memref<1x32xf32, #tpu.memory_space<vmem>>, vector<1x32xf32>
    %cst = arith.constant dense<0.000000e+00> : vector<2x8xf32>
    %10 = vector.multi_reduction <add>, %0, %cst [2] : vector<2x8x32xf32> to vector<2x8xf32>
    %11 = vector.shape_cast %10 : vector<2x8xf32> to vector<2x8x1xf32>
    %cst_9 = arith.constant 3.200000e+01 : f32
    %12 = vector.broadcast %cst_9 : f32 to vector<2x8x1xf32>
    %13 = arith.divf %11, %12 : vector<2x8x1xf32>
    %14 = arith.mulf %0, %0 : vector<2x8x32xf32>
    %cst_10 = arith.constant dense<0.000000e+00> : vector<2x8xf32>
    %15 = vector.multi_reduction <add>, %14, %cst_10 [2] : vector<2x8x32xf32> to vector<2x8xf32>
    %16 = vector.shape_cast %15 : vector<2x8xf32> to vector<2x8x1xf32>
    %cst_11 = arith.constant 3.200000e+01 : f32
    %17 = vector.broadcast %cst_11 : f32 to vector<2x8x1xf32>
    %18 = arith.divf %16, %17 : vector<2x8x1xf32>
    %19 = arith.mulf %13, %13 : vector<2x8x1xf32>
    %20 = arith.subf %18, %19 : vector<2x8x1xf32>
    %cst_12 = arith.constant 0.000000e+00 : f32
    %21 = vector.broadcast %cst_12 : f32 to vector<2x8x1xf32>
    %22 = arith.maximumf %20, %21 : vector<2x8x1xf32>
    %23 = vector.broadcast %13 : vector<2x8x1xf32> to vector<2x8x32xf32>
    %24 = arith.subf %0, %23 : vector<2x8x32xf32>
    %cst_13 = arith.constant 9.99999974E-6 : f32
    %25 = vector.broadcast %cst_13 : f32 to vector<2x8x1xf32>
    %26 = arith.addf %22, %25 : vector<2x8x1xf32>
    %27 = math.rsqrt %26 : vector<2x8x1xf32>
    %28 = vector.broadcast %27 : vector<2x8x1xf32> to vector<2x8x32xf32>
    %29 = arith.mulf %24, %28 : vector<2x8x32xf32>
    %30 = vector.shape_cast %8 : vector<1x32xf32> to vector<1x1x32xf32>
    %31 = vector.broadcast %30 : vector<1x1x32xf32> to vector<2x8x32xf32>
    %32 = arith.mulf %29, %31 : vector<2x8x32xf32>
    %33 = vector.shape_cast %9 : vector<1x32xf32> to vector<1x1x32xf32>
    %34 = vector.broadcast %33 : vector<1x1x32xf32> to vector<2x8x32xf32>
    %35 = arith.addf %32, %34 : vector<2x8x32xf32>
    %cst_14 = arith.constant 1.000000e+00 : f32
    %36 = vector.broadcast %cst_14 : f32 to vector<2x1x32xf32>
    %37 = arith.addf %36, %3 : vector<2x1x32xf32>
    %38 = vector.broadcast %37 : vector<2x1x32xf32> to vector<2x8x32xf32>
    %39 = arith.mulf %35, %38 : vector<2x8x32xf32>
    %40 = vector.broadcast %2 : vector<2x1x32xf32> to vector<2x8x32xf32>
    %41 = arith.addf %39, %40 : vector<2x8x32xf32>
    %42 = tpu.transpose %41, [0, 2, 1] : vector<2x8x32xf32> -> vector<2x32x8xf32>
    %43 = arith.truncf %42 : vector<2x32x8xf32> to vector<2x32x8xbf16>
    %c0_15 = arith.constant 0 : index
    %c0_16 = arith.constant 0 : index
    %44 = vector.load %arg5[%c0_15, %c0_16] : memref<96x32xbf16, #tpu.memory_space<vmem>>, vector<96x32xbf16>
    %c0_17 = arith.constant 0 : index
    %c0_18 = arith.constant 0 : index
    %45 = vector.load %arg6[%c0_17, %c0_18] : memref<96x1xf32, #tpu.memory_space<vmem>>, vector<96x1xf32>
    %c0_19 = arith.constant 0 : index
    %c0_20 = arith.constant 0 : index
    %c0_21 = arith.constant 0 : index
    %46 = vector.load %arg7[%c0_19, %c0_20, %c0_21] : memref<4x8x32xbf16, #tpu.memory_space<vmem>>, vector<4x8x32xbf16>
    %47 = vector.extract_strided_slice %43 {offsets = [0, 0, 0], sizes = [1, 32, 8], strides = [1, 1, 1]} : vector<2x32x8xbf16> to vector<1x32x8xbf16>
    %48 = vector.shape_cast %47 : vector<1x32x8xbf16> to vector<32x8xbf16>
    %cst_22 = arith.constant dense<0.000000e+00> : vector<96x8xf32>
    %49 = tpu.matmul %44, %48, %cst_22 {dimension_numbers = #tpu.dot_dimension_numbers<[1], [0], [0], [1], [0, 0, 1, 1], [], []>} : vector<96x32xbf16>, vector<32x8xbf16>, vector<96x8xf32> -> vector<96x8xf32>
    %50 = vector.broadcast %45 : vector<96x1xf32> to vector<96x8xf32>
    %51 = arith.addf %49, %50 : vector<96x8xf32>
    %52 = vector.shape_cast %51 : vector<96x8xf32> to vector<4x24x8xf32>
    %53 = vector.extract_strided_slice %52 {offsets = [0, 0, 0], sizes = [4, 8, 8], strides = [1, 1, 1]} : vector<4x24x8xf32> to vector<4x8x8xf32>
    %54 = tpu.transpose %53, [0, 2, 1] : vector<4x8x8xf32> -> vector<4x8x8xf32>
    %cst_23 = arith.constant 0.353553385 : f32
    %55 = vector.broadcast %cst_23 : f32 to vector<4x8x8xf32>
    %56 = arith.mulf %54, %55 : vector<4x8x8xf32>
    %57 = vector.extract_strided_slice %52 {offsets = [0, 8, 0], sizes = [4, 8, 8], strides = [1, 1, 1]} : vector<4x24x8xf32> to vector<4x8x8xf32>
    %58 = vector.extract_strided_slice %52 {offsets = [0, 16, 0], sizes = [4, 8, 8], strides = [1, 1, 1]} : vector<4x24x8xf32> to vector<4x8x8xf32>
    %59 = arith.truncf %56 : vector<4x8x8xf32> to vector<4x8x8xbf16>
    %60 = arith.truncf %57 : vector<4x8x8xf32> to vector<4x8x8xbf16>
    "tpu.trace_start"() <{level = 10 : i32, message = "hid,hdj->hij"}> : () -> ()
    %cst_24 = arith.constant dense<0.000000e+00> : vector<4x8x8xf32>
    %61 = tpu.matmul %59, %60, %cst_24 {dimension_numbers = #tpu.dot_dimension_numbers<[2], [1], [1], [2], [0, 0, 0, 1, 1, 2], [0], [0]>} : vector<4x8x8xbf16>, vector<4x8x8xbf16>, vector<4x8x8xf32> -> vector<4x8x8xf32>
    "tpu.trace_stop"() : () -> ()
    %cst_25 = arith.constant dense<0xFF800000> : vector<4x8xf32>
    %62 = vector.multi_reduction <maximumf>, %61, %cst_25 [2] : vector<4x8x8xf32> to vector<4x8xf32>
    %63 = vector.shape_cast %62 : vector<4x8xf32> to vector<4x8x1xf32>
    %64 = vector.broadcast %63 : vector<4x8x1xf32> to vector<4x8x8xf32>
    %65 = arith.subf %61, %64 : vector<4x8x8xf32>
    %66 = math.exp %65 : vector<4x8x8xf32>
    %cst_26 = arith.constant dense<0.000000e+00> : vector<4x8xf32>
    %67 = vector.multi_reduction <add>, %66, %cst_26 [2] : vector<4x8x8xf32> to vector<4x8xf32>
    %68 = vector.shape_cast %67 : vector<4x8xf32> to vector<4x8x1xf32>
    %69 = tpu.reciprocal %68 {approx = true} : vector<4x8x1xf32> -> vector<4x8x1xf32>
    %70 = vector.broadcast %69 : vector<4x8x1xf32> to vector<4x8x8xf32>
    %71 = arith.mulf %66, %70 : vector<4x8x8xf32>
    %72 = arith.truncf %71 : vector<4x8x8xf32> to vector<4x8x8xbf16>
    %73 = arith.truncf %58 : vector<4x8x8xf32> to vector<4x8x8xbf16>
    "tpu.trace_start"() <{level = 10 : i32, message = "hij,hej->hie"}> : () -> ()
    %cst_27 = arith.constant dense<0.000000e+00> : vector<4x8x8xf32>
    %74 = tpu.matmul %72, %73, %cst_27 {dimension_numbers = #tpu.dot_dimension_numbers<[2], [2], [1], [1], [0, 0, 0, 1, 1, 1], [0], [0]>} : vector<4x8x8xbf16>, vector<4x8x8xbf16>, vector<4x8x8xf32> -> vector<4x8x8xf32>
    "tpu.trace_stop"() : () -> ()
    %75 = arith.truncf %74 : vector<4x8x8xf32> to vector<4x8x8xbf16>
    "tpu.trace_start"() <{level = 10 : i32, message = "hte,hec->htc"}> : () -> ()
    %cst_28 = arith.constant dense<0.000000e+00> : vector<4x8x32xf32>
    %76 = tpu.matmul %75, %46, %cst_28 {dimension_numbers = #tpu.dot_dimension_numbers<[2], [1], [1], [2], [0, 0, 0, 1, 1, 2], [0], [0]>} : vector<4x8x8xbf16>, vector<4x8x32xbf16>, vector<4x8x32xf32> -> vector<4x8x32xf32>
    "tpu.trace_stop"() : () -> ()
    %cst_29 = arith.constant dense<0.000000e+00> : vector<8x32xf32>
    %77 = vector.multi_reduction <add>, %76, %cst_29 [0] : vector<4x8x32xf32> to vector<8x32xf32>
    %78 = vector.extract_strided_slice %43 {offsets = [1, 0, 0], sizes = [1, 32, 8], strides = [1, 1, 1]} : vector<2x32x8xbf16> to vector<1x32x8xbf16>
    %79 = vector.shape_cast %78 : vector<1x32x8xbf16> to vector<32x8xbf16>
    %cst_30 = arith.constant dense<0.000000e+00> : vector<96x8xf32>
    %80 = tpu.matmul %44, %79, %cst_30 {dimension_numbers = #tpu.dot_dimension_numbers<[1], [0], [0], [1], [0, 0, 1, 1], [], []>} : vector<96x32xbf16>, vector<32x8xbf16>, vector<96x8xf32> -> vector<96x8xf32>
    %81 = vector.broadcast %45 : vector<96x1xf32> to vector<96x8xf32>
    %82 = arith.addf %80, %81 : vector<96x8xf32>
    %83 = vector.shape_cast %82 : vector<96x8xf32> to vector<4x24x8xf32>
    %84 = vector.extract_strided_slice %83 {offsets = [0, 0, 0], sizes = [4, 8, 8], strides = [1, 1, 1]} : vector<4x24x8xf32> to vector<4x8x8xf32>
    %85 = tpu.transpose %84, [0, 2, 1] : vector<4x8x8xf32> -> vector<4x8x8xf32>
    %cst_31 = arith.constant 0.353553385 : f32
    %86 = vector.broadcast %cst_31 : f32 to vector<4x8x8xf32>
    %87 = arith.mulf %85, %86 : vector<4x8x8xf32>
    %88 = vector.extract_strided_slice %83 {offsets = [0, 8, 0], sizes = [4, 8, 8], strides = [1, 1, 1]} : vector<4x24x8xf32> to vector<4x8x8xf32>
    %89 = vector.extract_strided_slice %83 {offsets = [0, 16, 0], sizes = [4, 8, 8], strides = [1, 1, 1]} : vector<4x24x8xf32> to vector<4x8x8xf32>
    %90 = arith.truncf %87 : vector<4x8x8xf32> to vector<4x8x8xbf16>
    %91 = arith.truncf %88 : vector<4x8x8xf32> to vector<4x8x8xbf16>
    "tpu.trace_start"() <{level = 10 : i32, message = "hid,hdj->hij"}> : () -> ()
    %cst_32 = arith.constant dense<0.000000e+00> : vector<4x8x8xf32>
    %92 = tpu.matmul %90, %91, %cst_32 {dimension_numbers = #tpu.dot_dimension_numbers<[2], [1], [1], [2], [0, 0, 0, 1, 1, 2], [0], [0]>} : vector<4x8x8xbf16>, vector<4x8x8xbf16>, vector<4x8x8xf32> -> vector<4x8x8xf32>
    "tpu.trace_stop"() : () -> ()
    %cst_33 = arith.constant dense<0xFF800000> : vector<4x8xf32>
    %93 = vector.multi_reduction <maximumf>, %92, %cst_33 [2] : vector<4x8x8xf32> to vector<4x8xf32>
    %94 = vector.shape_cast %93 : vector<4x8xf32> to vector<4x8x1xf32>
    %95 = vector.broadcast %94 : vector<4x8x1xf32> to vector<4x8x8xf32>
    %96 = arith.subf %92, %95 : vector<4x8x8xf32>
    %97 = math.exp %96 : vector<4x8x8xf32>
    %cst_34 = arith.constant dense<0.000000e+00> : vector<4x8xf32>
    %98 = vector.multi_reduction <add>, %97, %cst_34 [2] : vector<4x8x8xf32> to vector<4x8xf32>
    %99 = vector.shape_cast %98 : vector<4x8xf32> to vector<4x8x1xf32>
    %100 = tpu.reciprocal %99 {approx = true} : vector<4x8x1xf32> -> vector<4x8x1xf32>
    %101 = vector.broadcast %100 : vector<4x8x1xf32> to vector<4x8x8xf32>
    %102 = arith.mulf %97, %101 : vector<4x8x8xf32>
    %103 = arith.truncf %102 : vector<4x8x8xf32> to vector<4x8x8xbf16>
    %104 = arith.truncf %89 : vector<4x8x8xf32> to vector<4x8x8xbf16>
    "tpu.trace_start"() <{level = 10 : i32, message = "hij,hej->hie"}> : () -> ()
    %cst_35 = arith.constant dense<0.000000e+00> : vector<4x8x8xf32>
    %105 = tpu.matmul %103, %104, %cst_35 {dimension_numbers = #tpu.dot_dimension_numbers<[2], [2], [1], [1], [0, 0, 0, 1, 1, 1], [0], [0]>} : vector<4x8x8xbf16>, vector<4x8x8xbf16>, vector<4x8x8xf32> -> vector<4x8x8xf32>
    "tpu.trace_stop"() : () -> ()
    %106 = arith.truncf %105 : vector<4x8x8xf32> to vector<4x8x8xbf16>
    "tpu.trace_start"() <{level = 10 : i32, message = "hte,hec->htc"}> : () -> ()
    %cst_36 = arith.constant dense<0.000000e+00> : vector<4x8x32xf32>
    %107 = tpu.matmul %106, %46, %cst_36 {dimension_numbers = #tpu.dot_dimension_numbers<[2], [1], [1], [2], [0, 0, 0, 1, 1, 2], [0], [0]>} : vector<4x8x8xbf16>, vector<4x8x32xbf16>, vector<4x8x32xf32> -> vector<4x8x32xf32>
    "tpu.trace_stop"() : () -> ()
    %cst_37 = arith.constant dense<0.000000e+00> : vector<8x32xf32>
    %108 = vector.multi_reduction <add>, %107, %cst_37 [0] : vector<4x8x32xf32> to vector<8x32xf32>
    %109 = vector.shape_cast %77 : vector<8x32xf32> to vector<1x8x32xf32>
    %110 = vector.shape_cast %108 : vector<8x32xf32> to vector<1x8x32xf32>
    %111 = tpu.concatenate %109, %110 in 0 : vector<1x8x32xf32>, vector<1x8x32xf32> -> vector<2x8x32xf32>
    %c0_38 = arith.constant 0 : index
    %c0_39 = arith.constant 0 : index
    %112 = vector.load %arg8[%c0_38, %c0_39] : memref<1x32xf32, #tpu.memory_space<vmem>>, vector<1x32xf32>
    %113 = vector.shape_cast %112 : vector<1x32xf32> to vector<1x1x32xf32>
    %114 = vector.broadcast %113 : vector<1x1x32xf32> to vector<2x8x32xf32>
    %115 = arith.addf %111, %114 : vector<2x8x32xf32>
    %116 = vector.broadcast %4 : vector<2x1x32xf32> to vector<2x8x32xf32>
    %117 = arith.mulf %116, %115 : vector<2x8x32xf32>
    %118 = arith.addf %0, %117 : vector<2x8x32xf32>
    %c0_40 = arith.constant 0 : index
    %c0_41 = arith.constant 0 : index
    %119 = vector.load %arg9[%c0_40, %c0_41] : memref<1x32xf32, #tpu.memory_space<vmem>>, vector<1x32xf32>
    %c0_42 = arith.constant 0 : index
    %c0_43 = arith.constant 0 : index
    %120 = vector.load %arg10[%c0_42, %c0_43] : memref<1x32xf32, #tpu.memory_space<vmem>>, vector<1x32xf32>
    %cst_44 = arith.constant dense<0.000000e+00> : vector<2x8xf32>
    %121 = vector.multi_reduction <add>, %118, %cst_44 [2] : vector<2x8x32xf32> to vector<2x8xf32>
    %122 = vector.shape_cast %121 : vector<2x8xf32> to vector<2x8x1xf32>
    %cst_45 = arith.constant 3.200000e+01 : f32
    %123 = vector.broadcast %cst_45 : f32 to vector<2x8x1xf32>
    %124 = arith.divf %122, %123 : vector<2x8x1xf32>
    %125 = arith.mulf %118, %118 : vector<2x8x32xf32>
    %cst_46 = arith.constant dense<0.000000e+00> : vector<2x8xf32>
    %126 = vector.multi_reduction <add>, %125, %cst_46 [2] : vector<2x8x32xf32> to vector<2x8xf32>
    %127 = vector.shape_cast %126 : vector<2x8xf32> to vector<2x8x1xf32>
    %cst_47 = arith.constant 3.200000e+01 : f32
    %128 = vector.broadcast %cst_47 : f32 to vector<2x8x1xf32>
    %129 = arith.divf %127, %128 : vector<2x8x1xf32>
    %130 = arith.mulf %124, %124 : vector<2x8x1xf32>
    %131 = arith.subf %129, %130 : vector<2x8x1xf32>
    %cst_48 = arith.constant 0.000000e+00 : f32
    %132 = vector.broadcast %cst_48 : f32 to vector<2x8x1xf32>
    %133 = arith.maximumf %131, %132 : vector<2x8x1xf32>
    %134 = vector.broadcast %124 : vector<2x8x1xf32> to vector<2x8x32xf32>
    %135 = arith.subf %118, %134 : vector<2x8x32xf32>
    %cst_49 = arith.constant 9.99999974E-6 : f32
    %136 = vector.broadcast %cst_49 : f32 to vector<2x8x1xf32>
    %137 = arith.addf %133, %136 : vector<2x8x1xf32>
    %138 = math.rsqrt %137 : vector<2x8x1xf32>
    %139 = vector.broadcast %138 : vector<2x8x1xf32> to vector<2x8x32xf32>
    %140 = arith.mulf %135, %139 : vector<2x8x32xf32>
    %141 = vector.shape_cast %119 : vector<1x32xf32> to vector<1x1x32xf32>
    %142 = vector.broadcast %141 : vector<1x1x32xf32> to vector<2x8x32xf32>
    %143 = arith.mulf %140, %142 : vector<2x8x32xf32>
    %144 = vector.shape_cast %120 : vector<1x32xf32> to vector<1x1x32xf32>
    %145 = vector.broadcast %144 : vector<1x1x32xf32> to vector<2x8x32xf32>
    %146 = arith.addf %143, %145 : vector<2x8x32xf32>
    %cst_50 = arith.constant 1.000000e+00 : f32
    %147 = vector.broadcast %cst_50 : f32 to vector<2x1x32xf32>
    %148 = arith.addf %147, %6 : vector<2x1x32xf32>
    %149 = vector.broadcast %148 : vector<2x1x32xf32> to vector<2x8x32xf32>
    %150 = arith.mulf %146, %149 : vector<2x8x32xf32>
    %151 = vector.broadcast %5 : vector<2x1x32xf32> to vector<2x8x32xf32>
    %152 = arith.addf %150, %151 : vector<2x8x32xf32>
    %153 = vector.shape_cast %152 : vector<2x8x32xf32> to vector<16x32xf32>
    %154 = arith.truncf %153 : vector<16x32xf32> to vector<16x32xbf16>
    %c0_51 = arith.constant 0 : index
    %c0_52 = arith.constant 0 : index
    %155 = vector.load %arg11[%c0_51, %c0_52] : memref<32x128xbf16, #tpu.memory_space<vmem>>, vector<32x128xbf16>
    %cst_53 = arith.constant dense<0.000000e+00> : vector<16x128xf32>
    %156 = tpu.matmul %154, %155, %cst_53 {dimension_numbers = #tpu.dot_dimension_numbers<[1], [0], [0], [1], [0, 0, 1, 1], [], []>} : vector<16x32xbf16>, vector<32x128xbf16>, vector<16x128xf32> -> vector<16x128xf32>
    %c0_54 = arith.constant 0 : index
    %c0_55 = arith.constant 0 : index
    %157 = vector.load %arg12[%c0_54, %c0_55] : memref<1x128xf32, #tpu.memory_space<vmem>>, vector<1x128xf32>
    %158 = vector.broadcast %157 : vector<1x128xf32> to vector<16x128xf32>
    %159 = arith.addf %156, %158 : vector<16x128xf32>
    %160 = arith.mulf %159, %159 : vector<16x128xf32>
    %161 = arith.mulf %159, %160 : vector<16x128xf32>
    %cst_56 = arith.constant 4.471500e-02 : f32
    %162 = vector.broadcast %cst_56 : f32 to vector<16x128xf32>
    %163 = arith.mulf %162, %161 : vector<16x128xf32>
    %164 = arith.addf %159, %163 : vector<16x128xf32>
    %cst_57 = arith.constant 0.797884583 : f32
    %165 = vector.broadcast %cst_57 : f32 to vector<16x128xf32>
    %166 = arith.mulf %165, %164 : vector<16x128xf32>
    %167 = math.tanh %166 : vector<16x128xf32>
    %cst_58 = arith.constant 1.000000e+00 : f32
    %168 = vector.broadcast %cst_58 : f32 to vector<16x128xf32>
    %169 = arith.addf %168, %167 : vector<16x128xf32>
    %cst_59 = arith.constant 5.000000e-01 : f32
    %170 = vector.broadcast %cst_59 : f32 to vector<16x128xf32>
    %171 = arith.mulf %170, %169 : vector<16x128xf32>
    %172 = arith.mulf %159, %171 : vector<16x128xf32>
    %173 = arith.truncf %172 : vector<16x128xf32> to vector<16x128xbf16>
    %c0_60 = arith.constant 0 : index
    %c0_61 = arith.constant 0 : index
    %174 = vector.load %arg13[%c0_60, %c0_61] : memref<128x32xbf16, #tpu.memory_space<vmem>>, vector<128x32xbf16>
    %cst_62 = arith.constant dense<0.000000e+00> : vector<16x32xf32>
    %175 = tpu.matmul %173, %174, %cst_62 {dimension_numbers = #tpu.dot_dimension_numbers<[1], [0], [0], [1], [0, 0, 1, 1], [], []>} : vector<16x128xbf16>, vector<128x32xbf16>, vector<16x32xf32> -> vector<16x32xf32>
    %c0_63 = arith.constant 0 : index
    %c0_64 = arith.constant 0 : index
    %176 = vector.load %arg14[%c0_63, %c0_64] : memref<1x32xf32, #tpu.memory_space<vmem>>, vector<1x32xf32>
    %177 = vector.broadcast %176 : vector<1x32xf32> to vector<16x32xf32>
    %178 = arith.addf %175, %177 : vector<16x32xf32>
    %179 = vector.shape_cast %178 : vector<16x32xf32> to vector<2x8x32xf32>
    %180 = vector.broadcast %7 : vector<2x1x32xf32> to vector<2x8x32xf32>
    %181 = arith.mulf %180, %179 : vector<2x8x32xf32>
    %182 = arith.addf %118, %181 : vector<2x8x32xf32>
    %c0_65 = arith.constant 0 : index
    %c0_66 = arith.constant 0 : index
    %c0_67 = arith.constant 0 : index
    %183 = vector.load %arg15[%c0_65, %c0_66, %c0_67] : memref<2x8x32xf32, #tpu.memory_space<vmem>>, vector<2x8x32xf32>
    tpu.vector_store %arg15[%c0_65, %c0_66, %c0_67], %182 {strides = array<i32>} : memref<2x8x32xf32, #tpu.memory_space<vmem>>, vector<2x8x32xf32>,
    return
  }
  func.func @transform_0(%arg0: i32) -> (i32, i32, i32) {
    %c0_i32 = arith.constant 0 : i32
    %c0_i32_0 = arith.constant 0 : i32
    %c0_i32_1 = arith.constant 0 : i32
    return %arg0, %c0_i32, %c0_i32_0 : i32, i32, i32
  }
  func.func @transform_1(%arg0: i32) -> (i32, i32, i32) {
    %c0_i32 = arith.constant 0 : i32
    %c0_i32_0 = arith.constant 0 : i32
    %c0_i32_1 = arith.constant 0 : i32
    return %arg0, %c0_i32, %c0_i32_0 : i32, i32, i32
  }
  func.func @transform_2(%arg0: i32) -> (i32, i32) {
    %c0_i32 = arith.constant 0 : i32
    %c0_i32_0 = arith.constant 0 : i32
    %c0_i32_1 = arith.constant 0 : i32
    return %c0_i32, %c0_i32_0 : i32, i32
  }
  func.func @transform_3(%arg0: i32) -> (i32, i32) {
    %c0_i32 = arith.constant 0 : i32
    %c0_i32_0 = arith.constant 0 : i32
    %c0_i32_1 = arith.constant 0 : i32
    return %c0_i32, %c0_i32_0 : i32, i32
  }
  func.func @transform_4(%arg0: i32) -> (i32, i32) {
    %c0_i32 = arith.constant 0 : i32
    %c0_i32_0 = arith.constant 0 : i32
    %c0_i32_1 = arith.constant 0 : i32
    return %c0_i32, %c0_i32_0 : i32, i32
  }
  func.func @transform_5(%arg0: i32) -> (i32, i32) {
    %c0_i32 = arith.constant 0 : i32
    %c0_i32_0 = arith.constant 0 : i32
    %c0_i32_1 = arith.constant 0 : i32
    return %c0_i32, %c0_i32_0 : i32, i32
  }
  func.func @transform_6(%arg0: i32) -> (i32, i32, i32) {
    %c0_i32 = arith.constant 0 : i32
    %c0_i32_0 = arith.constant 0 : i32
    %c0_i32_1 = arith.constant 0 : i32
    %c0_i32_2 = arith.constant 0 : i32
    return %c0_i32, %c0_i32_0, %c0_i32_1 : i32, i32, i32
  }
  func.func @transform_7(%arg0: i32) -> (i32, i32) {
    %c0_i32 = arith.constant 0 : i32
    %c0_i32_0 = arith.constant 0 : i32
    %c0_i32_1 = arith.constant 0 : i32
    return %c0_i32, %c0_i32_0 : i32, i32
  }
  func.func @transform_8(%arg0: i32) -> (i32, i32) {
    %c0_i32 = arith.constant 0 : i32
    %c0_i32_0 = arith.constant 0 : i32
    %c0_i32_1 = arith.constant 0 : i32
    return %c0_i32, %c0_i32_0 : i32, i32
  }
  func.func @transform_9(%arg0: i32) -> (i32, i32) {
    %c0_i32 = arith.constant 0 : i32
    %c0_i32_0 = arith.constant 0 : i32
    %c0_i32_1 = arith.constant 0 : i32
    return %c0_i32, %c0_i32_0 : i32, i32
  }
  func.func @transform_10(%arg0: i32) -> (i32, i32) {
    %c0_i32 = arith.constant 0 : i32
    %c0_i32_0 = arith.constant 0 : i32
    %c0_i32_1 = arith.constant 0 : i32
    return %c0_i32, %c0_i32_0 : i32, i32
  }
  func.func @transform_11(%arg0: i32) -> (i32, i32) {
    %c0_i32 = arith.constant 0 : i32
    %c0_i32_0 = arith.constant 0 : i32
    %c0_i32_1 = arith.constant 0 : i32
    return %c0_i32, %c0_i32_0 : i32, i32
  }
  func.func @transform_12(%arg0: i32) -> (i32, i32) {
    %c0_i32 = arith.constant 0 : i32
    %c0_i32_0 = arith.constant 0 : i32
    %c0_i32_1 = arith.constant 0 : i32
    return %c0_i32, %c0_i32_0 : i32, i32
  }
  func.func @transform_13(%arg0: i32) -> (i32, i32) {
    %c0_i32 = arith.constant 0 : i32
    %c0_i32_0 = arith.constant 0 : i32
    %c0_i32_1 = arith.constant 0 : i32
    return %c0_i32, %c0_i32_0 : i32, i32
  }
  func.func @transform_14(%arg0: i32) -> (i32, i32, i32) {
    %c0_i32 = arith.constant 0 : i32
    %c0_i32_0 = arith.constant 0 : i32
    %c0_i32_1 = arith.constant 0 : i32
    return %arg0, %c0_i32, %c0_i32_0 : i32, i32, i32
  }
}

</mosaic_0001>

<bundles_post_ra>
// kernel: fn.1
= control target key start
LH: loop header
LB: loop body
LE: loop exit
PB: predicated region body
PF: predicated region fallthrough
CT: control target
= control target key end

     0   :  { %vm55_vm0 = vcmask 261120   ;;  %s3331_s0 = inlined_call_operand.vmem [shape: f32[2,8,32], index: 0, kind: input, shape index: {}]   ;;  %s3332_s1 = inlined_call_operand.vmem [shape: f32[2,6,32], index: 1, kind: input, shape index: {}]   ;;  %s3333_s2 = inlined_call_operand.vmem [shape: f32[1,32], index: 2, kind: input, shape index: {}]   ;;  %s3334_s3 = inlined_call_operand.vmem [shape: f32[1,32], index: 3, kind: input, shape index: {}]   ;;  %s3335_s4 = inlined_call_operand.vmem [shape: bf16[96,32], index: 4, kind: input, shape index: {}]   ;;  %s3336_s5 = inlined_call_operand.vmem [shape: f32[96,1], index: 5, kind: input, shape index: {}]   ;;  %s3337_s6 = inlined_call_operand.vmem [shape: bf16[4,8,32], index: 6, kind: input, shape index: {}]   ;;  %s3338_s7 = inlined_call_operand.vmem [shape: f32[1,32], index: 7, kind: input, shape index: {}]   ;;  %s3339_s8 = inlined_call_operand.vmem [shape: f32[1,32], index: 8, kind: input, shape index: {}]   ;;  %s3340_s9 = inlined_call_operand.vmem [shape: f32[1,32], index: 9, kind: input, shape index: {}]   ;;  %s3341_s10 = inlined_call_operand.vmem [shape: bf16[32,128], index: 10, kind: input, shape index: {}]   ;;  %s3342_s11 = inlined_call_operand.vmem [shape: f32[1,128], index: 11, kind: input, shape index: {}]   ;;  %s3343_s12 = inlined_call_operand.vmem [shape: bf16[128,32], index: 12, kind: input, shape index: {}]   ;;  %s3344_s13 = inlined_call_operand.vmem [shape: f32[1,32], index: 13, kind: input, shape index: {}]   ;;  %s3345_s14 = inlined_call_operand.hbm [shape: f32[2,8,32], index: 14, kind: output, shape index: {}]  }
   0x1   :  { %v49_v0 = vld [vmem:[%s3331_s0] sm:$0xff] }
   0x2   :  { %v56_v1 = vsel %vm55_vm0, %v49_v0, 0.0  ;;  %v65_v2 = vmul.f32 %v49_v0, %v49_v0 }
   0x3   :  { %57 = vadd.xlane.f32.xlu0 %v56_v1 }
   0x4   :  { %v67_v3 = vsel %vm55_vm0, %v65_v2, 0.0 }
   0x7   :  { %68 = vadd.xlane.f32.xlu0 %v67_v3 }
   0x8   :  { %19 = vsyncpa [#allocation3], 0  ;;  %v107_v12 = vlaneseq  ;;  %v2840_v14 = vld [vmem:[%s3332_s1] sm:$0x3f]  ;;  %v2749_v30 = vmov 0   ;;  %v210_v31 = vld [vmem:[%s3336_s5 + $0x18] sm:$0xff] }
   0x9   :  { %v2843_v16 = vadd.f32 1.0, %v2840_v14  ;;  %v2849_v19 = vld [vmem:[%s3333_s2] ss:$0 sm:$0xff]  ;;  %2664 = vset.pattern.permute.xlu0 %v2749_v30  ;;  %v208_v32 = vld [vmem:[%s3336_s5 + $0x8] sm:$0xff]  ;;  %v214_v34 = vld [vmem:[%s3336_s5 + $0x38] sm:$0xff]  ;;  %v2750_v50 = vmov 0.0  }
   0xa   :  { %v2835_v13 = vshrl.u32 %v107_v12, 7  ;;  %v2855_v22 = vld [vmem:[%s3334_s3] ss:$0 sm:$0xff]  ;;  %v213_v35 = vld [vmem:[%s3336_s5 + $0x30] sm:$0xff]  ;;  %v216_v36 = vld [vmem:[%s3336_s5 + $0x48] sm:$0xff]  ;;  %2465 = vmatprep.subr.bf16.mxu1 %v2750_v50  ;;  %vm2751_vm1 = vmmov 0  }
   0xb   :  { %v2868_v29 = vld [vmem:[%s3335_s4] sm:$0xff]   ;;  %v217_v38 = vld [vmem:[%s3336_s5 + $0x50] sm:$0xff]  ;;  %v2899_v45 = vld [vmem:[%s3335_s4 + $0x8] sm:$0xff]   ;;  %2467 = vmatprep.mubr.msk.bf16.mxu1 %vm2751_vm1, %v2750_v50  ;;  %vm556_vm2 = vcmask 1043456   ;;  %vm552_vm3 = vcmask 64512  }
   0xc   :  { %v109_v17 = vsub.s32 1, %v2835_v13  ;;  %v119_v21 = vsub.s32 0, %v2835_v13  ;;  %2453 = vmatprep.mubr.msk.bf16.mxu0 %vm55_vm0, %v2868_v29  ;;  %v207_v33 = vld [vmem:[%s3336_s5] sm:$0xff]  ;;  %v2904_v46 = vld [vmem:[%s3335_s4 + $0x10] sm:$0xff]   ;;  %v2913_v47 = vld [vmem:[%s3335_s4 + $0x18] sm:$0xff]  }
   0xd   :  { %v211_v37 = vld [vmem:[%s3336_s5 + $0x20] sm:$0xff]  ;;  %v2927_v49 = vld [vmem:[%s3335_s4 + $0x28] sm:$0xff]  }
   0xe   :  { %v110_v24 = vrot.slane %v2843_v16, %v109_v17  ;;  %v120_v26 = vrot.slane %v2840_v14, %v119_v21  ;;  %v2918_v48 = vld [vmem:[%s3335_s4 + $0x20] sm:$0xff]  }
  0x1d   :  { %240 = vperm.xlu0 %2664, %v210_v31  }
  0x21   :  { %230 = vperm.xlu0 %2664, %v208_v32  }
  0x25   :  { %260 = vperm.xlu0 %2664, %v214_v34  }
  0x8c   :  { %v58_v4 = vpop.xlane.xlu0 %57 }
  0x8d   :  { %v63_v5 = vmul.f32 0.03125, %v58_v4 }
  0x8f   :  { %v75_v7 = vmul.f32 %v63_v5, %v63_v5  ;;  %v81_v15 = vsub.f32 %v49_v0, %v63_v5 }
  0x90   :  { %v69_v6 = vpop.xlane.xlu0 %68 }
  0x91   :  { %v73_v8 = vmul.f32 0.03125, %v69_v6 }
  0x93   :  { %v77_v9 = vsub.f32 %v73_v8, %v75_v7 }
  0x95   :  { %v79_v10 = vmax.f32 %v77_v9, 0.0 }
  0x97   :  { %v83_v11 = vadd.f32 1e-05, %v79_v10 }
  0x98   :  { %v2933_v51 = vpop.permute.xlu0 %240 }
  0x99   :  { %2681 = vrsqrt.f32 %v83_v11 }
  0x9c   :  { %v2940_v57 = vpop.permute.xlu0 %230 }
  0xa0   :  { %v2964_v12 = vpop.permute.xlu0 %260 }
  0xa6   :  { %v2682_v18 = vpop.eup %2681 }
  0xa7   :  { %v87_v20 = vmul.f32 %v2682_v18, %v81_v15 }
  0xa9   :  { %v95_v23 = vmul.f32 %v2849_v19, %v87_v20 }
  0xab   :  { %v103_v25 = vadd.f32 %v2855_v22, %v95_v23 }
  0xad   :  { %v115_v27 = vmul.f32 %v110_v24, %v103_v25 }
  0xaf   :  { %v125_v28 = vadd.f32 %v120_v26, %v115_v27 }
  0xb1   :  { %127 = vxpose.xlu1.b32.start.end [1/1] (short) (narrow) %v125_v28, 32 }
  0xcf   :  { %2663 = vset.pattern.permute.xlu1 %v2749_v30 }
  0xdb   :  { %225 = vperm.xlu1 %2663, %v207_v33  }
  0xdf   :  { %255 = vperm.xlu1 %2663, %v213_v35  }
  0xe3   :  { %270 = vperm.xlu1 %2663, %v216_v36  }
  0xe7   :  { %245 = vperm.xlu1 %2663, %v211_v37  }
  0xeb   :  { %275 = vperm.xlu1 %2663, %v217_v38  }
 0x12d   :  { %v143_v39 = vpop.trf.xlu1 }
 0x131   :  { %v144_v40 = vpop.trf.xlu1 }
 0x132   :  { %v191_v44 = vpack.c.bf16 %v144_v40, %v143_v39 }
 0x135   :  { %v145_v41 = vpop.trf.xlu1 }
 0x139   :  { %v146_v42 = vpop.trf.xlu1 }
 0x13a   :  { %v192_v43 = vpack.c.bf16 %v146_v42, %v145_v41 }
 0x13c   :  { %2449 = vmatprep.subr.bf16.mxu0 %v192_v43 }
 0x13d   :  { %2450 = vmatpush3.bf16.msra.mxu0 %v192_v43 }
 0x13e   :  { %2451 = vmatprep.subr.bf16.mxu0 %v191_v44 }
 0x141   :  { %2452 = vmatpush3.bf16.msra.mxu0 %v191_v44 }
 0x142   :  { %2489 = vmatprep.subr.bf16.mxu0 %v2750_v50 }
 0x144   :  { %2454 = vmatmul.mubr.msk.bf16.vlgmr.msra.gmra.mxu0 %vm55_vm0, %v2899_v45 }
 0x145   :  { %2457 = vmatprep.mubr.msk.bf16.mxu0 %vm55_vm0, %v2904_v46 }
 0x14c   :  { %2458 = vmatmul.mubr.msk.bf16.gmra.mxu0 %vm55_vm0, %v2913_v47 }
 0x14d   :  { %2461 = vmatprep.mubr.msk.bf16.mxu0 %vm55_vm0, %v2918_v48 }
 0x154   :  { %2462 = vmatmul.mubr.msk.bf16.gmra.mxu0 %vm55_vm0, %v2927_v49 }
 0x155   :  { %2491 = vmatprep.mubr.msk.bf16.mxu0 %vm2751_vm1, %v2750_v50 }
 0x156   :  { %v2937_v53 = vpop.permute.xlu1 %225 }
 0x15a   :  { %v2948_v61 = vpop.permute.xlu1 %255 }
 0x15e   :  { %v2959_v8 = vpop.permute.xlu1 %270 }
 0x162   :  { %v2962_v11 = vpop.permute.xlu1 %245 }
 0x166   :  { %v2967_v18 = vpop.permute.xlu1 %275 }
 0x204   :  { %v2935_v52 = vpop.f32.mrf.mxu0 }
 0x206   :  { %v365_v54 = vpop.f32.mrf.mxu0 }
 0x207   :  { %v366_v55 = vadd.f32 %v365_v54, %v2937_v53 }
 0x208   :  { %v2456_v56 = vpop.f32.mrf.mxu0 }
 0x209   :  { %v377_v58 = vadd.f32 %v2456_v56, %v2933_v51  ;;  %412 = vxpose.xlu0.b32.start.end [1/1] (short) (narrow) %v366_v55, 8 }
 0x20a   :  { %v368_v59 = vpop.f32.mrf.mxu0 }
 0x20b   :  { %v369_v60 = vadd.f32 %v368_v59, %v2940_v57  ;;  %444 = vxpose.xlu1.b32.start.end [1/1] (short) (narrow) %v377_v58, 8 }
 0x20c   :  { %v2459_v62 = vpop.f32.mrf.mxu0 }
 0x20d   :  { %v548_v63 = vpack.c.bf16 %v369_v60, %v369_v60  ;;  %v390_v0 = vadd.f32 %v2459_v62, %v2948_v61 }
 0x20e   :  { %v381_v1 = vpop.f32.mrf.mxu0 }
 0x20f   :  { %476 = vxpose.xlu0.b32.start.end [1/1] (short) (narrow) %v390_v0, 8  ;;  %v558_v2 = vsel %vm556_vm2, %v548_v63, 0  ;;  %v382_v15 = vadd.f32 %v381_v1, %v2962_v11 }
 0x210   :  { %v2460_v3 = vpop.f32.mrf.mxu0  ;;  %2466 = vmatpush3.bf16.msra.mxu1 %v558_v2 }
 0x211   :  { %2471 = vmatprep.subr.bf16.mxu1 %v2750_v50  ;;  %v549_v23 = vpack.c.bf16 %v382_v15, %v382_v15  ;;  %v393_v28 = vadd.f32 %v2460_v3, %v2964_v12 }
 0x212   :  { %v2953_v4 = vpop.f32.mrf.mxu0 }
 0x213   :  { %v604_v27 = vsel %vm556_vm2, %v549_v23, 0  ;;  %v550_v31 = vpack.c.bf16 %v393_v28, %v393_v28 }
 0x214   :  { %v2463_v5 = vpop.f32.mrf.mxu0 }
 0x215   :  { %v650_v34 = vsel %vm556_vm2, %v550_v31, 0  ;;  %v406_v35 = vadd.f32 %v2463_v5, %v2967_v18 }
 0x216   :  { %v2955_v6 = vpop.f32.mrf.mxu0 }
 0x217   :  { %v551_v37 = vpack.c.bf16 %v406_v35, %v406_v35 }
 0x218   :  { %v2957_v7 = vpop.f32.mrf.mxu0 }
 0x219   :  { %v696_v40 = vsel %vm556_vm2, %v551_v37, 0 }
 0x21a   :  { %v400_v9 = vpop.f32.mrf.mxu0 }
 0x21b   :  { %v401_v10 = vadd.f32 %v400_v9, %v2959_v8 }
 0x21d   :  { %508 = vxpose.xlu0.b32.start.end [1/1] (short) (narrow) %v401_v10, 8 }
 0x285   :  { %v428_v20 = vpop.trf.xlu0 }
 0x286   :  { %v540_v24 = vmul.f32 0.35355338, %v428_v20 }
 0x287   :  { %v460_v25 = vpop.trf.xlu1 }
 0x288   :  { %v544_v26 = vpack.c.bf16 %v540_v24, %v540_v24  ;;  %v541_v30 = vmul.f32 0.35355338, %v460_v25  ;;  %v212_v24 = vld [vmem:[%s3336_s5 + $0x28] sm:$0xff]  ;;  %v209_v25 = vld [vmem:[%s3336_s5 + $0x10] sm:$0xff] }
 0x28a   :  { %2468 = vmatmul.mubr.msk.bf16.vlgmr.msra.gmra.mxu1 %vm552_vm3, %v544_v26  ;;  %v545_v32 = vpack.c.bf16 %v541_v30, %v541_v30 }
 0x28b   :  { %2472 = vmatpush3.bf16.msra.mxu1 %v604_v27  ;;  %2473 = vmatprep.mubr.msk.bf16.mxu1 %vm2751_vm1, %v2750_v50  ;;  %v492_v33 = vpop.trf.xlu0 }
 0x28c   :  { %2477 = vmatprep.subr.bf16.mxu1 %v2750_v50  ;;  %v542_v36 = vmul.f32 0.35355338, %v492_v33 }
 0x28e   :  { %v546_v38 = vpack.c.bf16 %v542_v36, %v542_v36 }
 0x292   :  { %2474 = vmatmul.mubr.msk.bf16.vlgmr.msra.gmra.mxu1 %vm552_vm3, %v545_v32 }
 0x293   :  { %2478 = vmatpush3.bf16.msra.mxu1 %v650_v34  ;;  %2479 = vmatprep.mubr.msk.bf16.mxu1 %vm2751_vm1, %v2750_v50 }
 0x294   :  { %2483 = vmatprep.subr.bf16.mxu1 %v2750_v50 }
 0x299   :  { %v524_v39 = vpop.trf.xlu0 }
 0x29a   :  { %2480 = vmatmul.mubr.msk.bf16.vlgmr.msra.gmra.mxu1 %vm552_vm3, %v546_v38  ;;  %v543_v41 = vmul.f32 0.35355338, %v524_v39 }
 0x29b   :  { %2484 = vmatpush3.bf16.msra.mxu1 %v696_v40  ;;  %2485 = vmatprep.mubr.msk.bf16.mxu1 %vm2751_vm1, %v2750_v50 }
 0x29c   :  { %2495 = vmatprep.subr.bf16.mxu1 %v2750_v50  ;;  %v547_v42 = vpack.c.bf16 %v543_v41, %v543_v41 }
 0x2a2   :  { %2486 = vmatmul.mubr.msk.bf16.vlgmr.msra.gmra.mxu1 %vm552_vm3, %v547_v42 }
 0x2a3   :  { %2497 = vmatprep.mubr.msk.bf16.mxu1 %vm2751_vm1, %v2750_v50 }
 0x34a   :  { %v594_v43 = vpop.f32.mrf.mxu1 }
 0x34b   :  { %v738_v44 = vsel %vm552_vm3, %v594_v43, -inf }
 0x34c   :  { %739 = vmax.xlane.f32.xlu0 %v738_v44  ;;  %v2469_v54 = vpop.f32.mrf.mxu1 }
 0x34e   :  { %v597_v55 = vpop.f32.mrf.mxu1 }
 0x350   :  { %v2470_v56 = vpop.f32.mrf.mxu1 }
 0x352   :  { %v640_v58 = vpop.f32.mrf.mxu1 }
 0x353   :  { %v741_v59 = vsel %vm552_vm3, %v640_v58, -inf }
 0x354   :  { %742 = vmax.xlane.f32.xlu1 %v741_v59  ;;  %v2475_v60 = vpop.f32.mrf.mxu1 }
 0x356   :  { %v643_v62 = vpop.f32.mrf.mxu1 }
 0x358   :  { %v2476_v63 = vpop.f32.mrf.mxu1 }
 0x35a   :  { %v686_v0 = vpop.f32.mrf.mxu1 }
 0x35b   :  { %v744_v1 = vsel %vm552_vm3, %v686_v0, -inf }
 0x35c   :  { %745 = vmax.xlane.f32.xlu1 %v744_v1  ;;  %v2481_v2 = vpop.f32.mrf.mxu1  ;;  %v215_v1 = vld [vmem:[%s3336_s5 + $0x40] sm:$0xff] }
 0x35d   :  { %v3024_v2 = vld [vmem:[%s3331_s0 + $0x8] sm:$0xff] }
 0x35e   :  { %v689_v3 = vpop.f32.mrf.mxu1 }
 0x35f   :  { %v59_v3 = vsel %vm55_vm0, %v3024_v2, 0.0 }
 0x360   :  { %v2482_v5 = vpop.f32.mrf.mxu1 }
 0x361   :  { %v66_v5 = vmul.f32 %v3024_v2, %v3024_v2 }
 0x362   :  { %v732_v9 = vpop.f32.mrf.mxu1 }
 0x363   :  { %v747_v10 = vsel %vm552_vm3, %v732_v9, -inf }
 0x364   :  { %748 = vmax.xlane.f32.xlu0 %v747_v10  ;;  %v2487_v15 = vpop.f32.mrf.mxu1 }
 0x366   :  { %v735_v20 = vpop.f32.mrf.mxu1 }
 0x368   :  { %v2488_v23 = vpop.f32.mrf.mxu1 }
 0x36d   :  { %250 = vperm.xlu1 %2663, %v212_v24  }
 0x37a   :  { %235 = vperm.xlu0 %2664, %v209_v25  }
 0x3d5   :  { %v740_v26 = vpop.xlane.xlu0 %739 }
 0x3d6   :  { %v750_v27 = vsub.f32 %v594_v43, %v740_v26 }
 0x3d8   :  { %v754_v28 = vmul.f32 1.442695, %v750_v27 }
 0x3da   :  { %2683 = vpow2.f32 %v754_v28 }
 0x3dd   :  { %v743_v30 = vpop.xlane.xlu1 %742 }
 0x3de   :  { %v751_v31 = vsub.f32 %v640_v58, %v743_v30 }
 0x3e0   :  { %v756_v32 = vmul.f32 1.442695, %v751_v31 }
 0x3e2   :  { %2685 = vpow2.f32 %v756_v32 }
 0x3e5   :  { %v746_v33 = vpop.xlane.xlu1 %745 }
 0x3e6   :  { %v752_v34 = vsub.f32 %v686_v0, %v746_v33 }
 0x3e7   :  { %v2684_v35 = vpop.eup %2683 }
 0x3e8   :  { %v758_v36 = vmul.f32 1.442695, %v752_v34  ;;  %v762_v37 = vsel %vm552_vm3, %v2684_v35, 0.0 }
 0x3e9   :  { %v3000_v38 = vpop.permute.xlu1 %250  ;;  %763 = vadd.xlane.f32.xlu1 %v762_v37 }
 0x3ea   :  { %2687 = vpow2.f32 %v758_v36  ;;  %v385_v39 = vadd.f32 %v2953_v4, %v3000_v38 }
 0x3ec   :  { %v787_v40 = vpack.c.bf16 %v385_v39, %v385_v39 }
 0x3ed   :  { %v749_v41 = vpop.xlane.xlu0 %748 }
 0x3ee   :  { %v753_v42 = vsub.f32 %v732_v9, %v749_v41  ;;  %v840_v43 = vsel %vm552_vm3, %v787_v40, 0  ;;  %v70_v9 = vsel %vm55_vm0, %v66_v5, 0.0 }
 0x3ef   :  { %v2686_v44 = vpop.eup %2685  ;;  %2496 = vmatpush3.bf16.xpose.msra.mxu1 %v840_v43 }
 0x3f0   :  { %v760_v54 = vmul.f32 1.442695, %v753_v42  ;;  %v765_v55 = vsel %vm552_vm3, %v2686_v44, 0.0  ;;  %2507 = vmatprep.subr.bf16.mxu1 %v2750_v50 }
 0x3f1   :  { %766 = vadd.xlane.f32.xlu0 %v765_v55 }
 0x3f2   :  { %2689 = vpow2.f32 %v760_v54 }
 0x3f5   :  { %v3007_v56 = vpop.permute.xlu0 %235 }
 0x3f6   :  { %v374_v58 = vadd.f32 %v2935_v52, %v3007_v56  ;;  %v218_v52 = vld [vmem:[%s3336_s5 + $0x58] sm:$0xff] }
 0x3f7   :  { %v2688_v4 = vpop.eup %2687 }
 0x3f8   :  { %v786_v59 = vpack.c.bf16 %v374_v58, %v374_v58  ;;  %v768_v60 = vsel %vm552_vm3, %v2688_v4, 0.0 }
 0x3f9   :  { %769 = vadd.xlane.f32.xlu1 %v768_v60 }
 0x3fa   :  { %v794_v62 = vsel %vm552_vm3, %v786_v59, 0 }
 0x3fb   :  { %2490 = vmatpush3.bf16.xpose.msra.mxu0 %v794_v62  ;;  %v219_v62 = vld [vmem:[%s3337_s6] sm:$0xf] }
 0x3fc   :  { %2501 = vmatprep.subr.bf16.mxu0 %v2750_v50 }
 0x3ff   :  { %v2690_v63 = vpop.eup %2689 }
 0x400   :  { %v771_v0 = vsel %vm552_vm3, %v2690_v63, 0.0 }
 0x401   :  { %772 = vadd.xlane.f32.xlu1 %v771_v0  ;;  %v3059_v0 = vsel %vm556_vm2, %v219_v62, 0 }
 0x407   :  { %265 = vperm.xlu0 %2664, %v215_v1   ;;  %v220_v1 = vld [vmem:[%s3337_s6 + $0x4] sm:$0xf] }
 0x412   :  { %280 = vperm.xlu1 %2663, %v218_v52   ;;  %v3067_v52 = vsel %vm556_vm2, %v220_v1, 0 }
 0x426   :  { %60 = vadd.xlane.f32.xlu0 %v59_v3  ;;  %v3074_v3 = vld [vmem:[%s3332_s1 + $0x8] sm:$0x3f] }
 0x427   :  { %v3077_v5 = vadd.f32 1.0, %v3074_v3 }
 0x436   :  { %71 = vadd.xlane.f32.xlu1 %v70_v9 }
 0x472   :  { %v764_v10 = vpop.xlane.xlu1 %763 }
 0x473   :  { %2691 = vrcp.f32 %v764_v10 }
 0x47a   :  { %v767_v15 = vpop.xlane.xlu0 %766 }
 0x47b   :  { %2693 = vrcp.f32 %v767_v15 }
 0x480   :  { %v2692_v20 = vpop.eup %2691 }
 0x481   :  { %v778_v23 = vmul.f32 %v2692_v20, %v2684_v35  ;;  %v114_v20 = vrot.slane %v3077_v5, %v109_v17 }
 0x482   :  { %v770_v24 = vpop.xlane.xlu1 %769  ;;  %v3031_v25 = vpop.permute.xlu0 %265 }
 0x483   :  { %v782_v26 = vpack.c.bf16 %v778_v23, %v778_v23  ;;  %2695 = vrcp.f32 %v770_v24  ;;  %v398_v27 = vadd.f32 %v2955_v6, %v3031_v25  ;;  %v124_v24 = vrot.slane %v3074_v3, %v119_v21 }
 0x485   :  { %v788_v28 = vpack.c.bf16 %v398_v27, %v398_v27  ;;  %2492 = vmatmul.mubr.msk.bf16.vlgmr.msra.gmra.mxu0 %vm552_vm3, %v782_v26 }
 0x486   :  { %2503 = vmatprep.mubr.msk.bf16.mxu0 %vm2751_vm1, %v2750_v50 }
 0x487   :  { %v886_v30 = vsel %vm552_vm3, %v788_v28, 0 }
 0x488   :  { %v2694_v31 = vpop.eup %2693  ;;  %2502 = vmatpush3.bf16.xpose.msra.mxu0 %v886_v30  ;;  %v221_v30 = vld [vmem:[%s3337_s6 + $0x8] sm:$0xf] }
 0x489   :  { %v779_v32 = vmul.f32 %v2694_v31, %v2686_v44  ;;  %2513 = vmatprep.subr.bf16.mxu0 %v2750_v50 }
 0x48a   :  { %v773_v33 = vpop.xlane.xlu1 %772 }
 0x48b   :  { %2697 = vrcp.f32 %v773_v33  ;;  %v783_v34 = vpack.c.bf16 %v779_v32, %v779_v32  ;;  %v3092_v33 = vsel %vm556_vm2, %v221_v30, 0 }
 0x48d   :  { %2498 = vmatmul.mubr.msk.bf16.vlgmr.msra.gmra.mxu1 %vm552_vm3, %v783_v34 }
 0x48e   :  { %v3041_v35 = vpop.permute.xlu1 %280  ;;  %2509 = vmatprep.mubr.msk.bf16.mxu1 %vm2751_vm1, %v2750_v50 }
 0x48f   :  { %v409_v6 = vadd.f32 %v2957_v7, %v3041_v35 }
 0x490   :  { %v2696_v36 = vpop.eup %2695 }
 0x491   :  { %v789_v37 = vpack.c.bf16 %v409_v6, %v409_v6  ;;  %v780_v39 = vmul.f32 %v2696_v36, %v2688_v4 }
 0x493   :  { %v932_v40 = vsel %vm552_vm3, %v789_v37, 0  ;;  %v784_v41 = vpack.c.bf16 %v780_v39, %v780_v39 }
 0x494   :  { %2508 = vmatpush3.bf16.xpose.msra.mxu1 %v932_v40 }
 0x495   :  { %2504 = vmatmul.mubr.msk.bf16.vlgmr.msra.gmra.mxu0 %vm552_vm3, %v784_v41  ;;  %2519 = vmatprep.subr.bf16.mxu1 %v2750_v50 }
 0x496   :  { %2515 = vmatprep.mubr.msk.bf16.mxu0 %vm2751_vm1, %v2750_v50  ;;  %2514 = vmatpush3.bf16.msra.mxu0 %v3059_v0 }
 0x497   :  { %2525 = vmatprep.subr.bf16.mxu0 %v2750_v50 }
 0x498   :  { %v2698_v42 = vpop.eup %2697 }
 0x499   :  { %v781_v43 = vmul.f32 %v2698_v42, %v2690_v63 }
 0x49b   :  { %v785_v44 = vpack.c.bf16 %v781_v43, %v781_v43 }
 0x49d   :  { %2510 = vmatmul.mubr.msk.bf16.vlgmr.msra.gmra.mxu1 %vm552_vm3, %v785_v44 }
 0x49e   :  { %2521 = vmatprep.mubr.msk.bf16.mxu1 %vm2751_vm1, %v2750_v50  ;;  %2520 = vmatpush3.bf16.msra.mxu1 %v3067_v52 }
 0x49f   :  { %2531 = vmatprep.subr.bf16.mxu1 %v2750_v50 }
 0x4af   :  { %v61_v7 = vpop.xlane.xlu0 %60 }
 0x4b0   :  { %v64_v54 = vmul.f32 0.03125, %v61_v7 }
 0x4b2   :  { %v76_v55 = vmul.f32 %v64_v54, %v64_v54  ;;  %v82_v9 = vsub.f32 %v3024_v2, %v64_v54 }
 0x4bf   :  { %v72_v58 = vpop.xlane.xlu1 %71 }
 0x4c0   :  { %v74_v4 = vmul.f32 0.03125, %v72_v58 }
 0x4c2   :  { %v78_v59 = vsub.f32 %v74_v4, %v76_v55 }
 0x4c4   :  { %v80_v60 = vmax.f32 %v78_v59, 0.0 }
 0x4c6   :  { %v84_v63 = vadd.f32 1e-05, %v80_v60 }
 0x4c8   :  { %2699 = vrsqrt.f32 %v84_v63 }
 0x4d5   :  { %v2700_v10 = vpop.eup %2699 }
 0x4d6   :  { %v88_v15 = vmul.f32 %v2700_v10, %v82_v9 }
 0x4d8   :  { %v96_v23 = vmul.f32 %v2849_v19, %v88_v15 }
 0x4da   :  { %v104_v26 = vadd.f32 %v2855_v22, %v96_v23  ;;  %v222_v22 = vld [vmem:[%s3337_s6 + $0xc] sm:$0xf] }
 0x4db   :  { %v3102_v36 = vsel %vm556_vm2, %v222_v22, 0 }
 0x4dc   :  { %v116_v27 = vmul.f32 %v114_v20, %v104_v26 }
 0x4de   :  { %v126_v28 = vadd.f32 %v124_v24, %v116_v27 }
 0x4e0   :  { %159 = vxpose.xlu0.b32.start.end [1/1] (short) (narrow) %v126_v28, 32 }
 0x545   :  { %v830_v31 = vpop.f32.mrf.mxu0 }
 0x546   :  { %v974_v32 = vpack.c.bf16 %v830_v31, %v830_v31 }
 0x547   :  { %v2493_v17 = vpop.f32.mrf.mxu0 }
 0x548   :  { %2516 = vmatmul.mubr.msk.bf16.vlgmr.msra.gmra.mxu0 %vm552_vm3, %v974_v32 }
 0x549   :  { %v833_v19 = vpop.f32.mrf.mxu0  ;;  %2526 = vmatpush3.bf16.msra.mxu0 %v3092_v33  ;;  %2527 = vmatprep.mubr.msk.bf16.mxu0 %vm2751_vm1, %v2750_v50 }
 0x54b   :  { %v2494_v21 = vpop.f32.mrf.mxu0 }
 0x54d   :  { %v876_v34 = vpop.f32.mrf.mxu1 }
 0x54e   :  { %v975_v6 = vpack.c.bf16 %v876_v34, %v876_v34 }
 0x54f   :  { %v2499_v37 = vpop.f32.mrf.mxu1 }
 0x550   :  { %2522 = vmatmul.mubr.msk.bf16.vlgmr.msra.gmra.mxu1 %vm552_vm3, %v975_v6 }
 0x551   :  { %v879_v39 = vpop.f32.mrf.mxu1  ;;  %2532 = vmatpush3.bf16.msra.mxu1 %v3102_v36  ;;  %2533 = vmatprep.mubr.msk.bf16.mxu1 %vm2751_vm1, %v2750_v50 }
 0x553   :  { %v2500_v40 = vpop.f32.mrf.mxu1 }
 0x555   :  { %v922_v41 = vpop.f32.mrf.mxu0 }
 0x556   :  { %v976_v42 = vpack.c.bf16 %v922_v41, %v922_v41 }
 0x557   :  { %v2505_v43 = vpop.f32.mrf.mxu0 }
 0x558   :  { %2528 = vmatmul.mubr.msk.bf16.vlgmr.msra.gmra.mxu0 %vm552_vm3, %v976_v42 }
 0x559   :  { %v925_v44 = vpop.f32.mrf.mxu0  ;;  %2541 = vmatprep.mubr.msk.bf16.mxu0 %vm55_vm0, %v2868_v29 }
 0x55b   :  { %v2506_v7 = vpop.f32.mrf.mxu0 }
 0x55c   :  { %v175_v54 = vpop.trf.xlu0 }
 0x55d   :  { %v968_v55 = vpop.f32.mrf.mxu1 }
 0x55e   :  { %v977_v58 = vpack.c.bf16 %v968_v55, %v968_v55 }
 0x55f   :  { %v2511_v4 = vpop.f32.mrf.mxu1 }
 0x560   :  { %2534 = vmatmul.mubr.msk.bf16.vlgmr.msra.gmra.mxu1 %vm552_vm3, %v977_v58  ;;  %v176_v59 = vpop.trf.xlu0 }
 0x561   :  { %v971_v60 = vpop.f32.mrf.mxu1  ;;  %2545 = vmatprep.mubr.msk.bf16.mxu1 %vm55_vm0, %v2904_v46  ;;  %v193_v10 = vpack.c.bf16 %v176_v59, %v175_v54 }
 0x563   :  { %v2512_v62 = vpop.f32.mrf.mxu1 }
 0x564   :  { %v177_v63 = vpop.trf.xlu0 }
 0x568   :  { %v178_v1 = vpop.trf.xlu0 }
 0x569   :  { %v194_v9 = vpack.c.bf16 %v178_v1, %v177_v63 }
 0x56b   :  { %2537 = vmatprep.subr.bf16.mxu0 %v194_v9  ;;  %2653 = vmatprep.subr.bf16.mxu1 %v194_v9 }
 0x56c   :  { %2538 = vmatpush3.bf16.msra.mxu0 %v194_v9  ;;  %2655 = vmatpush3.bf16.msra.mxu1 %v194_v9 }
 0x56d   :  { %2539 = vmatprep.subr.bf16.mxu0 %v193_v10  ;;  %2654 = vmatprep.subr.bf16.mxu1 %v193_v10 }
 0x570   :  { %2540 = vmatpush3.bf16.msra.mxu0 %v193_v10  ;;  %2656 = vmatpush3.bf16.msra.mxu1 %v193_v10 }
 0x571   :  { %2553 = vmatprep.subr.bf16.mxu1 %v2750_v50  ;;  %2571 = vmatprep.subr.bf16.mxu0 %v2750_v50 }
 0x573   :  { %2542 = vmatmul.mubr.msk.bf16.vlgmr.msra.gmra.mxu0 %vm55_vm0, %v2899_v45  ;;  %2546 = vmatmul.mubr.msk.bf16.vlgmr.msra.gmra.mxu1 %vm55_vm0, %v2913_v47 }
 0x574   :  { %2549 = vmatprep.mubr.msk.bf16.mxu1 %vm55_vm0, %v2918_v48  ;;  %2573 = vmatprep.mubr.msk.bf16.mxu0 %vm2751_vm1, %v2750_v50 }
 0x57b   :  { %2550 = vmatmul.mubr.msk.bf16.gmra.mxu1 %vm55_vm0, %v2927_v49 }
 0x57c   :  { %2555 = vmatprep.mubr.msk.bf16.mxu1 %vm2751_vm1, %v2750_v50 }
 0x608   :  { %v1018_v29 = vpop.f32.mrf.mxu0 }
 0x609   :  { %v1162_v23 = vsel %vm55_vm0, %v1018_v29, 0.0 }
 0x60a   :  { %v2517_v46 = vpop.f32.mrf.mxu0 }
 0x60c   :  { %v1021_v15 = vpop.f32.mrf.mxu0 }
 0x60e   :  { %v2518_v20 = vpop.f32.mrf.mxu0 }
 0x610   :  { %v1064_v45 = vpop.f32.mrf.mxu1 }
 0x611   :  { %v1163_v47 = vsel %vm55_vm0, %v1064_v45, 0.0 }
 0x612   :  { %v1164_v24 = vadd.f32 %v1163_v47, %v1162_v23  ;;  %v2523_v48 = vpop.f32.mrf.mxu1 }
 0x614   :  { %v1067_v26 = vpop.f32.mrf.mxu1 }
 0x616   :  { %v2524_v27 = vpop.f32.mrf.mxu1 }
 0x618   :  { %v1110_v28 = vpop.f32.mrf.mxu0 }
 0x619   :  { %v1165_v30 = vsel %vm55_vm0, %v1110_v28, 0.0 }
 0x61a   :  { %v1166_v49 = vadd.f32 %v1165_v30, %v1164_v24  ;;  %v2529_v31 = vpop.f32.mrf.mxu0 }
 0x61c   :  { %v1113_v32 = vpop.f32.mrf.mxu0 }
 0x61e   :  { %v2530_v17 = vpop.f32.mrf.mxu0 }
 0x620   :  { %v1156_v19 = vpop.f32.mrf.mxu1 }
 0x621   :  { %v1167_v21 = vsel %vm55_vm0, %v1156_v19, 0.0 }
 0x622   :  { %v3132_v22 = vadd.f32 %v1167_v21, %v1166_v49  ;;  %v2535_v34 = vpop.f32.mrf.mxu1 }
 0x624   :  { %v1159_v6 = vpop.f32.mrf.mxu1 }
 0x626   :  { %v2536_v37 = vpop.f32.mrf.mxu1 }
 0x633   :  { %v2543_v39 = vpop.f32.mrf.mxu0  ;;  %v2547_v40 = vpop.f32.mrf.mxu1 }
 0x634   :  { %v1228_v60 = vadd.f32 %v2547_v40, %v2948_v61  ;;  %v1212_v27 = vadd.f32 %v2543_v39, %v3007_v56 }
 0x635   :  { %v1203_v41 = vpop.f32.mrf.mxu0  ;;  %v1219_v42 = vpop.f32.mrf.mxu1 }
 0x636   :  { %v1204_v43 = vadd.f32 %v1203_v41, %v2937_v53 }
 0x637   :  { %v2544_v44 = vpop.f32.mrf.mxu0  ;;  %v2548_v7 = vpop.f32.mrf.mxu1 }
 0x638   :  { %v1215_v54 = vadd.f32 %v2544_v44, %v2933_v51  ;;  %1250 = vxpose.xlu1.b32.start.end [1/1] (short) (narrow) %v1204_v43, 8  ;;  %v1231_v47 = vadd.f32 %v2548_v7, %v2964_v12 }
 0x639   :  { %v1206_v55 = vpop.f32.mrf.mxu0  ;;  %v1222_v58 = vpop.f32.mrf.mxu1 }
 0x63a   :  { %v1207_v4 = vadd.f32 %v1206_v55, %v2940_v57  ;;  %1282 = vxpose.xlu0.b32.start.end [1/1] (short) (narrow) %v1215_v54, 8 }
 0x63b   :  { %v2551_v59 = vpop.f32.mrf.mxu1 }
 0x63c   :  { %v1386_v62 = vpack.c.bf16 %v1207_v4, %v1207_v4  ;;  %v1244_v63 = vadd.f32 %v2551_v59, %v2967_v18  ;;  %v1220_v18 = vadd.f32 %v1219_v42, %v2962_v11  ;;  %v1223_v11 = vadd.f32 %v1222_v58, %v3000_v38 }
 0x63d   :  { %v3139_v1 = vpop.f32.mrf.mxu1  ;;  %v1622_v38 = vpack.c.bf16 %v1212_v27, %v1212_v27 }
 0x63e   :  { %v1394_v53 = vsel %vm556_vm2, %v1386_v62, 0  ;;  %v1389_v9 = vpack.c.bf16 %v1244_v63, %v1244_v63  ;;  %1314 = vxpose.xlu0.b32.start.end [1/1] (short) (narrow) %v1228_v60, 8  ;;  %v1387_v46 = vpack.c.bf16 %v1220_v18, %v1220_v18  ;;  %v1623_v12 = vpack.c.bf16 %v1223_v11, %v1223_v11 }
 0x63f   :  { %v3142_v10 = vpop.f32.mrf.mxu1  ;;  %2554 = vmatpush3.bf16.msra.mxu1 %v1394_v53  ;;  %v1630_v56 = vsel %vm552_vm3, %v1622_v38, 0 }
 0x640   :  { %v1532_v51 = vsel %vm556_vm2, %v1389_v9, 0  ;;  %2559 = vmatprep.subr.bf16.mxu1 %v2750_v50  ;;  %v1440_v23 = vsel %vm556_vm2, %v1387_v46, 0  ;;  %v1676_v17 = vsel %vm552_vm3, %v1623_v12, 0 }
 0x641   :  { %v1238_v57 = vpop.f32.mrf.mxu1  ;;  %2572 = vmatpush3.bf16.msra.mxu0 %v1532_v51 }
 0x642   :  { %v1239_v61 = vadd.f32 %v1238_v57, %v2959_v8  ;;  %2583 = vmatprep.subr.bf16.mxu0 %v2750_v50  ;;  %v1388_v8 = vpack.c.bf16 %v1231_v47, %v1231_v47 }
 0x644   :  { %1346 = vxpose.xlu1.b32.start.end [1/1] (short) (narrow) %v1239_v61, 8  ;;  %v1486_v30 = vsel %vm556_vm2, %v1388_v8, 0  ;;  %v2004_v8 = vsub.s32 2, %v2835_v13 }
 0x6b4   :  { %v1266_v29 = vpop.trf.xlu1 }
 0x6b5   :  { %v1378_v15 = vmul.f32 0.35355338, %v1266_v29 }
 0x6b6   :  { %v1298_v20 = vpop.trf.xlu0 }
 0x6b7   :  { %v1382_v45 = vpack.c.bf16 %v1378_v15, %v1378_v15  ;;  %v1379_v24 = vmul.f32 0.35355338, %v1298_v20 }
 0x6b9   :  { %2556 = vmatmul.mubr.msk.bf16.vlgmr.msra.gmra.mxu1 %vm552_vm3, %v1382_v45  ;;  %v1383_v48 = vpack.c.bf16 %v1379_v24, %v1379_v24 }
 0x6ba   :  { %2560 = vmatpush3.bf16.msra.mxu1 %v1440_v23  ;;  %2561 = vmatprep.mubr.msk.bf16.mxu1 %vm2751_vm1, %v2750_v50  ;;  %v1330_v26 = vpop.trf.xlu0 }
 0x6bb   :  { %2565 = vmatprep.subr.bf16.mxu1 %v2750_v50  ;;  %v1380_v31 = vmul.f32 0.35355338, %v1330_v26 }
 0x6bd   :  { %v1384_v19 = vpack.c.bf16 %v1380_v31, %v1380_v31  ;;  %v2725_v31 = vld [vmem:[%s3331_s0] sm:$0xff] }
 0x6c0   :  { %v1362_v28 = vpop.trf.xlu1 }
 0x6c1   :  { %v1381_v49 = vmul.f32 0.35355338, %v1362_v28  ;;  %2562 = vmatmul.mubr.msk.bf16.vlgmr.msra.gmra.mxu1 %vm552_vm3, %v1383_v48  ;;  %v3181_v48 = vld [vmem:[%s3338_s7] ss:$0 sm:$0xff]  ;;  %v2005_v28 = vrot.slane %v2840_v14, %v2004_v8  ;;  %s2752_s7 = smov [#allocation2]  }
 0x6c2   :  { %2566 = vmatpush3.bf16.msra.mxu1 %v1486_v30  ;;  %2567 = vmatprep.mubr.msk.bf16.mxu1 %vm2751_vm1, %v2750_v50  ;;  %v2000_v27 = vadd.f32 %v3181_v48, %v3132_v22  ;;  %s2302_s15 = sshll.u32 %s2752_s7, 4  ;;  %s2303_s15 = int_to_ptr.vmem [resolvable:$true] %s2302_s15 }
 0x6c3   :  { %v1385_v32 = vpack.c.bf16 %v1381_v49, %v1381_v49  ;;  %2577 = vmatprep.subr.bf16.mxu1 %v2750_v50  ;;  %p2732_p1 = scmp.lt.s32.totalorder %s2303_s15, %s2303_s15 }
 0x6c4   :  { %v2010_v12 = vmul.f32 %v2005_v28, %v2000_v27 }
 0x6c5   :  { %2574 = vmatmul.mubr.msk.bf16.vlgmr.msra.gmra.mxu0 %vm552_vm3, %v1385_v32 }
 0x6c6   :  { %2584 = vmatpush3.bf16.xpose.msra.mxu0 %v1676_v17  ;;  %2585 = vmatprep.mubr.msk.bf16.mxu0 %vm2751_vm1, %v2750_v50  ;;  %v3192_v32 = vadd.f32 %v2725_v31, %v2010_v12 }
 0x6c7   :  { %2595 = vmatprep.subr.bf16.mxu0 %v2750_v50 }
 0x6c8   :  { %v2016_v22 = vsel %vm55_vm0, %v3192_v32, 0.0 }
 0x6c9   :  { %2568 = vmatmul.mubr.msk.bf16.vlgmr.msra.gmra.mxu1 %vm552_vm3, %v1384_v19  ;;  %v2024_v19 = vmul.f32 %v3192_v32, %v3192_v32 }
 0x6ca   :  { %2578 = vmatpush3.bf16.xpose.msra.mxu1 %v1630_v56  ;;  %2579 = vmatprep.mubr.msk.bf16.mxu1 %vm2751_vm1, %v2750_v50 }
 0x6cb   :  { %2589 = vmatprep.subr.bf16.mxu1 %v2750_v50  ;;  %v2026_v56 = vsel %vm55_vm0, %v2024_v19, 0.0 }
 0x779   :  { %v1430_v21 = vpop.f32.mrf.mxu1 }
 0x77a   :  { %v1574_v34 = vsel %vm552_vm3, %v1430_v21, -inf }
 0x77b   :  { %1575 = vmax.xlane.f32.xlu0 %v1574_v34  ;;  %v2557_v6 = vpop.f32.mrf.mxu1 }
 0x77c   :  { %v1236_v6 = vadd.f32 %v3139_v1, %v3031_v25 }
 0x77d   :  { %v1433_v37 = vpop.f32.mrf.mxu1 }
 0x77f   :  { %v2558_v39 = vpop.f32.mrf.mxu1 }
 0x780   :  { %v1624_v39 = vpack.c.bf16 %v1236_v6, %v1236_v6 }
 0x781   :  { %v1476_v40 = vpop.f32.mrf.mxu1 }
 0x782   :  { %v1577_v41 = vsel %vm552_vm3, %v1476_v40, -inf }
 0x783   :  { %1578 = vmax.xlane.f32.xlu1 %v1577_v41  ;;  %v2563_v42 = vpop.f32.mrf.mxu1 }
 0x785   :  { %v1479_v43 = vpop.f32.mrf.mxu1  ;;  %v1568_v44 = vpop.f32.mrf.mxu0 }
 0x786   :  { %v1583_v62 = vsel %vm552_vm3, %v1568_v44, -inf  ;;  %v1722_v43 = vsel %vm552_vm3, %v1624_v39, 0 }
 0x787   :  { %v2564_v7 = vpop.f32.mrf.mxu1  ;;  %v2575_v54 = vpop.f32.mrf.mxu0 }
 0x789   :  { %v1522_v55 = vpop.f32.mrf.mxu1  ;;  %v1571_v58 = vpop.f32.mrf.mxu0 }
 0x78a   :  { %v1580_v4 = vsel %vm552_vm3, %v1522_v55, -inf }
 0x78b   :  { %1581 = vmax.xlane.f32.xlu1 %v1580_v4  ;;  %v2569_v59 = vpop.f32.mrf.mxu1  ;;  %v2576_v60 = vpop.f32.mrf.mxu0 }
 0x78d   :  { %v1525_v63 = vpop.f32.mrf.mxu1 }
 0x78f   :  { %v2570_v53 = vpop.f32.mrf.mxu1  ;;  %1584 = vmax.xlane.f32.xlu1 %v1583_v62 }
 0x804   :  { %v1576_v9 = vpop.xlane.xlu0 %1575 }
 0x805   :  { %v1586_v51 = vsub.f32 %v1430_v21, %v1576_v9 }
 0x807   :  { %v1590_v57 = vmul.f32 1.442695, %v1586_v51 }
 0x809   :  { %2701 = vpow2.f32 %v1590_v57 }
 0x80c   :  { %v1579_v61 = vpop.xlane.xlu1 %1578 }
 0x80d   :  { %v1587_v18 = vsub.f32 %v1476_v40, %v1579_v61 }
 0x80f   :  { %v1592_v29 = vmul.f32 1.442695, %v1587_v18 }
 0x811   :  { %2703 = vpow2.f32 %v1592_v29 }
 0x814   :  { %v1582_v46 = vpop.xlane.xlu1 %1581 }
 0x815   :  { %v1588_v15 = vsub.f32 %v1522_v55, %v1582_v46 }
 0x816   :  { %v2702_v20 = vpop.eup %2701 }
 0x817   :  { %v1594_v45 = vmul.f32 1.442695, %v1588_v15  ;;  %v1598_v23 = vsel %vm552_vm3, %v2702_v20, 0.0 }
 0x818   :  { %1599 = vadd.xlane.f32.xlu0 %v1598_v23  ;;  %v1585_v47 = vpop.xlane.xlu1 %1584 }
 0x819   :  { %2705 = vpow2.f32 %v1594_v45  ;;  %v1589_v24 = vsub.f32 %v1568_v44, %v1585_v47  ;;  %v1247_v44 = vadd.f32 %v3142_v10, %v3041_v35 }
 0x81b   :  { %v1596_v11 = vmul.f32 1.442695, %v1589_v24  ;;  %v1625_v1 = vpack.c.bf16 %v1247_v44, %v1247_v44 }
 0x81d   :  { %2707 = vpow2.f32 %v1596_v11  ;;  %v1768_v58 = vsel %vm552_vm3, %v1625_v1, 0 }
 0x81e   :  { %v2704_v26 = vpop.eup %2703 }
 0x81f   :  { %v1601_v30 = vsel %vm552_vm3, %v2704_v26, 0.0 }
 0x820   :  { %1602 = vadd.xlane.f32.xlu1 %v1601_v30 }
 0x826   :  { %v2706_v49 = vpop.eup %2705 }
 0x827   :  { %v1604_v38 = vsel %vm552_vm3, %v2706_v49, 0.0 }
 0x828   :  { %1605 = vadd.xlane.f32.xlu0 %v1604_v38 }
 0x82a   :  { %v2708_v17 = vpop.eup %2707 }
 0x82b   :  { %v1607_v14 = vsel %vm552_vm3, %v2708_v17, 0.0 }
 0x82c   :  { %2017 = vadd.xlane.f32.xlu0 %v2016_v22  ;;  %1608 = vadd.xlane.f32.xlu1 %v1607_v14 }
 0x830   :  { %2027 = vadd.xlane.f32.xlu0 %v2026_v56 }
 0x8a1   :  { %v1600_v21 = vpop.xlane.xlu0 %1599 }
 0x8a2   :  { %2709 = vrcp.f32 %v1600_v21 }
 0x8a9   :  { %v1603_v34 = vpop.xlane.xlu1 %1602 }
 0x8aa   :  { %2711 = vrcp.f32 %v1603_v34 }
 0x8af   :  { %v2710_v37 = vpop.eup %2709 }
 0x8b0   :  { %v1614_v40 = vmul.f32 %v2710_v37, %v2702_v20 }
 0x8b1   :  { %v1606_v41 = vpop.xlane.xlu0 %1605 }
 0x8b2   :  { %2713 = vrcp.f32 %v1606_v41  ;;  %v1618_v42 = vpack.c.bf16 %v1614_v40, %v1614_v40  ;;  %v2009_v41 = vrot.slane %v3074_v3, %v2004_v8  ;;  %v2671_v8 = vld [vmem:[%s3341_s10 + $0x8] sm:$0xff]  }
 0x8b4   :  { %2580 = vmatmul.mubr.msk.bf16.vlgmr.msra.gmra.mxu1 %vm552_vm3, %v1618_v42 }
 0x8b5   :  { %2590 = vmatpush3.bf16.xpose.msra.mxu1 %v1722_v43  ;;  %v1609_v7 = vpop.xlane.xlu1 %1608  ;;  %2591 = vmatprep.mubr.msk.bf16.mxu1 %vm2751_vm1, %v2750_v50 }
 0x8b6   :  { %2715 = vrcp.f32 %v1609_v7  ;;  %2601 = vmatprep.subr.bf16.mxu1 %v2750_v50 }
 0x8b7   :  { %v2712_v25 = vpop.eup %2711 }
 0x8b8   :  { %v1615_v54 = vmul.f32 %v2712_v25, %v2704_v26 }
 0x8ba   :  { %v1619_v55 = vpack.c.bf16 %v1615_v54, %v1615_v54 }
 0x8bc   :  { %2586 = vmatmul.mubr.msk.bf16.vlgmr.msra.gmra.mxu0 %vm552_vm3, %v1619_v55 }
 0x8bd   :  { %2596 = vmatpush3.bf16.xpose.msra.mxu0 %v1768_v58  ;;  %2597 = vmatprep.mubr.msk.bf16.mxu0 %vm2751_vm1, %v2750_v50 }
 0x8be   :  { %2607 = vmatprep.subr.bf16.mxu0 %v2750_v50 }
 0x8bf   :  { %v2714_v35 = vpop.eup %2713 }
 0x8c0   :  { %v1616_v10 = vmul.f32 %v2714_v35, %v2706_v49 }
 0x8c2   :  { %v1620_v4 = vpack.c.bf16 %v1616_v10, %v1616_v10 }
 0x8c3   :  { %v2716_v59 = vpop.eup %2715 }
 0x8c4   :  { %2592 = vmatmul.mubr.msk.bf16.vlgmr.msra.gmra.mxu1 %vm552_vm3, %v1620_v4  ;;  %v1617_v60 = vmul.f32 %v2716_v59, %v2708_v17 }
 0x8c5   :  { %2602 = vmatpush3.bf16.msra.mxu1 %v3059_v0  ;;  %2603 = vmatprep.mubr.msk.bf16.mxu1 %vm2751_vm1, %v2750_v50 }
 0x8c6   :  { %v1621_v62 = vpack.c.bf16 %v1617_v60, %v1617_v60  ;;  %2613 = vmatprep.subr.bf16.mxu1 %v2750_v50 }
 0x8c8   :  { %2598 = vmatmul.mubr.msk.bf16.vlgmr.msra.gmra.mxu0 %vm552_vm3, %v1621_v62 }
 0x8c9   :  { %2608 = vmatpush3.bf16.msra.mxu0 %v3067_v52  ;;  %2609 = vmatprep.mubr.msk.bf16.mxu0 %vm2751_vm1, %v2750_v50 }
 0x8ca   :  { %2619 = vmatprep.subr.bf16.mxu0 %v2750_v50 }
 0x974   :  { %v1666_v63 = vpop.f32.mrf.mxu1 }
 0x975   :  { %v1810_v53 = vpack.c.bf16 %v1666_v63, %v1666_v63 }
 0x976   :  { %v2581_v9 = vpop.f32.mrf.mxu1 }
 0x977   :  { %2604 = vmatmul.mubr.msk.bf16.vlgmr.msra.gmra.mxu1 %vm552_vm3, %v1810_v53 }
 0x978   :  { %v1669_v0 = vpop.f32.mrf.mxu1  ;;  %2614 = vmatpush3.bf16.msra.mxu1 %v3092_v33  ;;  %2615 = vmatprep.mubr.msk.bf16.mxu1 %vm2751_vm1, %v2750_v50 }
 0x979   :  { %2625 = vmatprep.subr.bf16.mxu1 %v2750_v50 }
 0x97a   :  { %v2582_v51 = vpop.f32.mrf.mxu1 }
 0x97c   :  { %v1712_v52 = vpop.f32.mrf.mxu0 }
 0x97d   :  { %v1811_v57 = vpack.c.bf16 %v1712_v52, %v1712_v52 }
 0x97e   :  { %v2587_v61 = vpop.f32.mrf.mxu0 }
 0x97f   :  { %2610 = vmatmul.mubr.msk.bf16.vlgmr.msra.gmra.mxu0 %vm552_vm3, %v1811_v57 }
 0x980   :  { %v1715_v18 = vpop.f32.mrf.mxu0  ;;  %2620 = vmatpush3.bf16.msra.mxu0 %v3102_v36  ;;  %2621 = vmatprep.mubr.msk.bf16.mxu0 %vm2751_vm1, %v2750_v50 }
 0x981   :  { %2633 = vmatprep.subr.bf16.mxu0 %v2750_v50 }
 0x982   :  { %v2588_v33 = vpop.f32.mrf.mxu0 }
 0x984   :  { %v1758_v29 = vpop.f32.mrf.mxu1 }
 0x985   :  { %v1812_v46 = vpack.c.bf16 %v1758_v29, %v1758_v29 }
 0x986   :  { %v2593_v15 = vpop.f32.mrf.mxu1 }
 0x987   :  { %2616 = vmatmul.mubr.msk.bf16.vlgmr.msra.gmra.mxu1 %vm552_vm3, %v1812_v46 }
 0x988   :  { %v1761_v20 = vpop.f32.mrf.mxu1  ;;  %v1804_v45 = vpop.f32.mrf.mxu0  ;;  %2629 = vmatprep.mubr.msk.bf16.mxu1 %vm2751_vm1, %v2750_v50  ;;  %2626 = vmatpush3.bf16.msra.mxu1 %v2671_v8 }
 0x989   :  { %v1813_v23 = vpack.c.bf16 %v1804_v45, %v1804_v45  ;;  %2627 = vmatprep.subr.bf16.mxu1 %v2750_v50  ;;  %v2358_v20 = vld [vmem:[%s3339_s8] ss:$0 sm:$0xff]  ;;  %v2066_v45 = vsub.s32 4, %v2835_v13 }
 0x98a   :  { %v2594_v47 = vpop.f32.mrf.mxu1  ;;  %v2599_v24 = vpop.f32.mrf.mxu0 }
 0x98b   :  { %2622 = vmatmul.mubr.msk.bf16.vlgmr.msra.gmra.mxu0 %vm552_vm3, %v1813_v23  ;;  %v2359_v47 = vld [vmem:[%s3340_s9] ss:$0 sm:$0xff] }
 0x98c   :  { %v1807_v36 = vpop.f32.mrf.mxu0  ;;  %2649 = vmatprep.mubr.msk.bf16.mxu0 %vm2751_vm1, %v2750_v50 }
 0x98e   :  { %v2600_v11 = vpop.f32.mrf.mxu0 }
 0x98f   :  { %v2067_v11 = vrot.slane %v2843_v16, %v2066_v45 }
 0xa37   :  { %v1851_v26 = vpop.f32.mrf.mxu1 }
 0xa38   :  { %v1986_v14 = vsel %vm55_vm0, %v1851_v26, 0.0  ;;  %v2076_v26 = vsub.s32 3, %v2835_v13 }
 0xa39   :  { %v2605_v27 = vpop.f32.mrf.mxu1 }
 0xa3b   :  { %v1854_v28 = vpop.f32.mrf.mxu1 }
 0xa3d   :  { %v2606_v30 = vpop.f32.mrf.mxu1 }
 0xa3e   :  { %v2071_v30 = vrot.slane %v3077_v5, %v2066_v45  ;;  %v2673_v5 = vld [vmem:[%s3343_s12 + $0x38] sm:$0xff]  }
 0xa3f   :  { %v1894_v12 = vpop.f32.mrf.mxu0  ;;  %2634 = vmatpush3.bf16.msra.mxu0 %v2673_v5 }
 0xa40   :  { %v1987_v17 = vsel %vm55_vm0, %v1894_v12, 0.0  ;;  %2635 = vmatprep.subr.bf16.mxu0 %v2750_v50 }
 0xa41   :  { %v2611_v49 = vpop.f32.mrf.mxu0  ;;  %v1988_v56 = vadd.f32 %v1987_v17, %v1986_v14 }
 0xa42   :  { %v3279_v49 = vld [vmem:[%s3332_s1] sm:$0x3f] }
 0xa43   :  { %v1897_v31 = vpop.f32.mrf.mxu0 }
 0xa44   :  { %v2077_v31 = vrot.slane %v3279_v49, %v2076_v26 }
 0xa45   :  { %v2612_v38 = vpop.f32.mrf.mxu0 }
 0xa47   :  { %v1937_v22 = vpop.f32.mrf.mxu1 }
 0xa48   :  { %v1989_v19 = vsel %vm55_vm0, %v1937_v22, 0.0  ;;  %v2081_v22 = vrot.slane %v3074_v3, %v2076_v26 }
 0xa49   :  { %v2617_v21 = vpop.f32.mrf.mxu1  ;;  %v1990_v34 = vadd.f32 %v1989_v19, %v1988_v56 }
 0xa4a   :  { %v2674_v21 = vld [vmem:[%s3343_s12 + $0x30] sm:$0xff]  }
 0xa4b   :  { %v1940_v6 = vpop.f32.mrf.mxu1  ;;  %v1980_v37 = vpop.f32.mrf.mxu0  ;;  %2636 = vmatpush3.bf16.msra.mxu0 %v2674_v21 }
 0xa4c   :  { %v1991_v39 = vsel %vm55_vm0, %v1980_v37, 0.0  ;;  %2637 = vmatprep.subr.bf16.mxu0 %v2750_v50  ;;  %v2676_v6 = vld [vmem:[%s3343_s12 + $0x20] sm:$0xff]   ;;  %v2677_v37 = vld [vmem:[%s3343_s12 + $0x18] sm:$0xff]  }
 0xa4d   :  { %v1992_v40 = vadd.f32 %v1991_v39, %v1990_v34  ;;  %v2618_v42 = vpop.f32.mrf.mxu1  ;;  %v2623_v43 = vpop.f32.mrf.mxu0  ;;  %v2675_v34 = vld [vmem:[%s3343_s12 + $0x28] sm:$0xff]   ;;  %v2678_v39 = vld [vmem:[%s3343_s12 + $0x10] sm:$0xff]  }
 0xa4e   :  { %v2360_v42 = vld [vmem:[%s3342_s11] ss:$0 sm:$0xff] }
 0xa4f   :  { %v2001_v44 = vadd.f32 %v3181_v48, %v1992_v40  ;;  %v1983_v7 = vpop.f32.mrf.mxu0  ;;  %v2018_v48 = vpop.xlane.xlu0 %2017  ;;  %2638 = vmatpush3.bf16.msra.mxu0 %v2675_v34  ;;  %v2679_v40 = vld [vmem:[%s3343_s12 + $0x8] sm:$0xff]  }
 0xa50   :  { %v2022_v4 = vmul.f32 0.03125, %v2018_v48  ;;  %2639 = vmatprep.subr.bf16.mxu0 %v2750_v50 }
 0xa51   :  { %v2011_v25 = vmul.f32 %v2009_v41, %v2001_v44  ;;  %v2624_v1 = vpop.f32.mrf.mxu0  ;;  %v2680_v41 = vld [vmem:[%s3343_s12] sm:$0xff]  }
 0xa52   :  { %v2034_v60 = vmul.f32 %v2022_v4, %v2022_v4  ;;  %v2040_v46 = vsub.f32 %v3192_v32, %v2022_v4 }
 0xa53   :  { %v3250_v54 = vadd.f32 %v2011_v25, %v3024_v2  ;;  %v2672_v2 = vld [vmem:[%s3341_s10] sm:$0xff]   ;;  %v2028_v10 = vpop.xlane.xlu0 %2027  ;;  %2640 = vmatpush3.bf16.msra.mxu0 %v2676_v6 }
 0xa54   :  { %2628 = vmatpush3.bf16.msra.mxu1 %v2672_v2  ;;  %v2032_v59 = vmul.f32 0.03125, %v2028_v10  ;;  %2641 = vmatprep.subr.bf16.mxu0 %v2750_v50 }
 0xa55   :  { %v2019_v55 = vsel %vm55_vm0, %v3250_v54, 0.0  ;;  %v2025_v58 = vmul.f32 %v3250_v54, %v3250_v54 }
 0xa56   :  { %2020 = vadd.xlane.f32.xlu1 %v2019_v55  ;;  %v2036_v62 = vsub.f32 %v2032_v59, %v2034_v60 }
 0xa57   :  { %v2029_v35 = vsel %vm55_vm0, %v2025_v58, 0.0  ;;  %2642 = vmatpush3.bf16.msra.mxu0 %v2677_v37 }
 0xa58   :  { %v2038_v63 = vmax.f32 %v2036_v62, 0.0  ;;  %2643 = vmatprep.subr.bf16.mxu0 %v2750_v50 }
 0xa5a   :  { %2030 = vadd.xlane.f32.xlu1 %v2029_v35  ;;  %v2042_v53 = vadd.f32 1e-05, %v2038_v63 }
 0xa5b   :  { %2644 = vmatpush3.bf16.msra.mxu0 %v2678_v39 }
 0xa5c   :  { %2717 = vrsqrt.f32 %v2042_v53  ;;  %2645 = vmatprep.subr.bf16.mxu0 %v2750_v50 }
 0xa5f   :  { %2646 = vmatpush3.bf16.msra.mxu0 %v2679_v40 }
 0xa60   :  { %2647 = vmatprep.subr.bf16.mxu0 %v2750_v50 }
 0xa63   :  { %2648 = vmatpush3.bf16.msra.mxu0 %v2680_v41 }
 0xa69   :  { %v2718_v29 = vpop.eup %2717 }
 0xa6a   :  { %v2046_v15 = vmul.f32 %v2718_v29, %v2040_v46 }
 0xa6c   :  { %v2054_v23 = vmul.f32 %v2358_v20, %v2046_v15 }
 0xa6e   :  { %v2062_v28 = vadd.f32 %v2359_v47, %v2054_v23 }
 0xa70   :  { %v2072_v17 = vmul.f32 %v2067_v11, %v2062_v28 }
 0xa72   :  { %v2082_v16 = vadd.f32 %v2077_v31, %v2072_v17 }
 0xadf   :  { %v2021_v9 = vpop.xlane.xlu1 %2020 }
 0xae0   :  { %v2023_v0 = vmul.f32 0.03125, %v2021_v9 }
 0xae2   :  { %v2035_v52 = vmul.f32 %v2023_v0, %v2023_v0  ;;  %v2041_v24 = vsub.f32 %v3250_v54, %v2023_v0 }
 0xae3   :  { %v2031_v51 = vpop.xlane.xlu1 %2030 }
 0xae4   :  { %v2033_v57 = vmul.f32 0.03125, %v2031_v51 }
 0xae6   :  { %v2037_v61 = vsub.f32 %v2033_v57, %v2035_v52 }
 0xae8   :  { %v2039_v18 = vmax.f32 %v2037_v61, 0.0 }
 0xaea   :  { %v2043_v33 = vadd.f32 1e-05, %v2039_v18  ;;  %v2285_v18 = vsub.s32 5, %v2835_v13 }
 0xaec   :  { %2719 = vrsqrt.f32 %v2043_v33  ;;  %v2364_v33 = vld [vmem:[%s3344_s13] ss:$0 sm:$0xff]  ;;  %v2286_v29 = vrot.slane %v3279_v49, %v2285_v18  ;;  %v2290_v23 = vrot.slane %v3074_v3, %v2285_v18  ;;  %s2727_s13 = scalar_lea.vmem %s2303_s15, 256 }
 0xaed   :  { %p2728_p0 = scmp.ne.s32.totalorder %s2303_s15, %s2727_s13  ;;  %p2733_p2 = scmp.lt.s32.totalorder %s2727_s13, %s2727_s13 }
 0xaef   :  { %p2734_p3 = por %p2733_p2, %p2732_p1 }
 0xaf1   :  { %p2735_p4 = pnand %p2734_p3, %p2728_p0 }
 0xaf9   :  { %v2720_v36 = vpop.eup %2719 }
 0xafa   :  { %v2047_v27 = vmul.f32 %v2720_v36, %v2041_v24 }
 0xafc   :  { %v2055_v12 = vmul.f32 %v2358_v20, %v2047_v27 }
 0xafe   :  { %v2063_v38 = vadd.f32 %v2359_v47, %v2055_v12 }
 0xb00   :  { %v2073_v14 = vmul.f32 %v2071_v30, %v2063_v38 }
 0xb02   :  { %v2083_v19 = vadd.f32 %v2081_v22, %v2073_v14 }
 0xb04   :  { %v2084_v56 = vpack.c.bf16 %v2083_v19, %v2082_v16 }
 0xb06   :  { %2630 = vmatmul.mubr.msk.bf16.vlgmr.msra.gmra.mxu1 %vm55_vm0, %v2084_v56 }
 0xbc6   :  { %v2145_v43 = vpop.f32.mrf.mxu1 }
 0xbc7   :  { %v2146_v44 = vadd.f32 %v2360_v42, %v2145_v43 }
 0xbc8   :  { %v2631_v7 = vpop.f32.mrf.mxu1 }
 0xbc9   :  { %v2152_v25 = vmul.f32 %v2146_v44, %v2146_v44 }
 0xbca   :  { %v2148_v1 = vpop.f32.mrf.mxu1 }
 0xbcb   :  { %v2154_v55 = vmul.f32 %v2152_v25, %v2146_v44  ;;  %v2149_v58 = vadd.f32 %v2360_v42, %v2148_v1 }
 0xbcc   :  { %v2632_v35 = vpop.f32.mrf.mxu1 }
 0xbcd   :  { %v2156_v8 = vmul.f32 0.044715, %v2154_v55  ;;  %v2153_v2 = vmul.f32 %v2149_v58, %v2149_v58 }
 0xbcf   :  { %v2158_v50 = vadd.f32 %v2156_v8, %v2146_v44  ;;  %v2155_v48 = vmul.f32 %v2153_v2, %v2149_v58 }
 0xbd1   :  { %v2160_v10 = vmul.f32 0.7978846, %v2158_v50  ;;  %v2157_v4 = vmul.f32 0.044715, %v2155_v48 }
 0xbd3   :  { %2721 = vtanh.f32 %v2160_v10  ;;  %v2159_v59 = vadd.f32 %v2157_v4, %v2149_v58 }
 0xbd5   :  { %v2161_v60 = vmul.f32 0.7978846, %v2159_v59 }
 0xbd7   :  { %2723 = vtanh.f32 %v2161_v60 }
 0xbe0   :  { %v2722_v62 = vpop.eup %2721 }
 0xbe1   :  { %v2164_v63 = vadd.f32 1.0, %v2722_v62 }
 0xbe3   :  { %v2166_v9 = vmul.f32 0.5, %v2164_v63 }
 0xbe4   :  { %v2724_v53 = vpop.eup %2723 }
 0xbe5   :  { %v2165_v0 = vadd.f32 1.0, %v2724_v53  ;;  %v2168_v52 = vmul.f32 %v2166_v9, %v2146_v44 }
 0xbe7   :  { %v2167_v51 = vmul.f32 0.5, %v2165_v0 }
 0xbe9   :  { %v2169_v57 = vmul.f32 %v2167_v51, %v2149_v58 }
 0xbeb   :  { %v2170_v61 = vpack.c.bf16 %v2169_v57, %v2168_v52 }
 0xbed   :  { %2650 = vmatmul.mubr.bf16.vlgmr.msra.gmra.mxu0 %v2170_v61 }
 0xcad   :  { %v2276_v46 = vpop.f32.mrf.mxu0 }
 0xcae   :  { %v2277_v15 = vadd.f32 %v2364_v33, %v2276_v46 }
 0xcaf   :  { %v2651_v20 = vpop.f32.mrf.mxu0 }
 0xcb0   :  { %v2291_v45 = vmul.f32 %v2286_v29, %v2277_v15 }
 0xcb1   :  { %v2279_v47 = vpop.f32.mrf.mxu0 }
 0xcb2   :  { %v2293_v24 = vadd.f32 %v2291_v45, %v3192_v32  ;;  %v2280_v36 = vadd.f32 %v2364_v33, %v2279_v47 }
 0xcb3   :  { %v2652_v11 = vpop.f32.mrf.mxu0 }
 0xcb4   :  { %2295 = vst.msk [vmem:[#allocation2] sm:$0xff] %vm55_vm0, %v2293_v24  ;;  %v2292_v13 = vmul.f32 %v2290_v23, %v2280_v36 }
 0xcb6   :  { %v2294_v26 = vadd.f32 %v2292_v13, %v3250_v54 }
 0xcb8   :  { %2296 = vst.msk [vmem:[#allocation2 + $0x8] sm:$0xff] %vm55_vm0, %v2294_v26 }
 0xcb9   :  { %2738 = shalt.err (!%p2735_p4)
}
 0xcba   :  { %s2753_s16 = smov 128   ;;  %s2754_s10 = smov 8  }
 0xcbb   :  { %2308 = dma.vmem_to_hbm [thread:$0]  %s2303_s15, 256, %s3345_s14, [#allocation3], %s2753_s16, %s2753_s16, %s2754_s10  }
 0xcbc   :  { %2747 = dma.done.wait [#allocation3], 256  }
 0xcbd   :  { %2748 = vsyncadd [#allocation3], 4294967040 }
 0xcbe   :  { %2312 = vsyncpa [#allocation3], 1 }

// kernel: fn.1
= control target key start
LH: loop header
LB: loop body
LE: loop exit
PB: predicated region body
PF: predicated region fallthrough
CT: control target
= control target key end

     0   :  { %vm55_vm0 = vcmask 261120   ;;  %s3331_s0 = inlined_call_operand.vmem [shape: f32[2,8,32], index: 0, kind: input, shape index: {}]   ;;  %s3332_s1 = inlined_call_operand.vmem [shape: f32[2,6,32], index: 1, kind: input, shape index: {}]   ;;  %s3333_s2 = inlined_call_operand.vmem [shape: f32[1,32], index: 2, kind: input, shape index: {}]   ;;  %s3334_s3 = inlined_call_operand.vmem [shape: f32[1,32], index: 3, kind: input, shape index: {}]   ;;  %s3335_s4 = inlined_call_operand.vmem [shape: bf16[96,32], index: 4, kind: input, shape index: {}]   ;;  %s3336_s5 = inlined_call_operand.vmem [shape: f32[96,1], index: 5, kind: input, shape index: {}]   ;;  %s3337_s6 = inlined_call_operand.vmem [shape: bf16[4,8,32], index: 6, kind: input, shape index: {}]   ;;  %s3338_s7 = inlined_call_operand.vmem [shape: f32[1,32], index: 7, kind: input, shape index: {}]   ;;  %s3339_s8 = inlined_call_operand.vmem [shape: f32[1,32], index: 8, kind: input, shape index: {}]   ;;  %s3340_s9 = inlined_call_operand.vmem [shape: f32[1,32], index: 9, kind: input, shape index: {}]   ;;  %s3341_s10 = inlined_call_operand.vmem [shape: bf16[32,128], index: 10, kind: input, shape index: {}]   ;;  %s3342_s11 = inlined_call_operand.vmem [shape: f32[1,128], index: 11, kind: input, shape index: {}]   ;;  %s3343_s12 = inlined_call_operand.vmem [shape: bf16[128,32], index: 12, kind: input, shape index: {}]   ;;  %s3344_s13 = inlined_call_operand.vmem [shape: f32[1,32], index: 13, kind: input, shape index: {}]   ;;  %s3345_s14 = inlined_call_operand.hbm [shape: f32[2,8,32], index: 14, kind: output, shape index: {}]  }
   0x1   :  { %v49_v0 = vld [vmem:[%s3331_s0] sm:$0xff] }
   0x2   :  { %v56_v1 = vsel %vm55_vm0, %v49_v0, 0.0  ;;  %v65_v2 = vmul.f32 %v49_v0, %v49_v0 }
   0x3   :  { %57 = vadd.xlane.f32.xlu0 %v56_v1 }
   0x4   :  { %v67_v3 = vsel %vm55_vm0, %v65_v2, 0.0 }
   0x7   :  { %68 = vadd.xlane.f32.xlu0 %v67_v3 }
   0x8   :  { %19 = vsyncpa [#allocation3], 0  ;;  %v107_v12 = vlaneseq  ;;  %v2840_v14 = vld [vmem:[%s3332_s1] sm:$0x3f]  ;;  %v2749_v30 = vmov 0   ;;  %v210_v31 = vld [vmem:[%s3336_s5 + $0x18] sm:$0xff] }
   0x9   :  { %v2843_v16 = vadd.f32 1.0, %v2840_v14  ;;  %v2849_v19 = vld [vmem:[%s3333_s2] ss:$0 sm:$0xff]  ;;  %2664 = vset.pattern.permute.xlu0 %v2749_v30  ;;  %v208_v32 = vld [vmem:[%s3336_s5 + $0x8] sm:$0xff]  ;;  %v214_v34 = vld [vmem:[%s3336_s5 + $0x38] sm:$0xff]  ;;  %v2750_v50 = vmov 0.0  }
   0xa   :  { %v2835_v13 = vshrl.u32 %v107_v12, 7  ;;  %v2855_v22 = vld [vmem:[%s3334_s3] ss:$0 sm:$0xff]  ;;  %v213_v35 = vld [vmem:[%s3336_s5 + $0x30] sm:$0xff]  ;;  %v216_v36 = vld [vmem:[%s3336_s5 + $0x48] sm:$0xff]  ;;  %2465 = vmatprep.subr.bf16.mxu1 %v2750_v50  ;;  %vm2751_vm1 = vmmov 0  }
   0xb   :  { %v2868_v29 = vld [vmem:[%s3335_s4] sm:$0xff]   ;;  %v217_v38 = vld [vmem:[%s3336_s5 + $0x50] sm:$0xff]  ;;  %v2899_v45 = vld [vmem:[%s3335_s4 + $0x8] sm:$0xff]   ;;  %2467 = vmatprep.mubr.msk.bf16.mxu1 %vm2751_vm1, %v2750_v50  ;;  %vm556_vm2 = vcmask 1043456   ;;  %vm552_vm3 = vcmask 64512  }
   0xc   :  { %v109_v17 = vsub.s32 1, %v2835_v13  ;;  %v119_v21 = vsub.s32 0, %v2835_v13  ;;  %2453 = vmatprep.mubr.msk.bf16.mxu0 %vm55_vm0, %v2868_v29  ;;  %v207_v33 = vld [vmem:[%s3336_s5] sm:$0xff]  ;;  %v2904_v46 = vld [vmem:[%s3335_s4 + $0x10] sm:$0xff]   ;;  %v2913_v47 = vld [vmem:[%s3335_s4 + $0x18] sm:$0xff]  }
   0xd   :  { %v211_v37 = vld [vmem:[%s3336_s5 + $0x20] sm:$0xff]  ;;  %v2927_v49 = vld [vmem:[%s3335_s4 + $0x28] sm:$0xff]  }
   0xe   :  { %v110_v24 = vrot.slane %v2843_v16, %v109_v17  ;;  %v120_v26 = vrot.slane %v2840_v14, %v119_v21  ;;  %v2918_v48 = vld [vmem:[%s3335_s4 + $0x20] sm:$0xff]  }
  0x1d   :  { %240 = vperm.xlu0 %2664, %v210_v31  }
  0x21   :  { %230 = vperm.xlu0 %2664, %v208_v32  }
  0x25   :  { %260 = vperm.xlu0 %2664, %v214_v34  }
  0x8c   :  { %v58_v4 = vpop.xlane.xlu0 %57 }
  0x8d   :  { %v63_v5 = vmul.f32 0.03125, %v58_v4 }
  0x8f   :  { %v75_v7 = vmul.f32 %v63_v5, %v63_v5  ;;  %v81_v15 = vsub.f32 %v49_v0, %v63_v5 }
  0x90   :  { %v69_v6 = vpop.xlane.xlu0 %68 }
  0x91   :  { %v73_v8 = vmul.f32 0.03125, %v69_v6 }
  0x93   :  { %v77_v9 = vsub.f32 %v73_v8, %v75_v7 }
  0x95   :  { %v79_v10 = vmax.f32 %v77_v9, 0.0 }
  0x97   :  { %v83_v11 = vadd.f32 1e-05, %v79_v10 }
  0x98   :  { %v2933_v51 = vpop.permute.xlu0 %240 }
  0x99   :  { %2681 = vrsqrt.f32 %v83_v11 }
  0x9c   :  { %v2940_v57 = vpop.permute.xlu0 %230 }
  0xa0   :  { %v2964_v12 = vpop.permute.xlu0 %260 }
  0xa6   :  { %v2682_v18 = vpop.eup %2681 }
  0xa7   :  { %v87_v20 = vmul.f32 %v2682_v18, %v81_v15 }
  0xa9   :  { %v95_v23 = vmul.f32 %v2849_v19, %v87_v20 }
  0xab   :  { %v103_v25 = vadd.f32 %v2855_v22, %v95_v23 }
  0xad   :  { %v115_v27 = vmul.f32 %v110_v24, %v103_v25 }
  0xaf   :  { %v125_v28 = vadd.f32 %v120_v26, %v115_v27 }
  0xb1   :  { %127 = vxpose.xlu1.b32.start.end [1/1] (short) (narrow) %v125_v28, 32 }
  0xcf   :  { %2663 = vset.pattern.permute.xlu1 %v2749_v30 }
  0xdb   :  { %225 = vperm.xlu1 %2663, %v207_v33  }
  0xdf   :  { %255 = vperm.xlu1 %2663, %v213_v35  }
  0xe3   :  { %270 = vperm.xlu1 %2663, %v216_v36  }
  0xe7   :  { %245 = vperm.xlu1 %2663, %v211_v37  }
  0xeb   :  { %275 = vperm.xlu1 %2663, %v217_v38  }
 0x12d   :  { %v143_v39 = vpop.trf.xlu1 }
 0x131   :  { %v144_v40 = vpop.trf.xlu1 }
 0x132   :  { %v191_v44 = vpack.c.bf16 %v144_v40, %v143_v39 }
 0x135   :  { %v145_v41 = vpop.trf.xlu1 }
 0x139   :  { %v146_v42 = vpop.trf.xlu1 }
 0x13a   :  { %v192_v43 = vpack.c.bf16 %v146_v42, %v145_v41 }
 0x13c   :  { %2449 = vmatprep.subr.bf16.mxu0 %v192_v43 }
 0x13d   :  { %2450 = vmatpush3.bf16.msra.mxu0 %v192_v43 }
 0x13e   :  { %2451 = vmatprep.subr.bf16.mxu0 %v191_v44 }
 0x141   :  { %2452 = vmatpush3.bf16.msra.mxu0 %v191_v44 }
 0x142   :  { %2489 = vmatprep.subr.bf16.mxu0 %v2750_v50 }
 0x144   :  { %2454 = vmatmul.mubr.msk.bf16.vlgmr.msra.gmra.mxu0 %vm55_vm0, %v2899_v45 }
 0x145   :  { %2457 = vmatprep.mubr.msk.bf16.mxu0 %vm55_vm0, %v2904_v46 }
 0x14c   :  { %2458 = vmatmul.mubr.msk.bf16.gmra.mxu0 %vm55_vm0, %v2913_v47 }
 0x14d   :  { %2461 = vmatprep.mubr.msk.bf16.mxu0 %vm55_vm0, %v2918_v48 }
 0x154   :  { %2462 = vmatmul.mubr.msk.bf16.gmra.mxu0 %vm55_vm0, %v2927_v49 }
 0x155   :  { %2491 = vmatprep.mubr.msk.bf16.mxu0 %vm2751_vm1, %v2750_v50 }
 0x156   :  { %v2937_v53 = vpop.permute.xlu1 %225 }
 0x15a   :  { %v2948_v61 = vpop.permute.xlu1 %255 }
 0x15e   :  { %v2959_v8 = vpop.permute.xlu1 %270 }
 0x162   :  { %v2962_v11 = vpop.permute.xlu1 %245 }
 0x166   :  { %v2967_v18 = vpop.permute.xlu1 %275 }
 0x204   :  { %v2935_v52 = vpop.f32.mrf.mxu0 }
 0x206   :  { %v365_v54 = vpop.f32.mrf.mxu0 }
 0x207   :  { %v366_v55 = vadd.f32 %v365_v54, %v2937_v53 }
 0x208   :  { %v2456_v56 = vpop.f32.mrf.mxu0 }
 0x209   :  { %v377_v58 = vadd.f32 %v2456_v56, %v2933_v51  ;;  %412 = vxpose.xlu0.b32.start.end [1/1] (short) (narrow) %v366_v55, 8 }
 0x20a   :  { %v368_v59 = vpop.f32.mrf.mxu0 }
 0x20b   :  { %v369_v60 = vadd.f32 %v368_v59, %v2940_v57  ;;  %444 = vxpose.xlu1.b32.start.end [1/1] (short) (narrow) %v377_v58, 8 }
 0x20c   :  { %v2459_v62 = vpop.f32.mrf.mxu0 }
 0x20d   :  { %v548_v63 = vpack.c.bf16 %v369_v60, %v369_v60  ;;  %v390_v0 = vadd.f32 %v2459_v62, %v2948_v61 }
 0x20e   :  { %v381_v1 = vpop.f32.mrf.mxu0 }
 0x20f   :  { %476 = vxpose.xlu0.b32.start.end [1/1] (short) (narrow) %v390_v0, 8  ;;  %v558_v2 = vsel %vm556_vm2, %v548_v63, 0  ;;  %v382_v15 = vadd.f32 %v381_v1, %v2962_v11 }
 0x210   :  { %v2460_v3 = vpop.f32.mrf.mxu0  ;;  %2466 = vmatpush3.bf16.msra.mxu1 %v558_v2 }
 0x211   :  { %2471 = vmatprep.subr.bf16.mxu1 %v2750_v50  ;;  %v549_v23 = vpack.c.bf16 %v382_v15, %v382_v15  ;;  %v393_v28 = vadd.f32 %v2460_v3, %v2964_v12 }
 0x212   :  { %v2953_v4 = vpop.f32.mrf.mxu0 }
 0x213   :  { %v604_v27 = vsel %vm556_vm2, %v549_v23, 0  ;;  %v550_v31 = vpack.c.bf16 %v393_v28, %v393_v28 }
 0x214   :  { %v2463_v5 = vpop.f32.mrf.mxu0 }
 0x215   :  { %v650_v34 = vsel %vm556_vm2, %v550_v31, 0  ;;  %v406_v35 = vadd.f32 %v2463_v5, %v2967_v18 }
 0x216   :  { %v2955_v6 = vpop.f32.mrf.mxu0 }
 0x217   :  { %v551_v37 = vpack.c.bf16 %v406_v35, %v406_v35 }
 0x218   :  { %v2957_v7 = vpop.f32.mrf.mxu0 }
 0x219   :  { %v696_v40 = vsel %vm556_vm2, %v551_v37, 0 }
 0x21a   :  { %v400_v9 = vpop.f32.mrf.mxu0 }
 0x21b   :  { %v401_v10 = vadd.f32 %v400_v9, %v2959_v8 }
 0x21d   :  { %508 = vxpose.xlu0.b32.start.end [1/1] (short) (narrow) %v401_v10, 8 }
 0x285   :  { %v428_v20 = vpop.trf.xlu0 }
 0x286   :  { %v540_v24 = vmul.f32 0.35355338, %v428_v20 }
 0x287   :  { %v460_v25 = vpop.trf.xlu1 }
 0x288   :  { %v544_v26 = vpack.c.bf16 %v540_v24, %v540_v24  ;;  %v541_v30 = vmul.f32 0.35355338, %v460_v25  ;;  %v212_v24 = vld [vmem:[%s3336_s5 + $0x28] sm:$0xff]  ;;  %v209_v25 = vld [vmem:[%s3336_s5 + $0x10] sm:$0xff] }
 0x28a   :  { %2468 = vmatmul.mubr.msk.bf16.vlgmr.msra.gmra.mxu1 %vm552_vm3, %v544_v26  ;;  %v545_v32 = vpack.c.bf16 %v541_v30, %v541_v30 }
 0x28b   :  { %2472 = vmatpush3.bf16.msra.mxu1 %v604_v27  ;;  %2473 = vmatprep.mubr.msk.bf16.mxu1 %vm2751_vm1, %v2750_v50  ;;  %v492_v33 = vpop.trf.xlu0 }
 0x28c   :  { %2477 = vmatprep.subr.bf16.mxu1 %v2750_v50  ;;  %v542_v36 = vmul.f32 0.35355338, %v492_v33 }
 0x28e   :  { %v546_v38 = vpack.c.bf16 %v542_v36, %v542_v36 }
 0x292   :  { %2474 = vmatmul.mubr.msk.bf16.vlgmr.msra.gmra.mxu1 %vm552_vm3, %v545_v32 }
 0x293   :  { %2478 = vmatpush3.bf16.msra.mxu1 %v650_v34  ;;  %2479 = vmatprep.mubr.msk.bf16.mxu1 %vm2751_vm1, %v2750_v50 }
 0x294   :  { %2483 = vmatprep.subr.bf16.mxu1 %v2750_v50 }
 0x299   :  { %v524_v39 = vpop.trf.xlu0 }
 0x29a   :  { %2480 = vmatmul.mubr.msk.bf16.vlgmr.msra.gmra.mxu1 %vm552_vm3, %v546_v38  ;;  %v543_v41 = vmul.f32 0.35355338, %v524_v39 }
 0x29b   :  { %2484 = vmatpush3.bf16.msra.mxu1 %v696_v40  ;;  %2485 = vmatprep.mubr.msk.bf16.mxu1 %vm2751_vm1, %v2750_v50 }
 0x29c   :  { %2495 = vmatprep.subr.bf16.mxu1 %v2750_v50  ;;  %v547_v42 = vpack.c.bf16 %v543_v41, %v543_v41 }
 0x2a2   :  { %2486 = vmatmul.mubr.msk.bf16.vlgmr.msra.gmra.mxu1 %vm552_vm3, %v547_v42 }
 0x2a3   :  { %2497 = vmatprep.mubr.msk.bf16.mxu1 %vm2751_vm1, %v2750_v50 }
 0x34a   :  { %v594_v43 = vpop.f32.mrf.mxu1 }
 0x34b   :  { %v738_v44 = vsel %vm552_vm3, %v594_v43, -inf }
 0x34c   :  { %739 = vmax.xlane.f32.xlu0 %v738_v44  ;;  %v2469_v54 = vpop.f32.mrf.mxu1 }
 0x34e   :  { %v597_v55 = vpop.f32.mrf.mxu1 }
 0x350   :  { %v2470_v56 = vpop.f32.mrf.mxu1 }
 0x352   :  { %v640_v58 = vpop.f32.mrf.mxu1 }
 0x353   :  { %v741_v59 = vsel %vm552_vm3, %v640_v58, -inf }
 0x354   :  { %742 = vmax.xlane.f32.xlu1 %v741_v59  ;;  %v2475_v60 = vpop.f32.mrf.mxu1 }
 0x356   :  { %v643_v62 = vpop.f32.mrf.mxu1 }
 0x358   :  { %v2476_v63 = vpop.f32.mrf.mxu1 }
 0x35a   :  { %v686_v0 = vpop.f32.mrf.mxu1 }
 0x35b   :  { %v744_v1 = vsel %vm552_vm3, %v686_v0, -inf }
 0x35c   :  { %745 = vmax.xlane.f32.xlu1 %v744_v1  ;;  %v2481_v2 = vpop.f32.mrf.mxu1  ;;  %v215_v1 = vld [vmem:[%s3336_s5 + $0x40] sm:$0xff] }
 0x35d   :  { %v3024_v2 = vld [vmem:[%s3331_s0 + $0x8] sm:$0xff] }
 0x35e   :  { %v689_v3 = vpop.f32.mrf.mxu1 }
 0x35f   :  { %v59_v3 = vsel %vm55_vm0, %v3024_v2, 0.0 }
 0x360   :  { %v2482_v5 = vpop.f32.mrf.mxu1 }
 0x361   :  { %v66_v5 = vmul.f32 %v3024_v2, %v3024_v2 }
 0x362   :  { %v732_v9 = vpop.f32.mrf.mxu1 }
 0x363   :  { %v747_v10 = vsel %vm552_vm3, %v732_v9, -inf }
 0x364   :  { %748 = vmax.xlane.f32.xlu0 %v747_v10  ;;  %v2487_v15 = vpop.f32.mrf.mxu1 }
 0x366   :  { %v735_v20 = vpop.f32.mrf.mxu1 }
 0x368   :  { %v2488_v23 = vpop.f32.mrf.mxu1 }
 0x36d   :  { %250 = vperm.xlu1 %2663, %v212_v24  }
 0x37a   :  { %235 = vperm.xlu0 %2664, %v209_v25  }
 0x3d5   :  { %v740_v26 = vpop.xlane.xlu0 %739 }
 0x3d6   :  { %v750_v27 = vsub.f32 %v594_v43, %v740_v26 }
 0x3d8   :  { %v754_v28 = vmul.f32 1.442695, %v750_v27 }
 0x3da   :  { %2683 = vpow2.f32 %v754_v28 }
 0x3dd   :  { %v743_v30 = vpop.xlane.xlu1 %742 }
 0x3de   :  { %v751_v31 = vsub.f32 %v640_v58, %v743_v30 }
 0x3e0   :  { %v756_v32 = vmul.f32 1.442695, %v751_v31 }
 0x3e2   :  { %2685 = vpow2.f32 %v756_v32 }
 0x3e5   :  { %v746_v33 = vpop.xlane.xlu1 %745 }
 0x3e6   :  { %v752_v34 = vsub.f32 %v686_v0, %v746_v33 }
 0x3e7   :  { %v2684_v35 = vpop.eup %2683 }
 0x3e8   :  { %v758_v36 = vmul.f32 1.442695, %v752_v34  ;;  %v762_v37 = vsel %vm552_vm3, %v2684_v35, 0.0 }
 0x3e9   :  { %v3000_v38 = vpop.permute.xlu1 %250  ;;  %763 = vadd.xlane.f32.xlu1 %v762_v37 }
 0x3ea   :  { %2687 = vpow2.f32 %v758_v36  ;;  %v385_v39 = vadd.f32 %v2953_v4, %v3000_v38 }
 0x3ec   :  { %v787_v40 = vpack.c.bf16 %v385_v39, %v385_v39 }
 0x3ed   :  { %v749_v41 = vpop.xlane.xlu0 %748 }
 0x3ee   :  { %v753_v42 = vsub.f32 %v732_v9, %v749_v41  ;;  %v840_v43 = vsel %vm552_vm3, %v787_v40, 0  ;;  %v70_v9 = vsel %vm55_vm0, %v66_v5, 0.0 }
 0x3ef   :  { %v2686_v44 = vpop.eup %2685  ;;  %2496 = vmatpush3.bf16.xpose.msra.mxu1 %v840_v43 }
 0x3f0   :  { %v760_v54 = vmul.f32 1.442695, %v753_v42  ;;  %v765_v55 = vsel %vm552_vm3, %v2686_v44, 0.0  ;;  %2507 = vmatprep.subr.bf16.mxu1 %v2750_v50 }
 0x3f1   :  { %766 = vadd.xlane.f32.xlu0 %v765_v55 }
 0x3f2   :  { %2689 = vpow2.f32 %v760_v54 }
 0x3f5   :  { %v3007_v56 = vpop.permute.xlu0 %235 }
 0x3f6   :  { %v374_v58 = vadd.f32 %v2935_v52, %v3007_v56  ;;  %v218_v52 = vld [vmem:[%s3336_s5 + $0x58] sm:$0xff] }
 0x3f7   :  { %v2688_v4 = vpop.eup %2687 }
 0x3f8   :  { %v786_v59 = vpack.c.bf16 %v374_v58, %v374_v58  ;;  %v768_v60 = vsel %vm552_vm3, %v2688_v4, 0.0 }
 0x3f9   :  { %769 = vadd.xlane.f32.xlu1 %v768_v60 }
 0x3fa   :  { %v794_v62 = vsel %vm552_vm3, %v786_v59, 0 }
 0x3fb   :  { %2490 = vmatpush3.bf16.xpose.msra.mxu0 %v794_v62  ;;  %v219_v62 = vld [vmem:[%s3337_s6] sm:$0xf] }
 0x3fc   :  { %2501 = vmatprep.subr.bf16.mxu0 %v2750_v50 }
 0x3ff   :  { %v2690_v63 = vpop.eup %2689 }
 0x400   :  { %v771_v0 = vsel %vm552_vm3, %v2690_v63, 0.0 }
 0x401   :  { %772 = vadd.xlane.f32.xlu1 %v771_v0  ;;  %v3059_v0 = vsel %vm556_vm2, %v219_v62, 0 }
 0x407   :  { %265 = vperm.xlu0 %2664, %v215_v1   ;;  %v220_v1 = vld [vmem:[%s3337_s6 + $0x4] sm:$0xf] }
 0x412   :  { %280 = vperm.xlu1 %2663, %v218_v52   ;;  %v3067_v52 = vsel %vm556_vm2, %v220_v1, 0 }
 0x426   :  { %60 = vadd.xlane.f32.xlu0 %v59_v3  ;;  %v3074_v3 = vld [vmem:[%s3332_s1 + $0x8] sm:$0x3f] }
 0x427   :  { %v3077_v5 = vadd.f32 1.0, %v3074_v3 }
 0x436   :  { %71 = vadd.xlane.f32.xlu1 %v70_v9 }
 0x472   :  { %v764_v10 = vpop.xlane.xlu1 %763 }
 0x473   :  { %2691 = vrcp.f32 %v764_v10 }
 0x47a   :  { %v767_v15 = vpop.xlane.xlu0 %766 }
 0x47b   :  { %2693 = vrcp.f32 %v767_v15 }
 0x480   :  { %v2692_v20 = vpop.eup %2691 }
 0x481   :  { %v778_v23 = vmul.f32 %v2692_v20, %v2684_v35  ;;  %v114_v20 = vrot.slane %v3077_v5, %v109_v17 }
 0x482   :  { %v770_v24 = vpop.xlane.xlu1 %769  ;;  %v3031_v25 = vpop.permute.xlu0 %265 }
 0x483   :  { %v782_v26 = vpack.c.bf16 %v778_v23, %v778_v23  ;;  %2695 = vrcp.f32 %v770_v24  ;;  %v398_v27 = vadd.f32 %v2955_v6, %v3031_v25  ;;  %v124_v24 = vrot.slane %v3074_v3, %v119_v21 }
 0x485   :  { %v788_v28 = vpack.c.bf16 %v398_v27, %v398_v27  ;;  %2492 = vmatmul.mubr.msk.bf16.vlgmr.msra.gmra.mxu0 %vm552_vm3, %v782_v26 }
 0x486   :  { %2503 = vmatprep.mubr.msk.bf16.mxu0 %vm2751_vm1, %v2750_v50 }
 0x487   :  { %v886_v30 = vsel %vm552_vm3, %v788_v28, 0 }
 0x488   :  { %v2694_v31 = vpop.eup %2693  ;;  %2502 = vmatpush3.bf16.xpose.msra.mxu0 %v886_v30  ;;  %v221_v30 = vld [vmem:[%s3337_s6 + $0x8] sm:$0xf] }
 0x489   :  { %v779_v32 = vmul.f32 %v2694_v31, %v2686_v44  ;;  %2513 = vmatprep.subr.bf16.mxu0 %v2750_v50 }
 0x48a   :  { %v773_v33 = vpop.xlane.xlu1 %772 }
 0x48b   :  { %2697 = vrcp.f32 %v773_v33  ;;  %v783_v34 = vpack.c.bf16 %v779_v32, %v779_v32  ;;  %v3092_v33 = vsel %vm556_vm2, %v221_v30, 0 }
 0x48d   :  { %2498 = vmatmul.mubr.msk.bf16.vlgmr.msra.gmra.mxu1 %vm552_vm3, %v783_v34 }
 0x48e   :  { %v3041_v35 = vpop.permute.xlu1 %280  ;;  %2509 = vmatprep.mubr.msk.bf16.mxu1 %vm2751_vm1, %v2750_v50 }
 0x48f   :  { %v409_v6 = vadd.f32 %v2957_v7, %v3041_v35 }
 0x490   :  { %v2696_v36 = vpop.eup %2695 }
 0x491   :  { %v789_v37 = vpack.c.bf16 %v409_v6, %v409_v6  ;;  %v780_v39 = vmul.f32 %v2696_v36, %v2688_v4 }
 0x493   :  { %v932_v40 = vsel %vm552_vm3, %v789_v37, 0  ;;  %v784_v41 = vpack.c.bf16 %v780_v39, %v780_v39 }
 0x494   :  { %2508 = vmatpush3.bf16.xpose.msra.mxu1 %v932_v40 }
 0x495   :  { %2504 = vmatmul.mubr.msk.bf16.vlgmr.msra.gmra.mxu0 %vm552_vm3, %v784_v41  ;;  %2519 = vmatprep.subr.bf16.mxu1 %v2750_v50 }
 0x496   :  { %2515 = vmatprep.mubr.msk.bf16.mxu0 %vm2751_vm1, %v2750_v50  ;;  %2514 = vmatpush3.bf16.msra.mxu0 %v3059_v0 }
 0x497   :  { %2525 = vmatprep.subr.bf16.mxu0 %v2750_v50 }
 0x498   :  { %v2698_v42 = vpop.eup %2697 }
 0x499   :  { %v781_v43 = vmul.f32 %v2698_v42, %v2690_v63 }
 0x49b   :  { %v785_v44 = vpack.c.bf16 %v781_v43, %v781_v43 }
 0x49d   :  { %2510 = vmatmul.mubr.msk.bf16.vlgmr.msra.gmra.mxu1 %vm552_vm3, %v785_v44 }
 0x49e   :  { %2521 = vmatprep.mubr.msk.bf16.mxu1 %vm2751_vm1, %v2750_v50  ;;  %2520 = vmatpush3.bf16.msra.mxu1 %v3067_v52 }
 0x49f   :  { %2531 = vmatprep.subr.bf16.mxu1 %v2750_v50 }
 0x4af   :  { %v61_v7 = vpop.xlane.xlu0 %60 }
 0x4b0   :  { %v64_v54 = vmul.f32 0.03125, %v61_v7 }
 0x4b2   :  { %v76_v55 = vmul.f32 %v64_v54, %v64_v54  ;;  %v82_v9 = vsub.f32 %v3024_v2, %v64_v54 }
 0x4bf   :  { %v72_v58 = vpop.xlane.xlu1 %71 }
 0x4c0   :  { %v74_v4 = vmul.f32 0.03125, %v72_v58 }
 0x4c2   :  { %v78_v59 = vsub.f32 %v74_v4, %v76_v55 }
 0x4c4   :  { %v80_v60 = vmax.f32 %v78_v59, 0.0 }
 0x4c6   :  { %v84_v63 = vadd.f32 1e-05, %v80_v60 }
 0x4c8   :  { %2699 = vrsqrt.f32 %v84_v63 }
 0x4d5   :  { %v2700_v10 = vpop.eup %2699 }
 0x4d6   :  { %v88_v15 = vmul.f32 %v2700_v10, %v82_v9 }
 0x4d8   :  { %v96_v23 = vmul.f32 %v2849_v19, %v88_v15 }
 0x4da   :  { %v104_v26 = vadd.f32 %v2855_v22, %v96_v23  ;;  %v222_v22 = vld [vmem:[%s3337_s6 + $0xc] sm:$0xf] }
 0x4db   :  { %v3102_v36 = vsel %vm556_vm2, %v222_v22, 0 }
 0x4dc   :  { %v116_v27 = vmul.f32 %v114_v20, %v104_v26 }
 0x4de   :  { %v126_v28 = vadd.f32 %v124_v24, %v116_v27 }
 0x4e0   :  { %159 = vxpose.xlu0.b32.start.end [1/1] (short) (narrow) %v126_v28, 32 }
 0x545   :  { %v830_v31 = vpop.f32.mrf.mxu0 }
 0x546   :  { %v974_v32 = vpack.c.bf16 %v830_v31, %v830_v31 }
 0x547   :  { %v2493_v17 = vpop.f32.mrf.mxu0 }
 0x548   :  { %2516 = vmatmul.mubr.msk.bf16.vlgmr.msra.gmra.mxu0 %vm552_vm3, %v974_v32 }
 0x549   :  { %v833_v19 = vpop.f32.mrf.mxu0  ;;  %2526 = vmatpush3.bf16.msra.mxu0 %v3092_v33  ;;  %2527 = vmatprep.mubr.msk.bf16.mxu0 %vm2751_vm1, %v2750_v50 }
 0x54b   :  { %v2494_v21 = vpop.f32.mrf.mxu0 }
 0x54d   :  { %v876_v34 = vpop.f32.mrf.mxu1 }
 0x54e   :  { %v975_v6 = vpack.c.bf16 %v876_v34, %v876_v34 }
 0x54f   :  { %v2499_v37 = vpop.f32.mrf.mxu1 }
 0x550   :  { %2522 = vmatmul.mubr.msk.bf16.vlgmr.msra.gmra.mxu1 %vm552_vm3, %v975_v6 }
 0x551   :  { %v879_v39 = vpop.f32.mrf.mxu1  ;;  %2532 = vmatpush3.bf16.msra.mxu1 %v3102_v36  ;;  %2533 = vmatprep.mubr.msk.bf16.mxu1 %vm2751_vm1, %v2750_v50 }
 0x553   :  { %v2500_v40 = vpop.f32.mrf.mxu1 }
 0x555   :  { %v922_v41 = vpop.f32.mrf.mxu0 }
 0x556   :  { %v976_v42 = vpack.c.bf16 %v922_v41, %v922_v41 }
 0x557   :  { %v2505_v43 = vpop.f32.mrf.mxu0 }
 0x558   :  { %2528 = vmatmul.mubr.msk.bf16.vlgmr.msra.gmra.mxu0 %vm552_vm3, %v976_v42 }
 0x559   :  { %v925_v44 = vpop.f32.mrf.mxu0  ;;  %2541 = vmatprep.mubr.msk.bf16.mxu0 %vm55_vm0, %v2868_v29 }
 0x55b   :  { %v2506_v7 = vpop.f32.mrf.mxu0 }
 0x55c   :  { %v175_v54 = vpop.trf.xlu0 }
 0x55d   :  { %v968_v55 = vpop.f32.mrf.mxu1 }
 0x55e   :  { %v977_v58 = vpack.c.bf16 %v968_v55, %v968_v55 }
 0x55f   :  { %v2511_v4 = vpop.f32.mrf.mxu1 }
 0x560   :  { %2534 = vmatmul.mubr.msk.bf16.vlgmr.msra.gmra.mxu1 %vm552_vm3, %v977_v58  ;;  %v176_v59 = vpop.trf.xlu0 }
 0x561   :  { %v971_v60 = vpop.f32.mrf.mxu1  ;;  %2545 = vmatprep.mubr.msk.bf16.mxu1 %vm55_vm0, %v2904_v46  ;;  %v193_v10 = vpack.c.bf16 %v176_v59, %v175_v54 }
 0x563   :  { %v2512_v62 = vpop.f32.mrf.mxu1 }
 0x564   :  { %v177_v63 = vpop.trf.xlu0 }
 0x568   :  { %v178_v1 = vpop.trf.xlu0 }
 0x569   :  { %v194_v9 = vpack.c.bf16 %v178_v1, %v177_v63 }
 0x56b   :  { %2537 = vmatprep.subr.bf16.mxu0 %v194_v9  ;;  %2653 = vmatprep.subr.bf16.mxu1 %v194_v9 }
 0x56c   :  { %2538 = vmatpush3.bf16.msra.mxu0 %v194_v9  ;;  %2655 = vmatpush3.bf16.msra.mxu1 %v194_v9 }
 0x56d   :  { %2539 = vmatprep.subr.bf16.mxu0 %v193_v10  ;;  %2654 = vmatprep.subr.bf16.mxu1 %v193_v10 }
 0x570   :  { %2540 = vmatpush3.bf16.msra.mxu0 %v193_v10  ;;  %2656 = vmatpush3.bf16.msra.mxu1 %v193_v10 }
 0x571   :  { %2553 = vmatprep.subr.bf16.mxu1 %v2750_v50  ;;  %2571 = vmatprep.subr.bf16.mxu0 %v2750_v50 }
 0x573   :  { %2542 = vmatmul.mubr.msk.bf16.vlgmr.msra.gmra.mxu0 %vm55_vm0, %v2899_v45  ;;  %2546 = vmatmul.mubr.msk.bf16.vlgmr.msra.gmra.mxu1 %vm55_vm0, %v2913_v47 }
 0x574   :  { %2549 = vmatprep.mubr.msk.bf16.mxu1 %vm55_vm0, %v2918_v48  ;;  %2573 = vmatprep.mubr.msk.bf16.mxu0 %vm2751_vm1, %v2750_v50 }
 0x57b   :  { %2550 = vmatmul.mubr.msk.bf16.gmra.mxu1 %vm55_vm0, %v2927_v49 }
 0x57c   :  { %2555 = vmatprep.mubr.msk.bf16.mxu1 %vm2751_vm1, %v2750_v50 }
 0x608   :  { %v1018_v29 = vpop.f32.mrf.mxu0 }
 0x609   :  { %v1162_v23 = vsel %vm55_vm0, %v1018_v29, 0.0 }
 0x60a   :  { %v2517_v46 = vpop.f32.mrf.mxu0 }
 0x60c   :  { %v1021_v15 = vpop.f32.mrf.mxu0 }
 0x60e   :  { %v2518_v20 = vpop.f32.mrf.mxu0 }
 0x610   :  { %v1064_v45 = vpop.f32.mrf.mxu1 }
 0x611   :  { %v1163_v47 = vsel %vm55_vm0, %v1064_v45, 0.0 }
 0x612   :  { %v1164_v24 = vadd.f32 %v1163_v47, %v1162_v23  ;;  %v2523_v48 = vpop.f32.mrf.mxu1 }
 0x614   :  { %v1067_v26 = vpop.f32.mrf.mxu1 }
 0x616   :  { %v2524_v27 = vpop.f32.mrf.mxu1 }
 0x618   :  { %v1110_v28 = vpop.f32.mrf.mxu0 }
 0x619   :  { %v1165_v30 = vsel %vm55_vm0, %v1110_v28, 0.0 }
 0x61a   :  { %v1166_v49 = vadd.f32 %v1165_v30, %v1164_v24  ;;  %v2529_v31 = vpop.f32.mrf.mxu0 }
 0x61c   :  { %v1113_v32 = vpop.f32.mrf.mxu0 }
 0x61e   :  { %v2530_v17 = vpop.f32.mrf.mxu0 }
 0x620   :  { %v1156_v19 = vpop.f32.mrf.mxu1 }
 0x621   :  { %v1167_v21 = vsel %vm55_vm0, %v1156_v19, 0.0 }
 0x622   :  { %v3132_v22 = vadd.f32 %v1167_v21, %v1166_v49  ;;  %v2535_v34 = vpop.f32.mrf.mxu1 }
 0x624   :  { %v1159_v6 = vpop.f32.mrf.mxu1 }
 0x626   :  { %v2536_v37 = vpop.f32.mrf.mxu1 }
 0x633   :  { %v2543_v39 = vpop.f32.mrf.mxu0  ;;  %v2547_v40 = vpop.f32.mrf.mxu1 }
 0x634   :  { %v1228_v60 = vadd.f32 %v2547_v40, %v2948_v61  ;;  %v1212_v27 = vadd.f32 %v2543_v39, %v3007_v56 }
 0x635   :  { %v1203_v41 = vpop.f32.mrf.mxu0  ;;  %v1219_v42 = vpop.f32.mrf.mxu1 }
 0x636   :  { %v1204_v43 = vadd.f32 %v1203_v41, %v2937_v53 }
 0x637   :  { %v2544_v44 = vpop.f32.mrf.mxu0  ;;  %v2548_v7 = vpop.f32.mrf.mxu1 }
 0x638   :  { %v1215_v54 = vadd.f32 %v2544_v44, %v2933_v51  ;;  %1250 = vxpose.xlu1.b32.start.end [1/1] (short) (narrow) %v1204_v43, 8  ;;  %v1231_v47 = vadd.f32 %v2548_v7, %v2964_v12 }
 0x639   :  { %v1206_v55 = vpop.f32.mrf.mxu0  ;;  %v1222_v58 = vpop.f32.mrf.mxu1 }
 0x63a   :  { %v1207_v4 = vadd.f32 %v1206_v55, %v2940_v57  ;;  %1282 = vxpose.xlu0.b32.start.end [1/1] (short) (narrow) %v1215_v54, 8 }
 0x63b   :  { %v2551_v59 = vpop.f32.mrf.mxu1 }
 0x63c   :  { %v1386_v62 = vpack.c.bf16 %v1207_v4, %v1207_v4  ;;  %v1244_v63 = vadd.f32 %v2551_v59, %v2967_v18  ;;  %v1220_v18 = vadd.f32 %v1219_v42, %v2962_v11  ;;  %v1223_v11 = vadd.f32 %v1222_v58, %v3000_v38 }
 0x63d   :  { %v3139_v1 = vpop.f32.mrf.mxu1  ;;  %v1622_v38 = vpack.c.bf16 %v1212_v27, %v1212_v27 }
 0x63e   :  { %v1394_v53 = vsel %vm556_vm2, %v1386_v62, 0  ;;  %v1389_v9 = vpack.c.bf16 %v1244_v63, %v1244_v63  ;;  %1314 = vxpose.xlu0.b32.start.end [1/1] (short) (narrow) %v1228_v60, 8  ;;  %v1387_v46 = vpack.c.bf16 %v1220_v18, %v1220_v18  ;;  %v1623_v12 = vpack.c.bf16 %v1223_v11, %v1223_v11 }
 0x63f   :  { %v3142_v10 = vpop.f32.mrf.mxu1  ;;  %2554 = vmatpush3.bf16.msra.mxu1 %v1394_v53  ;;  %v1630_v56 = vsel %vm552_vm3, %v1622_v38, 0 }
 0x640   :  { %v1532_v51 = vsel %vm556_vm2, %v1389_v9, 0  ;;  %2559 = vmatprep.subr.bf16.mxu1 %v2750_v50  ;;  %v1440_v23 = vsel %vm556_vm2, %v1387_v46, 0  ;;  %v1676_v17 = vsel %vm552_vm3, %v1623_v12, 0 }
 0x641   :  { %v1238_v57 = vpop.f32.mrf.mxu1  ;;  %2572 = vmatpush3.bf16.msra.mxu0 %v1532_v51 }
 0x642   :  { %v1239_v61 = vadd.f32 %v1238_v57, %v2959_v8  ;;  %2583 = vmatprep.subr.bf16.mxu0 %v2750_v50  ;;  %v1388_v8 = vpack.c.bf16 %v1231_v47, %v1231_v47 }
 0x644   :  { %1346 = vxpose.xlu1.b32.start.end [1/1] (short) (narrow) %v1239_v61, 8  ;;  %v1486_v30 = vsel %vm556_vm2, %v1388_v8, 0  ;;  %v2004_v8 = vsub.s32 2, %v2835_v13 }
 0x6b4   :  { %v1266_v29 = vpop.trf.xlu1 }
 0x6b5   :  { %v1378_v15 = vmul.f32 0.35355338, %v1266_v29 }
 0x6b6   :  { %v1298_v20 = vpop.trf.xlu0 }
 0x6b7   :  { %v1382_v45 = vpack.c.bf16 %v1378_v15, %v1378_v15  ;;  %v1379_v24 = vmul.f32 0.35355338, %v1298_v20 }
 0x6b9   :  { %2556 = vmatmul.mubr.msk.bf16.vlgmr.msra.gmra.mxu1 %vm552_vm3, %v1382_v45  ;;  %v1383_v48 = vpack.c.bf16 %v1379_v24, %v1379_v24 }
 0x6ba   :  { %2560 = vmatpush3.bf16.msra.mxu1 %v1440_v23  ;;  %2561 = vmatprep.mubr.msk.bf16.mxu1 %vm2751_vm1, %v2750_v50  ;;  %v1330_v26 = vpop.trf.xlu0 }
 0x6bb   :  { %2565 = vmatprep.subr.bf16.mxu1 %v2750_v50  ;;  %v1380_v31 = vmul.f32 0.35355338, %v1330_v26 }
 0x6bd   :  { %v1384_v19 = vpack.c.bf16 %v1380_v31, %v1380_v31  ;;  %v2725_v31 = vld [vmem:[%s3331_s0] sm:$0xff] }
 0x6c0   :  { %v1362_v28 = vpop.trf.xlu1 }
 0x6c1   :  { %v1381_v49 = vmul.f32 0.35355338, %v1362_v28  ;;  %2562 = vmatmul.mubr.msk.bf16.vlgmr.msra.gmra.mxu1 %vm552_vm3, %v1383_v48  ;;  %v3181_v48 = vld [vmem:[%s3338_s7] ss:$0 sm:$0xff]  ;;  %v2005_v28 = vrot.slane %v2840_v14, %v2004_v8  ;;  %s2752_s7 = smov [#allocation2]  }
 0x6c2   :  { %2566 = vmatpush3.bf16.msra.mxu1 %v1486_v30  ;;  %2567 = vmatprep.mubr.msk.bf16.mxu1 %vm2751_vm1, %v2750_v50  ;;  %v2000_v27 = vadd.f32 %v3181_v48, %v3132_v22  ;;  %s2302_s15 = sshll.u32 %s2752_s7, 4  ;;  %s2303_s15 = int_to_ptr.vmem [resolvable:$true] %s2302_s15 }
 0x6c3   :  { %v1385_v32 = vpack.c.bf16 %v1381_v49, %v1381_v49  ;;  %2577 = vmatprep.subr.bf16.mxu1 %v2750_v50  ;;  %p2732_p1 = scmp.lt.s32.totalorder %s2303_s15, %s2303_s15 }
 0x6c4   :  { %v2010_v12 = vmul.f32 %v2005_v28, %v2000_v27 }
 0x6c5   :  { %2574 = vmatmul.mubr.msk.bf16.vlgmr.msra.gmra.mxu0 %vm552_vm3, %v1385_v32 }
 0x6c6   :  { %2584 = vmatpush3.bf16.xpose.msra.mxu0 %v1676_v17  ;;  %2585 = vmatprep.mubr.msk.bf16.mxu0 %vm2751_vm1, %v2750_v50  ;;  %v3192_v32 = vadd.f32 %v2725_v31, %v2010_v12 }
 0x6c7   :  { %2595 = vmatprep.subr.bf16.mxu0 %v2750_v50 }
 0x6c8   :  { %v2016_v22 = vsel %vm55_vm0, %v3192_v32, 0.0 }
 0x6c9   :  { %2568 = vmatmul.mubr.msk.bf16.vlgmr.msra.gmra.mxu1 %vm552_vm3, %v1384_v19  ;;  %v2024_v19 = vmul.f32 %v3192_v32, %v3192_v32 }
 0x6ca   :  { %2578 = vmatpush3.bf16.xpose.msra.mxu1 %v1630_v56  ;;  %2579 = vmatprep.mubr.msk.bf16.mxu1 %vm2751_vm1, %v2750_v50 }
 0x6cb   :  { %2589 = vmatprep.subr.bf16.mxu1 %v2750_v50  ;;  %v2026_v56 = vsel %vm55_vm0, %v2024_v19, 0.0 }
 0x779   :  { %v1430_v21 = vpop.f32.mrf.mxu1 }
 0x77a   :  { %v1574_v34 = vsel %vm552_vm3, %v1430_v21, -inf }
 0x77b   :  { %1575 = vmax.xlane.f32.xlu0 %v1574_v34  ;;  %v2557_v6 = vpop.f32.mrf.mxu1 }
 0x77c   :  { %v1236_v6 = vadd.f32 %v3139_v1, %v3031_v25 }
 0x77d   :  { %v1433_v37 = vpop.f32.mrf.mxu1 }
 0x77f   :  { %v2558_v39 = vpop.f32.mrf.mxu1 }
 0x780   :  { %v1624_v39 = vpack.c.bf16 %v1236_v6, %v1236_v6 }
 0x781   :  { %v1476_v40 = vpop.f32.mrf.mxu1 }
 0x782   :  { %v1577_v41 = vsel %vm552_vm3, %v1476_v40, -inf }
 0x783   :  { %1578 = vmax.xlane.f32.xlu1 %v1577_v41  ;;  %v2563_v42 = vpop.f32.mrf.mxu1 }
 0x785   :  { %v1479_v43 = vpop.f32.mrf.mxu1  ;;  %v1568_v44 = vpop.f32.mrf.mxu0 }
 0x786   :  { %v1583_v62 = vsel %vm552_vm3, %v1568_v44, -inf  ;;  %v1722_v43 = vsel %vm552_vm3, %v1624_v39, 0 }
 0x787   :  { %v2564_v7 = vpop.f32.mrf.mxu1  ;;  %v2575_v54 = vpop.f32.mrf.mxu0 }
 0x789   :  { %v1522_v55 = vpop.f32.mrf.mxu1  ;;  %v1571_v58 = vpop.f32.mrf.mxu0 }
 0x78a   :  { %v1580_v4 = vsel %vm552_vm3, %v1522_v55, -inf }
 0x78b   :  { %1581 = vmax.xlane.f32.xlu1 %v1580_v4  ;;  %v2569_v59 = vpop.f32.mrf.mxu1  ;;  %v2576_v60 = vpop.f32.mrf.mxu0 }
 0x78d   :  { %v1525_v63 = vpop.f32.mrf.mxu1 }
 0x78f   :  { %v2570_v53 = vpop.f32.mrf.mxu1  ;;  %1584 = vmax.xlane.f32.xlu1 %v1583_v62 }
 0x804   :  { %v1576_v9 = vpop.xlane.xlu0 %1575 }
 0x805   :  { %v1586_v51 = vsub.f32 %v1430_v21, %v1576_v9 }
 0x807   :  { %v1590_v57 = vmul.f32 1.442695, %v1586_v51 }
 0x809   :  { %2701 = vpow2.f32 %v1590_v57 }
 0x80c   :  { %v1579_v61 = vpop.xlane.xlu1 %1578 }
 0x80d   :  { %v1587_v18 = vsub.f32 %v1476_v40, %v1579_v61 }
 0x80f   :  { %v1592_v29 = vmul.f32 1.442695, %v1587_v18 }
 0x811   :  { %2703 = vpow2.f32 %v1592_v29 }
 0x814   :  { %v1582_v46 = vpop.xlane.xlu1 %1581 }
 0x815   :  { %v1588_v15 = vsub.f32 %v1522_v55, %v1582_v46 }
 0x816   :  { %v2702_v20 = vpop.eup %2701 }
 0x817   :  { %v1594_v45 = vmul.f32 1.442695, %v1588_v15  ;;  %v1598_v23 = vsel %vm552_vm3, %v2702_v20, 0.0 }
 0x818   :  { %1599 = vadd.xlane.f32.xlu0 %v1598_v23  ;;  %v1585_v47 = vpop.xlane.xlu1 %1584 }
 0x819   :  { %2705 = vpow2.f32 %v1594_v45  ;;  %v1589_v24 = vsub.f32 %v1568_v44, %v1585_v47  ;;  %v1247_v44 = vadd.f32 %v3142_v10, %v3041_v35 }
 0x81b   :  { %v1596_v11 = vmul.f32 1.442695, %v1589_v24  ;;  %v1625_v1 = vpack.c.bf16 %v1247_v44, %v1247_v44 }
 0x81d   :  { %2707 = vpow2.f32 %v1596_v11  ;;  %v1768_v58 = vsel %vm552_vm3, %v1625_v1, 0 }
 0x81e   :  { %v2704_v26 = vpop.eup %2703 }
 0x81f   :  { %v1601_v30 = vsel %vm552_vm3, %v2704_v26, 0.0 }
 0x820   :  { %1602 = vadd.xlane.f32.xlu1 %v1601_v30 }
 0x826   :  { %v2706_v49 = vpop.eup %2705 }
 0x827   :  { %v1604_v38 = vsel %vm552_vm3, %v2706_v49, 0.0 }
 0x828   :  { %1605 = vadd.xlane.f32.xlu0 %v1604_v38 }
 0x82a   :  { %v2708_v17 = vpop.eup %2707 }
 0x82b   :  { %v1607_v14 = vsel %vm552_vm3, %v2708_v17, 0.0 }
 0x82c   :  { %2017 = vadd.xlane.f32.xlu0 %v2016_v22  ;;  %1608 = vadd.xlane.f32.xlu1 %v1607_v14 }
 0x830   :  { %2027 = vadd.xlane.f32.xlu0 %v2026_v56 }
 0x8a1   :  { %v1600_v21 = vpop.xlane.xlu0 %1599 }
 0x8a2   :  { %2709 = vrcp.f32 %v1600_v21 }
 0x8a9   :  { %v1603_v34 = vpop.xlane.xlu1 %1602 }
 0x8aa   :  { %2711 = vrcp.f32 %v1603_v34 }
 0x8af   :  { %v2710_v37 = vpop.eup %2709 }
 0x8b0   :  { %v1614_v40 = vmul.f32 %v2710_v37, %v2702_v20 }
 0x8b1   :  { %v1606_v41 = vpop.xlane.xlu0 %1605 }
 0x8b2   :  { %2713 = vrcp.f32 %v1606_v41  ;;  %v1618_v42 = vpack.c.bf16 %v1614_v40, %v1614_v40  ;;  %v2009_v41 = vrot.slane %v3074_v3, %v2004_v8  ;;  %v2671_v8 = vld [vmem:[%s3341_s10 + $0x8] sm:$0xff]  }
 0x8b4   :  { %2580 = vmatmul.mubr.msk.bf16.vlgmr.msra.gmra.mxu1 %vm552_vm3, %v1618_v42 }
 0x8b5   :  { %2590 = vmatpush3.bf16.xpose.msra.mxu1 %v1722_v43  ;;  %v1609_v7 = vpop.xlane.xlu1 %1608  ;;  %2591 = vmatprep.mubr.msk.bf16.mxu1 %vm2751_vm1, %v2750_v50 }
 0x8b6   :  { %2715 = vrcp.f32 %v1609_v7  ;;  %2601 = vmatprep.subr.bf16.mxu1 %v2750_v50 }
 0x8b7   :  { %v2712_v25 = vpop.eup %2711 }
 0x8b8   :  { %v1615_v54 = vmul.f32 %v2712_v25, %v2704_v26 }
 0x8ba   :  { %v1619_v55 = vpack.c.bf16 %v1615_v54, %v1615_v54 }
 0x8bc   :  { %2586 = vmatmul.mubr.msk.bf16.vlgmr.msra.gmra.mxu0 %vm552_vm3, %v1619_v55 }
 0x8bd   :  { %2596 = vmatpush3.bf16.xpose.msra.mxu0 %v1768_v58  ;;  %2597 = vmatprep.mubr.msk.bf16.mxu0 %vm2751_vm1, %v2750_v50 }
 0x8be   :  { %2607 = vmatprep.subr.bf16.mxu0 %v2750_v50 }
 0x8bf   :  { %v2714_v35 = vpop.eup %2713 }
 0x8c0   :  { %v1616_v10 = vmul.f32 %v2714_v35, %v2706_v49 }
 0x8c2   :  { %v1620_v4 = vpack.c.bf16 %v1616_v10, %v1616_v10 }
 0x8c3   :  { %v2716_v59 = vpop.eup %2715 }
 0x8c4   :  { %2592 = vmatmul.mubr.msk.bf16.vlgmr.msra.gmra.mxu1 %vm552_vm3, %v1620_v4  ;;  %v1617_v60 = vmul.f32 %v2716_v59, %v2708_v17 }
 0x8c5   :  { %2602 = vmatpush3.bf16.msra.mxu1 %v3059_v0  ;;  %2603 = vmatprep.mubr.msk.bf16.mxu1 %vm2751_vm1, %v2750_v50 }
 0x8c6   :  { %v1621_v62 = vpack.c.bf16 %v1617_v60, %v1617_v60  ;;  %2613 = vmatprep.subr.bf16.mxu1 %v2750_v50 }
 0x8c8   :  { %2598 = vmatmul.mubr.msk.bf16.vlgmr.msra.gmra.mxu0 %vm552_vm3, %v1621_v62 }
 0x8c9   :  { %2608 = vmatpush3.bf16.msra.mxu0 %v3067_v52  ;;  %2609 = vmatprep.mubr.msk.bf16.mxu0 %vm2751_vm1, %v2750_v50 }
 0x8ca   :  { %2619 = vmatprep.subr.bf16.mxu0 %v2750_v50 }
 0x974   :  { %v1666_v63 = vpop.f32.mrf.mxu1 }
 0x975   :  { %v1810_v53 = vpack.c.bf16 %v1666_v63, %v1666_v63 }
 0x976   :  { %v2581_v9 = vpop.f32.mrf.mxu1 }
 0x977   :  { %2604 = vmatmul.mubr.msk.bf16.vlgmr.msra.gmra.mxu1 %vm552_vm3, %v1810_v53 }
 0x978   :  { %v1669_v0 = vpop.f32.mrf.mxu1  ;;  %2614 = vmatpush3.bf16.msra.mxu1 %v3092_v33  ;;  %2615 = vmatprep.mubr.msk.bf16.mxu1 %vm2751_vm1, %v2750_v50 }
 0x979   :  { %2625 = vmatprep.subr.bf16.mxu1 %v2750_v50 }
 0x97a   :  { %v2582_v51 = vpop.f32.mrf.mxu1 }
 0x97c   :  { %v1712_v52 = vpop.f32.mrf.mxu0 }
 0x97d   :  { %v1811_v57 = vpack.c.bf16 %v1712_v52, %v1712_v52 }
 0x97e   :  { %v2587_v61 = vpop.f32.mrf.mxu0 }
 0x97f   :  { %2610 = vmatmul.mubr.msk.bf16.vlgmr.msra.gmra.mxu0 %vm552_vm3, %v1811_v57 }
 0x980   :  { %v1715_v18 = vpop.f32.mrf.mxu0  ;;  %2620 = vmatpush3.bf16.msra.mxu0 %v3102_v36  ;;  %2621 = vmatprep.mubr.msk.bf16.mxu0 %vm2751_vm1, %v2750_v50 }
 0x981   :  { %2633 = vmatprep.subr.bf16.mxu0 %v2750_v50 }
 0x982   :  { %v2588_v33 = vpop.f32.mrf.mxu0 }
 0x984   :  { %v1758_v29 = vpop.f32.mrf.mxu1 }
 0x985   :  { %v1812_v46 = vpack.c.bf16 %v1758_v29, %v1758_v29 }
 0x986   :  { %v2593_v15 = vpop.f32.mrf.mxu1 }
 0x987   :  { %2616 = vmatmul.mubr.msk.bf16.vlgmr.msra.gmra.mxu1 %vm552_vm3, %v1812_v46 }
 0x988   :  { %v1761_v20 = vpop.f32.mrf.mxu1  ;;  %v1804_v45 = vpop.f32.mrf.mxu0  ;;  %2629 = vmatprep.mubr.msk.bf16.mxu1 %vm2751_vm1, %v2750_v50  ;;  %2626 = vmatpush3.bf16.msra.mxu1 %v2671_v8 }
 0x989   :  { %v1813_v23 = vpack.c.bf16 %v1804_v45, %v1804_v45  ;;  %2627 = vmatprep.subr.bf16.mxu1 %v2750_v50  ;;  %v2358_v20 = vld [vmem:[%s3339_s8] ss:$0 sm:$0xff]  ;;  %v2066_v45 = vsub.s32 4, %v2835_v13 }
 0x98a   :  { %v2594_v47 = vpop.f32.mrf.mxu1  ;;  %v2599_v24 = vpop.f32.mrf.mxu0 }
 0x98b   :  { %2622 = vmatmul.mubr.msk.bf16.vlgmr.msra.gmra.mxu0 %vm552_vm3, %v1813_v23  ;;  %v2359_v47 = vld [vmem:[%s3340_s9] ss:$0 sm:$0xff] }
 0x98c   :  { %v1807_v36 = vpop.f32.mrf.mxu0  ;;  %2649 = vmatprep.mubr.msk.bf16.mxu0 %vm2751_vm1, %v2750_v50 }
 0x98e   :  { %v2600_v11 = vpop.f32.mrf.mxu0 }
 0x98f   :  { %v2067_v11 = vrot.slane %v2843_v16, %v2066_v45 }
 0xa37   :  { %v1851_v26 = vpop.f32.mrf.mxu1 }
 0xa38   :  { %v1986_v14 = vsel %vm55_vm0, %v1851_v26, 0.0  ;;  %v2076_v26 = vsub.s32 3, %v2835_v13 }
 0xa39   :  { %v2605_v27 = vpop.f32.mrf.mxu1 }
 0xa3b   :  { %v1854_v28 = vpop.f32.mrf.mxu1 }
 0xa3d   :  { %v2606_v30 = vpop.f32.mrf.mxu1 }
 0xa3e   :  { %v2071_v30 = vrot.slane %v3077_v5, %v2066_v45  ;;  %v2673_v5 = vld [vmem:[%s3343_s12 + $0x38] sm:$0xff]  }
 0xa3f   :  { %v1894_v12 = vpop.f32.mrf.mxu0  ;;  %2634 = vmatpush3.bf16.msra.mxu0 %v2673_v5 }
 0xa40   :  { %v1987_v17 = vsel %vm55_vm0, %v1894_v12, 0.0  ;;  %2635 = vmatprep.subr.bf16.mxu0 %v2750_v50 }
 0xa41   :  { %v2611_v49 = vpop.f32.mrf.mxu0  ;;  %v1988_v56 = vadd.f32 %v1987_v17, %v1986_v14 }
 0xa42   :  { %v3279_v49 = vld [vmem:[%s3332_s1] sm:$0x3f] }
 0xa43   :  { %v1897_v31 = vpop.f32.mrf.mxu0 }
 0xa44   :  { %v2077_v31 = vrot.slane %v3279_v49, %v2076_v26 }
 0xa45   :  { %v2612_v38 = vpop.f32.mrf.mxu0 }
 0xa47   :  { %v1937_v22 = vpop.f32.mrf.mxu1 }
 0xa48   :  { %v1989_v19 = vsel %vm55_vm0, %v1937_v22, 0.0  ;;  %v2081_v22 = vrot.slane %v3074_v3, %v2076_v26 }
 0xa49   :  { %v2617_v21 = vpop.f32.mrf.mxu1  ;;  %v1990_v34 = vadd.f32 %v1989_v19, %v1988_v56 }
 0xa4a   :  { %v2674_v21 = vld [vmem:[%s3343_s12 + $0x30] sm:$0xff]  }
 0xa4b   :  { %v1940_v6 = vpop.f32.mrf.mxu1  ;;  %v1980_v37 = vpop.f32.mrf.mxu0  ;;  %2636 = vmatpush3.bf16.msra.mxu0 %v2674_v21 }
 0xa4c   :  { %v1991_v39 = vsel %vm55_vm0, %v1980_v37, 0.0  ;;  %2637 = vmatprep.subr.bf16.mxu0 %v2750_v50  ;;  %v2676_v6 = vld [vmem:[%s3343_s12 + $0x20] sm:$0xff]   ;;  %v2677_v37 = vld [vmem:[%s3343_s12 + $0x18] sm:$0xff]  }
 0xa4d   :  { %v1992_v40 = vadd.f32 %v1991_v39, %v1990_v34  ;;  %v2618_v42 = vpop.f32.mrf.mxu1  ;;  %v2623_v43 = vpop.f32.mrf.mxu0  ;;  %v2675_v34 = vld [vmem:[%s3343_s12 + $0x28] sm:$0xff]   ;;  %v2678_v39 = vld [vmem:[%s3343_s12 + $0x10] sm:$0xff]  }
 0xa4e   :  { %v2360_v42 = vld [vmem:[%s3342_s11] ss:$0 sm:$0xff] }
 0xa4f   :  { %v2001_v44 = vadd.f32 %v3181_v48, %v1992_v40  ;;  %v1983_v7 = vpop.f32.mrf.mxu0  ;;  %v2018_v48 = vpop.xlane.xlu0 %2017  ;;  %2638 = vmatpush3.bf16.msra.mxu0 %v2675_v34  ;;  %v2679_v40 = vld [vmem:[%s3343_s12 + $0x8] sm:$0xff]  }
 0xa50   :  { %v2022_v4 = vmul.f32 0.03125, %v2018_v48  ;;  %2639 = vmatprep.subr.bf16.mxu0 %v2750_v50 }
 0xa51   :  { %v2011_v25 = vmul.f32 %v2009_v41, %v2001_v44  ;;  %v2624_v1 = vpop.f32.mrf.mxu0  ;;  %v2680_v41 = vld [vmem:[%s3343_s12] sm:$0xff]  }
 0xa52   :  { %v2034_v60 = vmul.f32 %v2022_v4, %v2022_v4  ;;  %v2040_v46 = vsub.f32 %v3192_v32, %v2022_v4 }
 0xa53   :  { %v3250_v54 = vadd.f32 %v2011_v25, %v3024_v2  ;;  %v2672_v2 = vld [vmem:[%s3341_s10] sm:$0xff]   ;;  %v2028_v10 = vpop.xlane.xlu0 %2027  ;;  %2640 = vmatpush3.bf16.msra.mxu0 %v2676_v6 }
 0xa54   :  { %2628 = vmatpush3.bf16.msra.mxu1 %v2672_v2  ;;  %v2032_v59 = vmul.f32 0.03125, %v2028_v10  ;;  %2641 = vmatprep.subr.bf16.mxu0 %v2750_v50 }
 0xa55   :  { %v2019_v55 = vsel %vm55_vm0, %v3250_v54, 0.0  ;;  %v2025_v58 = vmul.f32 %v3250_v54, %v3250_v54 }
 0xa56   :  { %2020 = vadd.xlane.f32.xlu1 %v2019_v55  ;;  %v2036_v62 = vsub.f32 %v2032_v59, %v2034_v60 }
 0xa57   :  { %v2029_v35 = vsel %vm55_vm0, %v2025_v58, 0.0  ;;  %2642 = vmatpush3.bf16.msra.mxu0 %v2677_v37 }
 0xa58   :  { %v2038_v63 = vmax.f32 %v2036_v62, 0.0  ;;  %2643 = vmatprep.subr.bf16.mxu0 %v2750_v50 }
 0xa5a   :  { %2030 = vadd.xlane.f32.xlu1 %v2029_v35  ;;  %v2042_v53 = vadd.f32 1e-05, %v2038_v63 }
 0xa5b   :  { %2644 = vmatpush3.bf16.msra.mxu0 %v2678_v39 }
 0xa5c   :  { %2717 = vrsqrt.f32 %v2042_v53  ;;  %2645 = vmatprep.subr.bf16.mxu0 %v2750_v50 }
 0xa5f   :  { %2646 = vmatpush3.bf16.msra.mxu0 %v2679_v40 }
 0xa60   :  { %2647 = vmatprep.subr.bf16.mxu0 %v2750_v50 }
 0xa63   :  { %2648 = vmatpush3.bf16.msra.mxu0 %v2680_v41 }
 0xa69   :  { %v2718_v29 = vpop.eup %2717 }
 0xa6a   :  { %v2046_v15 = vmul.f32 %v2718_v29, %v2040_v46 }
 0xa6c   :  { %v2054_v23 = vmul.f32 %v2358_v20, %v2046_v15 }
 0xa6e   :  { %v2062_v28 = vadd.f32 %v2359_v47, %v2054_v23 }
 0xa70   :  { %v2072_v17 = vmul.f32 %v2067_v11, %v2062_v28 }
 0xa72   :  { %v2082_v16 = vadd.f32 %v2077_v31, %v2072_v17 }
 0xadf   :  { %v2021_v9 = vpop.xlane.xlu1 %2020 }
 0xae0   :  { %v2023_v0 = vmul.f32 0.03125, %v2021_v9 }
 0xae2   :  { %v2035_v52 = vmul.f32 %v2023_v0, %v2023_v0  ;;  %v2041_v24 = vsub.f32 %v3250_v54, %v2023_v0 }
 0xae3   :  { %v2031_v51 = vpop.xlane.xlu1 %2030 }
 0xae4   :  { %v2033_v57 = vmul.f32 0.03125, %v2031_v51 }
 0xae6   :  { %v2037_v61 = vsub.f32 %v2033_v57, %v2035_v52 }
 0xae8   :  { %v2039_v18 = vmax.f32 %v2037_v61, 0.0 }
 0xaea   :  { %v2043_v33 = vadd.f32 1e-05, %v2039_v18  ;;  %v2285_v18 = vsub.s32 5, %v2835_v13 }
 0xaec   :  { %2719 = vrsqrt.f32 %v2043_v33  ;;  %v2364_v33 = vld [vmem:[%s3344_s13] ss:$0 sm:$0xff]  ;;  %v2286_v29 = vrot.slane %v3279_v49, %v2285_v18  ;;  %v2290_v23 = vrot.slane %v3074_v3, %v2285_v18  ;;  %s2727_s13 = scalar_lea.vmem %s2303_s15, 256 }
 0xaed   :  { %p2728_p0 = scmp.ne.s32.totalorder %s2303_s15, %s2727_s13  ;;  %p2733_p2 = scmp.lt.s32.totalorder %s2727_s13, %s2727_s13 }
 0xaef   :  { %p2734_p3 = por %p2733_p2, %p2732_p1 }
 0xaf1   :  { %p2735_p4 = pnand %p2734_p3, %p2728_p0 }
 0xaf9   :  { %v2720_v36 = vpop.eup %2719 }
 0xafa   :  { %v2047_v27 = vmul.f32 %v2720_v36, %v2041_v24 }
 0xafc   :  { %v2055_v12 = vmul.f32 %v2358_v20, %v2047_v27 }
 0xafe   :  { %v2063_v38 = vadd.f32 %v2359_v47, %v2055_v12 }
 0xb00   :  { %v2073_v14 = vmul.f32 %v2071_v30, %v2063_v38 }
 0xb02   :  { %v2083_v19 = vadd.f32 %v2081_v22, %v2073_v14 }
 0xb04   :  { %v2084_v56 = vpack.c.bf16 %v2083_v19, %v2082_v16 }
 0xb06   :  { %2630 = vmatmul.mubr.msk.bf16.vlgmr.msra.gmra.mxu1 %vm55_vm0, %v2084_v56 }
 0xbc6   :  { %v2145_v43 = vpop.f32.mrf.mxu1 }
 0xbc7   :  { %v2146_v44 = vadd.f32 %v2360_v42, %v2145_v43 }
 0xbc8   :  { %v2631_v7 = vpop.f32.mrf.mxu1 }
 0xbc9   :  { %v2152_v25 = vmul.f32 %v2146_v44, %v2146_v44 }
 0xbca   :  { %v2148_v1 = vpop.f32.mrf.mxu1 }
 0xbcb   :  { %v2154_v55 = vmul.f32 %v2152_v25, %v2146_v44  ;;  %v2149_v58 = vadd.f32 %v2360_v42, %v2148_v1 }
 0xbcc   :  { %v2632_v35 = vpop.f32.mrf.mxu1 }
 0xbcd   :  { %v2156_v8 = vmul.f32 0.044715, %v2154_v55  ;;  %v2153_v2 = vmul.f32 %v2149_v58, %v2149_v58 }
 0xbcf   :  { %v2158_v50 = vadd.f32 %v2156_v8, %v2146_v44  ;;  %v2155_v48 = vmul.f32 %v2153_v2, %v2149_v58 }
 0xbd1   :  { %v2160_v10 = vmul.f32 0.7978846, %v2158_v50  ;;  %v2157_v4 = vmul.f32 0.044715, %v2155_v48 }
 0xbd3   :  { %2721 = vtanh.f32 %v2160_v10  ;;  %v2159_v59 = vadd.f32 %v2157_v4, %v2149_v58 }
 0xbd5   :  { %v2161_v60 = vmul.f32 0.7978846, %v2159_v59 }
 0xbd7   :  { %2723 = vtanh.f32 %v2161_v60 }
 0xbe0   :  { %v2722_v62 = vpop.eup %2721 }
 0xbe1   :  { %v2164_v63 = vadd.f32 1.0, %v2722_v62 }
 0xbe3   :  { %v2166_v9 = vmul.f32 0.5, %v2164_v63 }
 0xbe4   :  { %v2724_v53 = vpop.eup %2723 }
 0xbe5   :  { %v2165_v0 = vadd.f32 1.0, %v2724_v53  ;;  %v2168_v52 = vmul.f32 %v2166_v9, %v2146_v44 }
 0xbe7   :  { %v2167_v51 = vmul.f32 0.5, %v2165_v0 }
 0xbe9   :  { %v2169_v57 = vmul.f32 %v2167_v51, %v2149_v58 }
 0xbeb   :  { %v2170_v61 = vpack.c.bf16 %v2169_v57, %v2168_v52 }
 0xbed   :  { %2650 = vmatmul.mubr.bf16.vlgmr.msra.gmra.mxu0 %v2170_v61 }
 0xcad   :  { %v2276_v46 = vpop.f32.mrf.mxu0 }
 0xcae   :  { %v2277_v15 = vadd.f32 %v2364_v33, %v2276_v46 }
 0xcaf   :  { %v2651_v20 = vpop.f32.mrf.mxu0 }
 0xcb0   :  { %v2291_v45 = vmul.f32 %v2286_v29, %v2277_v15 }
 0xcb1   :  { %v2279_v47 = vpop.f32.mrf.mxu0 }
 0xcb2   :  { %v2293_v24 = vadd.f32 %v2291_v45, %v3192_v32  ;;  %v2280_v36 = vadd.f32 %v2364_v33, %v2279_v47 }
 0xcb3   :  { %v2652_v11 = vpop.f32.mrf.mxu0 }
 0xcb4   :  { %2295 = vst.msk [vmem:[#allocation2] sm:$0xff] %vm55_vm0, %v2293_v24  ;;  %v2292_v13 = vmul.f32 %v2290_v23, %v2280_v36 }
 0xcb6   :  { %v2294_v26 = vadd.f32 %v2292_v13, %v3250_v54 }
 0xcb8   :  { %2296 = vst.msk [vmem:[#allocation2 + $0x8] sm:$0xff] %vm55_vm0, %v2294_v26 }
 0xcb9   :  { %2738 = shalt.err (!%p2735_p4)
}
 0xcba   :  { %s2753_s16 = smov 128   ;;  %s2754_s10 = smov 8  }
 0xcbb   :  { %2308 = dma.vmem_to_hbm [thread:$0]  %s2303_s15, 256, %s3345_s14, [#allocation3], %s2753_s16, %s2753_s16, %s2754_s10  }
 0xcbc   :  { %2747 = dma.done.wait [#allocation3], 256  }
 0xcbd   :  { %2748 = vsyncadd [#allocation3], 4294967040 }
 0xcbe   :  { %2312 = vsyncpa [#allocation3], 1 }

</bundles_post_ra>
